<compile_context>
chip_gen: v6e
topology: v6e:2x2x1
jax: 0.10.0
libtpu: 0.0.40
codegen_flags: <defaults>
</compile_context>

<pallas_src>
import functools

import jax
import jax.numpy as jnp
from jax.experimental import pallas as pl
from jax.experimental.pallas import tpu as pltpu

_F32 = jnp.float32
_BF16 = jnp.bfloat16


# ----------------------------------------------------------------------------- utils
def _silu(z):
    return z * jax.nn.sigmoid(z)


def _softplus(z):
    return jnp.maximum(z, 0.0) + jnp.log1p(jnp.exp(-jnp.abs(z)))


def _mm(a, b):
    """bf16-operand MXU matmul, f32 accumulation."""
    return jnp.dot(a.astype(_BF16), b.astype(_BF16), preferred_element_type=_F32)


def _mm_t(a, b):
    """a @ b.T on the MXU (contract last dims), bf16 operands, f32 accumulation."""
    return jax.lax.dot_general(a.astype(_BF16), b.astype(_BF16),
                               (((1,), (1,)), ((), ())),
                               preferred_element_type=_F32)


# ----------------------------------------------------------------------------- fused forward kernel
def _fused_kernel(
        # per-graph-batch tensors (leading batch dim squeezed by BlockSpec)
        h_in_ref, dist_ref, asrc_adst_ref, adst_t_ref, ro_ref,
        # embedding_h + rbf MLP
        emb_w_ref, emb_b_ref, cent_ref, rbf_w1_ref, rbf_b1_ref, rbf_w2_ref, rbf_b2_ref,
        # GAU params, stacked with leading layer axis (L, ...)
        ln_g_ref, ln_b_ref, uvb_w_ref, uvb_b_ref,
        qw_ref, qb_ref, kw_ref, kb_ref, ow_ref, ob_ref,
        # EdgeGatedGraphConv params, stacked with leading layer axis (L+K, ...)
        wn_ref, bnb_ref, we_ref, be_ref, gn_ref, btn_ref, ge_ref, bte_ref,
        # FC head (fc2 lane-padded to width 128)
        fc_w1_ref, fc_b1_ref, fc_w2_ref, fc_b2_ref,
        # output: lane-dense (G_pad, 128) slab
        out_ref,
        *, L, K, D, E_EXP, S_DIM, eps, gamma, residual):

    # ---- h = embedding_h(h) : Linear(num_atom_type -> D) ------------------------
    h = _mm(h_in_ref[...], emb_w_ref[...]) + emb_b_ref[...]

    # ---- lh = rbf(lh) : RBFExpansion(0,8,bins) -> Linear -> Softplus -> Linear --
    d = dist_ref[...]                                     # (E, 1)
    rbf = jnp.exp(-gamma * (d - cent_ref[...]) ** 2)      # (E, bins)
    t = _softplus(_mm(rbf, rbf_w1_ref[...]) + rbf_b1_ref[...])
    lh = _mm(t, rbf_w2_ref[...]) + rbf_b2_ref[...]

    # in_feat_dropout -> identity (inference semantics).
    # relu2 attn_mask from the reference forward is built but unused by
    # GAU(relu2=True); skipped.

    asrc_adst = asrc_adst_ref[...]     # (E, 2N) = [one_hot(src) | one_hot(dst)]
    adst_t = adst_t_ref[...]           # (N, E)

    def gau(l, x):
        """Gated Attention Unit (relu2 kernel, silu act, layer_norm)."""
        shortcut = x
        mu = jnp.mean(x, axis=-1, keepdims=True)
        var = jnp.mean((x - mu) ** 2, axis=-1, keepdims=True)
        xn = (x - mu) * jax.lax.rsqrt(var + eps) * ln_g_ref[l] + ln_b_ref[l]
        # single fused Linear(D, 2e+s); u | v | base are static lane slices
        uvb = _silu(_mm(xn, uvb_w_ref[l]) + uvb_b_ref[l])          # (N, 2e+s)
        u = uvb[:, 0:E_EXP]
        v = uvb[:, E_EXP:2 * E_EXP]
        base = uvb[:, 2 * E_EXP:2 * E_EXP + S_DIM]
        # q/k affine; the relu2 1/sqrt(128) scale is pre-folded into qw/qb/kw/kb.
        q = base * qw_ref[l] + qb_ref[l]
        k = base * kw_ref[l] + kb_ref[l]
        qk = _mm_t(q, k)                                           # (N, N)
        kern = jnp.square(jnp.maximum(qk, 0.0))                    # relu^2
        xo = u * _mm(kern, v)
        return _mm(xo, ow_ref[l]) + ob_ref[l] + shortcut

    def egc(l, node, edge):
        """EdgeGatedGraphConv (training-mode BatchNorm1d, silu, residual)."""
        N = node.shape[0]
        # fused node projection; column layout [src_gate | Bh | dst_gate | src_update]
        proj = _mm(node, wn_ref[l]) + bnb_ref[l]                   # (N, 4D)
        src_up = proj[:, 3 * D:4 * D]
        e_gate = _mm(edge, we_ref[l]) + be_ref[l]                  # (E, D)
        # single (E,2N)x(2N,2D) gather matmul:
        #   rows [0:N]  -> [src_gate | Bh]
        #   rows [N:2N] -> [dst_gate | 0  ]
        rhs = jnp.concatenate(
            [proj[:, 0:2 * D],
             jnp.concatenate([proj[:, 2 * D:3 * D],
                              jnp.zeros((N, D), _F32)], axis=-1)],
            axis=0)                                                # (2N, 2D)
        gath = _mm(asrc_adst, rhs)                                 # (E, 2D)
        m = gath[:, 0:D] + e_gate                                  # e_src + e_dst + e_gate
        sigma = jax.nn.sigmoid(m)
        bh_src = gath[:, D:2 * D]
        # one (N,E)x(E,2D) scatter-sum matmul for [sigma*Bh | sigma]
        agg = _mm(adst_t, jnp.concatenate([bh_src * sigma, sigma], axis=-1))
        feat = agg[:, 0:D] * pl.reciprocal(agg[:, D:2 * D] + 1e-6, approx=True)
        x = src_up + feat

        def bn(z, g, b):         # BatchNorm1d, batch statistics, biased variance
            mu = jnp.mean(z, axis=0, keepdims=True)
            var = jnp.mean((z - mu) ** 2, axis=0, keepdims=True)
            return (z - mu) * jax.lax.rsqrt(var + eps) * g + b

        x = _silu(bn(x, gn_ref[l], btn_ref[l]))
        y = _silu(bn(m, ge_ref[l], bte_ref[l]))
        if residual:
            x = node + x
            y = edge + y
        return x, y

    # ---- L x (GAU -> EdgeGatedGraphConv) then K x EdgeGatedGraphConv, fully unrolled
    for l in range(L):
        h = gau(l, h)
        h, lh = egc(l, h, lh)
    for k in range(K):
        h, lh = egc(L + k, h, lh)

    # ---- readout == 'mean' (row-normalized membership matrix) + FC head -----------
    hg = _mm(ro_ref[...], h)                                       # (G_pad, D)
    z = _silu(_mm(hg, fc_w1_ref[...]) + fc_b1_ref[...])
    out_ref[...] = _mm(z, fc_w2_ref[...]) + fc_b2_ref[...]         # (G_pad, 128)


# ----------------------------------------------------------------------------- wrapper
def gaunet0_forward(params, h_in, lh_dist, asrc_adst, adst_t, readout_pad, n_graphs, cfg):
    """All per-graph tensors carry a leading batch dim B (independent graph-batches)."""
    B = h_in.shape[0]
    D = cfg["hidden_dim"]
    g_pad = readout_pad.shape[1]

    p = params
    per_graph = (h_in, lh_dist, asrc_adst, adst_t, readout_pad)
    weights = (
        p["emb_w"], p["emb_b"], p["rbf_centers"], p["rbf_w1"], p["rbf_b1"],
        p["rbf_w2"], p["rbf_b2"],
        p["gau_ln_g"], p["gau_ln_b"], p["gau_uvb_w"], p["gau_uvb_b"],
        p["gau_q_w"], p["gau_q_b"], p["gau_k_w"], p["gau_k_b"],
        p["gau_o_w"], p["gau_o_b"],
        p["gcn_wn"], p["gcn_bn"], p["gcn_we"], p["gcn_be"],
        p["gcn_gn"], p["gcn_btn"], p["gcn_ge"], p["gcn_bte"],
        p["fc_w1"], p["fc_b1"], p["fc_w2p"], p["fc_b2p"],
    )

    def batched_spec(x):                 # squeeze the batch dim, index by grid step
        n = x.ndim - 1
        return pl.BlockSpec((None,) + x.shape[1:], lambda b, n=n: (b,) + (0,) * n)

    def fixed_spec(x):                   # block index constant -> stays VMEM-resident
        n = x.ndim
        return pl.BlockSpec(x.shape, lambda b, n=n: (0,) * n)

    kern = functools.partial(_fused_kernel, L=cfg["L"], K=cfg["K"], D=D,
                             E_EXP=cfg["e"], S_DIM=cfg["s"],
                             eps=cfg["eps"], gamma=cfg["rbf_gamma"], residual=True)
    out_pad = pl.pallas_call(
        kern,
        grid=(B,),
        in_specs=[batched_spec(x) for x in per_graph] + [fixed_spec(w) for w in weights],
        out_specs=pl.BlockSpec((None, g_pad, 128), lambda b: (b, 0, 0)),
        out_shape=jax.ShapeDtypeStruct((B, g_pad, 128), jnp.float32),
        compiler_params=pltpu.CompilerParams(
            dimension_semantics=("parallel",)),
    )(*per_graph, *weights)
    return out_pad[:, :n_graphs, :1]


# ----------------------------------------------------------------------------- params
def make_params(key, cfg):
    D = cfg["hidden_dim"]
    e = cfg["e"]
    s = cfg["s"]
    bins = cfg["edge_input_dim"]
    F = cfg["embedding_features"]
    in_dim = cfg["in_dim"]
    fcF = cfg["fc_features"]
    L, K = cfg["L"], cfg["K"]
    keys = iter(jax.random.split(key, 128))

    def rnd(shape, std=0.05):
        return (std * jax.random.normal(next(keys), shape)).astype(jnp.float32)

    def zeros(shape):
        return jnp.zeros(shape, jnp.float32)

    def ones(shape):
        return jnp.ones(shape, jnp.float32)

    p = {}
    p["emb_w"] = rnd((cfg["num_atom_type"], D)); p["emb_b"] = zeros((1, D))
    # RBFExpansion(vmin=0, vmax=8, bins)
    p["rbf_centers"] = jnp.linspace(0.0, 8.0, bins, dtype=jnp.float32).reshape(1, bins)
    p["rbf_w1"] = rnd((bins, F)); p["rbf_b1"] = zeros((1, F))
    p["rbf_w2"] = rnd((F, in_dim)); p["rbf_b2"] = zeros((1, in_dim))

    # ---- GAU params, stacked over L layers --------------------------------------
    p["gau_ln_g"] = ones((L, 1, D)); p["gau_ln_b"] = zeros((L, 1, D))
    # uv Linear(D, 2e+s), columns [u | v | base]
    p["gau_uvb_w"] = rnd((L, D, 2 * e + s)); p["gau_uvb_b"] = zeros((L, 1, 2 * e + s))
    # q/k affine (torch weight row 0 -> q, row 1 -> k; bias init zeros) with the
    # relu2 1/sqrt(128) scale pre-folded: (c*q) @ (c*k)^T == q@k^T / sqrt(128).
    c = 128.0 ** -0.25
    p["gau_q_w"] = c * rnd((L, 1, s), std=0.02); p["gau_q_b"] = c * zeros((L, 1, s))
    p["gau_k_w"] = c * rnd((L, 1, s), std=0.02); p["gau_k_b"] = c * zeros((L, 1, s))
    p["gau_o_w"] = rnd((L, e, D)); p["gau_o_b"] = zeros((L, 1, D))

    # ---- EdgeGatedGraphConv params, stacked over L (interleaved) + K (end) layers -
    # Node-side Linears fused into one (D, 4D) weight, columns
    # [src_gate | dst_update(Bh) | dst_gate | src_update].
    nl = L + K
    p["gcn_wn"] = rnd((nl, D, 4 * D)); p["gcn_bn"] = zeros((nl, 1, 4 * D))
    p["gcn_we"] = rnd((nl, D, D)); p["gcn_be"] = zeros((nl, 1, D))
    p["gcn_gn"] = ones((nl, 1, D)); p["gcn_btn"] = zeros((nl, 1, D))
    p["gcn_ge"] = ones((nl, 1, D)); p["gcn_bte"] = zeros((nl, 1, D))

    # ---- FC head; fc2 (out width 1) lane-padded to 128 for unmasked stores --------
    p["fc_w1"] = rnd((D, fcF)); p["fc_b1"] = zeros((1, fcF))
    w2 = rnd((fcF, 1)); b2 = zeros((1, 1))
    p["fc_w2p"] = jnp.pad(w2, ((0, 0), (0, 127)))
    p["fc_b2p"] = jnp.pad(b2, ((0, 0), (0, 127)))
    return p


# ----------------------------------------------------------------------------- main
if __name__ == "__main__":
    cfg = dict(num_atom_type=10, edge_input_dim=16, embedding_features=32,
               in_dim=32, hidden_dim=32, out_dim=32, embedding_dim=32,
               expansion_factor=2, s=16, L=2, K=1, fc_features=32, eps=1e-5)
    cfg["e"] = int(cfg["hidden_dim"] * cfg["expansion_factor"])
    # RBFExpansion(vmin=0, vmax=8, bins): gamma = 1 / mean(diff(centers)) = (bins-1)/8
    cfg["rbf_gamma"] = float(cfg["edge_input_dim"] - 1) / 8.0

    key = jax.random.PRNGKey(0)
    kp, kh, kd = jax.random.split(key, 3)
    params = make_params(kp, cfg)

    # One graph-batch = 2 ring graphs of 8 nodes, bidirectional edges (N=16, E=32);
    # B=4 independent graph-batches stacked along the Pallas grid axis.
    B, G, N_per = 4, 2, 8
    N = G * N_per
    src_l, dst_l = [], []
    for g in range(G):
        base = g * N_per
        for i in range(N_per):
            src_l += [base + i, base + (i + 1) % N_per]
            dst_l += [base + (i + 1) % N_per, base + i]
    src = jnp.asarray(src_l, jnp.int32)
    dst = jnp.asarray(dst_l, jnp.int32)
    E = src.shape[0]

    asrc = jax.nn.one_hot(src, N, dtype=jnp.float32)               # (E, N)
    adst = jax.nn.one_hot(dst, N, dtype=jnp.float32)               # (E, N)
    asrc_adst = jnp.concatenate([asrc, adst], axis=1).astype(jnp.bfloat16)   # (E, 2N)
    adst_t = adst.T.astype(jnp.bfloat16)                            # (N, E)

    seg = jnp.repeat(jnp.arange(G), N_per)
    memb = jax.nn.one_hot(seg, G, dtype=jnp.float32).T              # (G, N)
    readout_mat = memb / jnp.sum(memb, axis=1, keepdims=True)       # mean readout (1/8 exact in bf16)
    g_pad = max(8, ((G + 7) // 8) * 8)
    readout_pad = jnp.pad(readout_mat, ((0, g_pad - G), (0, 0))).astype(jnp.bfloat16)

    def stack(x):
        return jnp.tile(x[None], (B,) + (1,) * x.ndim)

    asrc_adst_b = stack(asrc_adst)
    adst_t_b = stack(adst_t)
    readout_b = stack(readout_pad)
    h_in_b = jax.random.normal(kh, (B, N, cfg["num_atom_type"]), dtype=jnp.float32)
    lh_dist_b = jax.random.uniform(kd, (B, E, 1), minval=0.0, maxval=8.0,
                                   dtype=jnp.float32)

    out = gaunet0_forward(params, h_in_b, lh_dist_b, asrc_adst_b, adst_t_b,
                          readout_b, G, cfg)
    out = jax.block_until_ready(out)
    assert out.shape == (B, G, 1)
    assert bool(jnp.all(jnp.isfinite(out)))
    print("KERNEL_OK")
</pallas_src>

<mosaic_0001>
module attributes {stable_mosaic.version = 11 : i64} {
  func.func @_fused_kernel(%arg0: i32, %arg1: memref<1x16x10xf32, #tpu.memory_space<vmem>>, %arg2: memref<1x32x1xf32, #tpu.memory_space<vmem>>, %arg3: memref<1x32x32xbf16, #tpu.memory_space<vmem>>, %arg4: memref<1x16x32xbf16, #tpu.memory_space<vmem>>, %arg5: memref<1x8x16xbf16, #tpu.memory_space<vmem>>, %arg6: memref<10x32xf32, #tpu.memory_space<vmem>>, %arg7: memref<1x32xf32, #tpu.memory_space<vmem>>, %arg8: memref<1x16xf32, #tpu.memory_space<vmem>>, %arg9: memref<16x32xf32, #tpu.memory_space<vmem>>, %arg10: memref<1x32xf32, #tpu.memory_space<vmem>>, %arg11: memref<32x32xf32, #tpu.memory_space<vmem>>, %arg12: memref<1x32xf32, #tpu.memory_space<vmem>>, %arg13: memref<2x1x32xf32, #tpu.memory_space<vmem>>, %arg14: memref<2x1x32xf32, #tpu.memory_space<vmem>>, %arg15: memref<2x32x144xf32, #tpu.memory_space<vmem>>, %arg16: memref<2x1x144xf32, #tpu.memory_space<vmem>>, %arg17: memref<2x1x16xf32, #tpu.memory_space<vmem>>, %arg18: memref<2x1x16xf32, #tpu.memory_space<vmem>>, %arg19: memref<2x1x16xf32, #tpu.memory_space<vmem>>, %arg20: memref<2x1x16xf32, #tpu.memory_space<vmem>>, %arg21: memref<2x64x32xf32, #tpu.memory_space<vmem>>, %arg22: memref<2x1x32xf32, #tpu.memory_space<vmem>>, %arg23: memref<3x32x128xf32, #tpu.memory_space<vmem>>, %arg24: memref<3x1x128xf32, #tpu.memory_space<vmem>>, %arg25: memref<3x32x32xf32, #tpu.memory_space<vmem>>, %arg26: memref<3x1x32xf32, #tpu.memory_space<vmem>>, %arg27: memref<3x1x32xf32, #tpu.memory_space<vmem>>, %arg28: memref<3x1x32xf32, #tpu.memory_space<vmem>>, %arg29: memref<3x1x32xf32, #tpu.memory_space<vmem>>, %arg30: memref<3x1x32xf32, #tpu.memory_space<vmem>>, %arg31: memref<32x32xf32, #tpu.memory_space<vmem>>, %arg32: memref<1x32xf32, #tpu.memory_space<vmem>>, %arg33: memref<32x128xf32, #tpu.memory_space<vmem>>, %arg34: memref<1x128xf32, #tpu.memory_space<vmem>>, %arg35: memref<1x8x128xf32, #tpu.memory_space<vmem>>) attributes {dimension_semantics = [#tpu.dimension_semantics<parallel>], iteration_bounds = array<i64: 4>, scalar_prefetch = 0 : i64, scratch_operands = 0 : i64, tpu.core_type = #tpu.core_type<tc>, window_params = [{transform_indices = @transform_0, window_bounds = array<i64: 1, 16, 10>}, {transform_indices = @transform_1, window_bounds = array<i64: 1, 32, 1>}, {transform_indices = @transform_2, window_bounds = array<i64: 1, 32, 32>}, {transform_indices = @transform_3, window_bounds = array<i64: 1, 16, 32>}, {transform_indices = @transform_4, window_bounds = array<i64: 1, 8, 16>}, {pipeline_mode = #tpu.pipeline_mode<synchronous>, transform_indices = @transform_5, window_bounds = array<i64: 10, 32>}, {pipeline_mode = #tpu.pipeline_mode<synchronous>, transform_indices = @transform_6, window_bounds = array<i64: 1, 32>}, {pipeline_mode = #tpu.pipeline_mode<synchronous>, transform_indices = @transform_7, window_bounds = array<i64: 1, 16>}, {pipeline_mode = #tpu.pipeline_mode<synchronous>, transform_indices = @transform_8, window_bounds = array<i64: 16, 32>}, {pipeline_mode = #tpu.pipeline_mode<synchronous>, transform_indices = @transform_9, window_bounds = array<i64: 1, 32>}, {pipeline_mode = #tpu.pipeline_mode<synchronous>, transform_indices = @transform_10, window_bounds = array<i64: 32, 32>}, {pipeline_mode = #tpu.pipeline_mode<synchronous>, transform_indices = @transform_11, window_bounds = array<i64: 1, 32>}, {pipeline_mode = #tpu.pipeline_mode<synchronous>, transform_indices = @transform_12, window_bounds = array<i64: 2, 1, 32>}, {pipeline_mode = #tpu.pipeline_mode<synchronous>, transform_indices = @transform_13, window_bounds = array<i64: 2, 1, 32>}, {pipeline_mode = #tpu.pipeline_mode<synchronous>, transform_indices = @transform_14, window_bounds = array<i64: 2, 32, 144>}, {pipeline_mode = #tpu.pipeline_mode<synchronous>, transform_indices = @transform_15, window_bounds = array<i64: 2, 1, 144>}, {pipeline_mode = #tpu.pipeline_mode<synchronous>, transform_indices = @transform_16, window_bounds = array<i64: 2, 1, 16>}, {pipeline_mode = #tpu.pipeline_mode<synchronous>, transform_indices = @transform_17, window_bounds = array<i64: 2, 1, 16>}, {pipeline_mode = #tpu.pipeline_mode<synchronous>, transform_indices = @transform_18, window_bounds = array<i64: 2, 1, 16>}, {pipeline_mode = #tpu.pipeline_mode<synchronous>, transform_indices = @transform_19, window_bounds = array<i64: 2, 1, 16>}, {pipeline_mode = #tpu.pipeline_mode<synchronous>, transform_indices = @transform_20, window_bounds = array<i64: 2, 64, 32>}, {pipeline_mode = #tpu.pipeline_mode<synchronous>, transform_indices = @transform_21, window_bounds = array<i64: 2, 1, 32>}, {pipeline_mode = #tpu.pipeline_mode<synchronous>, transform_indices = @transform_22, window_bounds = array<i64: 3, 32, 128>}, {pipeline_mode = #tpu.pipeline_mode<synchronous>, transform_indices = @transform_23, window_bounds = array<i64: 3, 1, 128>}, {pipeline_mode = #tpu.pipeline_mode<synchronous>, transform_indices = @transform_24, window_bounds = array<i64: 3, 32, 32>}, {pipeline_mode = #tpu.pipeline_mode<synchronous>, transform_indices = @transform_25, window_bounds = array<i64: 3, 1, 32>}, {pipeline_mode = #tpu.pipeline_mode<synchronous>, transform_indices = @transform_26, window_bounds = array<i64: 3, 1, 32>}, {pipeline_mode = #tpu.pipeline_mode<synchronous>, transform_indices = @transform_27, window_bounds = array<i64: 3, 1, 32>}, {pipeline_mode = #tpu.pipeline_mode<synchronous>, transform_indices = @transform_28, window_bounds = array<i64: 3, 1, 32>}, {pipeline_mode = #tpu.pipeline_mode<synchronous>, transform_indices = @transform_29, window_bounds = array<i64: 3, 1, 32>}, {pipeline_mode = #tpu.pipeline_mode<synchronous>, transform_indices = @transform_30, window_bounds = array<i64: 32, 32>}, {pipeline_mode = #tpu.pipeline_mode<synchronous>, transform_indices = @transform_31, window_bounds = array<i64: 1, 32>}, {pipeline_mode = #tpu.pipeline_mode<synchronous>, transform_indices = @transform_32, window_bounds = array<i64: 32, 128>}, {pipeline_mode = #tpu.pipeline_mode<synchronous>, transform_indices = @transform_33, window_bounds = array<i64: 1, 128>}, {transform_indices = @transform_34, window_bounds = array<i64: 1, 8, 128>}]} {
    %c0 = arith.constant 0 : index
    %c0_0 = arith.constant 0 : index
    %c0_1 = arith.constant 0 : index
    %0 = vector.load %arg1[%c0, %c0_0, %c0_1] : memref<1x16x10xf32, #tpu.memory_space<vmem>>, vector<1x16x10xf32>
    %1 = vector.shape_cast %0 : vector<1x16x10xf32> to vector<16x10xf32>
    %c0_2 = arith.constant 0 : index
    %c0_3 = arith.constant 0 : index
    %2 = vector.load %arg6[%c0_2, %c0_3] : memref<10x32xf32, #tpu.memory_space<vmem>>, vector<10x32xf32>
    %3 = arith.truncf %1 : vector<16x10xf32> to vector<16x10xbf16>
    %4 = arith.truncf %2 : vector<10x32xf32> to vector<10x32xbf16>
    %cst = arith.constant dense<0.000000e+00> : vector<16x32xf32>
    %5 = tpu.matmul %3, %4, %cst {dimension_numbers = #tpu.dot_dimension_numbers<[1], [0], [0], [1], [0, 0, 1, 1], [], []>} : vector<16x10xbf16>, vector<10x32xbf16>, vector<16x32xf32> -> vector<16x32xf32>
    %c0_4 = arith.constant 0 : index
    %c0_5 = arith.constant 0 : index
    %6 = vector.load %arg7[%c0_4, %c0_5] : memref<1x32xf32, #tpu.memory_space<vmem>>, vector<1x32xf32>
    %7 = vector.broadcast %6 : vector<1x32xf32> to vector<16x32xf32>
    %8 = arith.addf %5, %7 : vector<16x32xf32>
    %c0_6 = arith.constant 0 : index
    %c0_7 = arith.constant 0 : index
    %c0_8 = arith.constant 0 : index
    %9 = vector.load %arg2[%c0_6, %c0_7, %c0_8] : memref<1x32x1xf32, #tpu.memory_space<vmem>>, vector<1x32x1xf32>
    %10 = vector.shape_cast %9 : vector<1x32x1xf32> to vector<32x1xf32>
    %c0_9 = arith.constant 0 : index
    %c0_10 = arith.constant 0 : index
    %11 = vector.load %arg8[%c0_9, %c0_10] : memref<1x16xf32, #tpu.memory_space<vmem>>, vector<1x16xf32>
    %12 = vector.broadcast %10 : vector<32x1xf32> to vector<32x16xf32>
    %13 = vector.broadcast %11 : vector<1x16xf32> to vector<32x16xf32>
    %14 = arith.subf %12, %13 : vector<32x16xf32>
    %15 = arith.mulf %14, %14 : vector<32x16xf32>
    %cst_11 = arith.constant -1.875000e+00 : f32
    %16 = vector.broadcast %cst_11 : f32 to vector<32x16xf32>
    %17 = arith.mulf %16, %15 : vector<32x16xf32>
    %18 = math.exp %17 : vector<32x16xf32>
    %c0_12 = arith.constant 0 : index
    %c0_13 = arith.constant 0 : index
    %19 = vector.load %arg9[%c0_12, %c0_13] : memref<16x32xf32, #tpu.memory_space<vmem>>, vector<16x32xf32>
    %20 = arith.truncf %18 : vector<32x16xf32> to vector<32x16xbf16>
    %21 = arith.truncf %19 : vector<16x32xf32> to vector<16x32xbf16>
    %cst_14 = arith.constant dense<0.000000e+00> : vector<32x32xf32>
    %22 = tpu.matmul %20, %21, %cst_14 {dimension_numbers = #tpu.dot_dimension_numbers<[1], [0], [0], [1], [0, 0, 1, 1], [], []>} : vector<32x16xbf16>, vector<16x32xbf16>, vector<32x32xf32> -> vector<32x32xf32>
    %c0_15 = arith.constant 0 : index
    %c0_16 = arith.constant 0 : index
    %23 = vector.load %arg10[%c0_15, %c0_16] : memref<1x32xf32, #tpu.memory_space<vmem>>, vector<1x32xf32>
    %24 = vector.broadcast %23 : vector<1x32xf32> to vector<32x32xf32>
    %25 = arith.addf %22, %24 : vector<32x32xf32>
    %cst_17 = arith.constant 0.000000e+00 : f32
    %26 = vector.broadcast %cst_17 : f32 to vector<32x32xf32>
    %27 = arith.maximumf %25, %26 : vector<32x32xf32>
    %28 = math.absf %25 : vector<32x32xf32>
    %cst_18 = arith.constant 0.000000e+00 : f32
    %29 = vector.broadcast %cst_18 : f32 to vector<32x32xf32>
    %30 = arith.subf %29, %28 : vector<32x32xf32>
    %31 = math.exp %30 : vector<32x32xf32>
    %32 = math.log1p %31 : vector<32x32xf32>
    %33 = arith.addf %27, %32 : vector<32x32xf32>
    %c0_19 = arith.constant 0 : index
    %c0_20 = arith.constant 0 : index
    %34 = vector.load %arg11[%c0_19, %c0_20] : memref<32x32xf32, #tpu.memory_space<vmem>>, vector<32x32xf32>
    %35 = arith.truncf %33 : vector<32x32xf32> to vector<32x32xbf16>
    %36 = arith.truncf %34 : vector<32x32xf32> to vector<32x32xbf16>
    %cst_21 = arith.constant dense<0.000000e+00> : vector<32x32xf32>
    %37 = tpu.matmul %35, %36, %cst_21 {dimension_numbers = #tpu.dot_dimension_numbers<[1], [0], [0], [1], [0, 0, 1, 1], [], []>} : vector<32x32xbf16>, vector<32x32xbf16>, vector<32x32xf32> -> vector<32x32xf32>
    %c0_22 = arith.constant 0 : index
    %c0_23 = arith.constant 0 : index
    %38 = vector.load %arg12[%c0_22, %c0_23] : memref<1x32xf32, #tpu.memory_space<vmem>>, vector<1x32xf32>
    %39 = vector.broadcast %38 : vector<1x32xf32> to vector<32x32xf32>
    %40 = arith.addf %37, %39 : vector<32x32xf32>
    %c0_24 = arith.constant 0 : index
    %c0_25 = arith.constant 0 : index
    %c0_26 = arith.constant 0 : index
    %41 = vector.load %arg3[%c0_24, %c0_25, %c0_26] : memref<1x32x32xbf16, #tpu.memory_space<vmem>>, vector<1x32x32xbf16>
    %42 = vector.shape_cast %41 : vector<1x32x32xbf16> to vector<32x32xbf16>
    %c0_27 = arith.constant 0 : index
    %c0_28 = arith.constant 0 : index
    %c0_29 = arith.constant 0 : index
    %43 = vector.load %arg4[%c0_27, %c0_28, %c0_29] : memref<1x16x32xbf16, #tpu.memory_space<vmem>>, vector<1x16x32xbf16>
    %44 = vector.shape_cast %43 : vector<1x16x32xbf16> to vector<16x32xbf16>
    %cst_30 = arith.constant dense<0.000000e+00> : vector<16xf32>
    %45 = vector.multi_reduction <add>, %8, %cst_30 [1] : vector<16x32xf32> to vector<16xf32>
    %46 = vector.shape_cast %45 : vector<16xf32> to vector<16x1xf32>
    %cst_31 = arith.constant 3.200000e+01 : f32
    %47 = vector.broadcast %cst_31 : f32 to vector<16x1xf32>
    %48 = arith.divf %46, %47 : vector<16x1xf32>
    %49 = vector.broadcast %48 : vector<16x1xf32> to vector<16x32xf32>
    %50 = arith.subf %8, %49 : vector<16x32xf32>
    %51 = arith.mulf %50, %50 : vector<16x32xf32>
    %cst_32 = arith.constant dense<0.000000e+00> : vector<16xf32>
    %52 = vector.multi_reduction <add>, %51, %cst_32 [1] : vector<16x32xf32> to vector<16xf32>
    %53 = vector.shape_cast %52 : vector<16xf32> to vector<16x1xf32>
    %cst_33 = arith.constant 3.200000e+01 : f32
    %54 = vector.broadcast %cst_33 : f32 to vector<16x1xf32>
    %55 = arith.divf %53, %54 : vector<16x1xf32>
    %56 = vector.broadcast %48 : vector<16x1xf32> to vector<16x32xf32>
    %57 = arith.subf %8, %56 : vector<16x32xf32>
    %cst_34 = arith.constant 9.99999974E-6 : f32
    %58 = vector.broadcast %cst_34 : f32 to vector<16x1xf32>
    %59 = arith.addf %55, %58 : vector<16x1xf32>
    %60 = math.rsqrt %59 : vector<16x1xf32>
    %61 = vector.broadcast %60 : vector<16x1xf32> to vector<16x32xf32>
    %62 = arith.mulf %57, %61 : vector<16x32xf32>
    %c0_35 = arith.constant 0 : index
    %c0_36 = arith.constant 0 : index
    %c0_37 = arith.constant 0 : index
    %63 = vector.load %arg13[%c0_35, %c0_36, %c0_37] : memref<2x1x32xf32, #tpu.memory_space<vmem>>, vector<1x1x32xf32>
    %64 = vector.shape_cast %63 : vector<1x1x32xf32> to vector<1x32xf32>
    %65 = vector.broadcast %64 : vector<1x32xf32> to vector<16x32xf32>
    %66 = arith.mulf %62, %65 : vector<16x32xf32>
    %c0_38 = arith.constant 0 : index
    %c0_39 = arith.constant 0 : index
    %c0_40 = arith.constant 0 : index
    %67 = vector.load %arg14[%c0_38, %c0_39, %c0_40] : memref<2x1x32xf32, #tpu.memory_space<vmem>>, vector<1x1x32xf32>
    %68 = vector.shape_cast %67 : vector<1x1x32xf32> to vector<1x32xf32>
    %69 = vector.broadcast %68 : vector<1x32xf32> to vector<16x32xf32>
    %70 = arith.addf %66, %69 : vector<16x32xf32>
    %c0_41 = arith.constant 0 : index
    %c0_42 = arith.constant 0 : index
    %c0_43 = arith.constant 0 : index
    %71 = vector.load %arg15[%c0_41, %c0_42, %c0_43] : memref<2x32x144xf32, #tpu.memory_space<vmem>>, vector<1x32x144xf32>
    %72 = vector.shape_cast %71 : vector<1x32x144xf32> to vector<32x144xf32>
    %73 = arith.truncf %70 : vector<16x32xf32> to vector<16x32xbf16>
    %74 = arith.truncf %72 : vector<32x144xf32> to vector<32x144xbf16>
    %cst_44 = arith.constant dense<0.000000e+00> : vector<16x144xf32>
    %75 = tpu.matmul %73, %74, %cst_44 {dimension_numbers = #tpu.dot_dimension_numbers<[1], [0], [0], [1], [0, 0, 1, 1], [], []>} : vector<16x32xbf16>, vector<32x144xbf16>, vector<16x144xf32> -> vector<16x144xf32>
    %c0_45 = arith.constant 0 : index
    %c0_46 = arith.constant 0 : index
    %c0_47 = arith.constant 0 : index
    %76 = vector.load %arg16[%c0_45, %c0_46, %c0_47] : memref<2x1x144xf32, #tpu.memory_space<vmem>>, vector<1x1x144xf32>
    %77 = vector.shape_cast %76 : vector<1x1x144xf32> to vector<1x144xf32>
    %78 = vector.broadcast %77 : vector<1x144xf32> to vector<16x144xf32>
    %79 = arith.addf %75, %78 : vector<16x144xf32>
    %80 = arith.negf %79 : vector<16x144xf32>
    %81 = math.exp %80 : vector<16x144xf32>
    %cst_48 = arith.constant 1.000000e+00 : f32
    %82 = vector.broadcast %cst_48 : f32 to vector<16x144xf32>
    %83 = arith.addf %82, %81 : vector<16x144xf32>
    %84 = arith.divf %82, %83 : vector<16x144xf32>
    %85 = arith.mulf %79, %84 : vector<16x144xf32>
    %86 = vector.extract_strided_slice %85 {offsets = [0, 0], sizes = [16, 64], strides = [1, 1]} : vector<16x144xf32> to vector<16x64xf32>
    %87 = vector.extract_strided_slice %85 {offsets = [0, 64], sizes = [16, 64], strides = [1, 1]} : vector<16x144xf32> to vector<16x64xf32>
    %88 = vector.extract_strided_slice %85 {offsets = [0, 128], sizes = [16, 16], strides = [1, 1]} : vector<16x144xf32> to vector<16x16xf32>
    %c0_49 = arith.constant 0 : index
    %c0_50 = arith.constant 0 : index
    %c0_51 = arith.constant 0 : index
    %89 = vector.load %arg17[%c0_49, %c0_50, %c0_51] : memref<2x1x16xf32, #tpu.memory_space<vmem>>, vector<1x1x16xf32>
    %90 = vector.shape_cast %89 : vector<1x1x16xf32> to vector<1x16xf32>
    %91 = vector.broadcast %90 : vector<1x16xf32> to vector<16x16xf32>
    %92 = arith.mulf %88, %91 : vector<16x16xf32>
    %c0_52 = arith.constant 0 : index
    %c0_53 = arith.constant 0 : index
    %c0_54 = arith.constant 0 : index
    %93 = vector.load %arg18[%c0_52, %c0_53, %c0_54] : memref<2x1x16xf32, #tpu.memory_space<vmem>>, vector<1x1x16xf32>
    %94 = vector.shape_cast %93 : vector<1x1x16xf32> to vector<1x16xf32>
    %95 = vector.broadcast %94 : vector<1x16xf32> to vector<16x16xf32>
    %96 = arith.addf %92, %95 : vector<16x16xf32>
    %c0_55 = arith.constant 0 : index
    %c0_56 = arith.constant 0 : index
    %c0_57 = arith.constant 0 : index
    %97 = vector.load %arg19[%c0_55, %c0_56, %c0_57] : memref<2x1x16xf32, #tpu.memory_space<vmem>>, vector<1x1x16xf32>
    %98 = vector.shape_cast %97 : vector<1x1x16xf32> to vector<1x16xf32>
    %99 = vector.broadcast %98 : vector<1x16xf32> to vector<16x16xf32>
    %100 = arith.mulf %88, %99 : vector<16x16xf32>
    %c0_58 = arith.constant 0 : index
    %c0_59 = arith.constant 0 : index
    %c0_60 = arith.constant 0 : index
    %101 = vector.load %arg20[%c0_58, %c0_59, %c0_60] : memref<2x1x16xf32, #tpu.memory_space<vmem>>, vector<1x1x16xf32>
    %102 = vector.shape_cast %101 : vector<1x1x16xf32> to vector<1x16xf32>
    %103 = vector.broadcast %102 : vector<1x16xf32> to vector<16x16xf32>
    %104 = arith.addf %100, %103 : vector<16x16xf32>
    %105 = arith.truncf %96 : vector<16x16xf32> to vector<16x16xbf16>
    %106 = arith.truncf %104 : vector<16x16xf32> to vector<16x16xbf16>
    %cst_61 = arith.constant dense<0.000000e+00> : vector<16x16xf32>
    %107 = tpu.matmul %105, %106, %cst_61 {dimension_numbers = #tpu.dot_dimension_numbers<[1], [1], [0], [0], [0, 0, 1, 0], [], []>} : vector<16x16xbf16>, vector<16x16xbf16>, vector<16x16xf32> -> vector<16x16xf32>
    %cst_62 = arith.constant 0.000000e+00 : f32
    %108 = vector.broadcast %cst_62 : f32 to vector<16x16xf32>
    %109 = arith.maximumf %107, %108 : vector<16x16xf32>
    %110 = arith.mulf %109, %109 : vector<16x16xf32>
    %111 = arith.truncf %110 : vector<16x16xf32> to vector<16x16xbf16>
    %112 = arith.truncf %87 : vector<16x64xf32> to vector<16x64xbf16>
    %cst_63 = arith.constant dense<0.000000e+00> : vector<16x64xf32>
    %113 = tpu.matmul %111, %112, %cst_63 {dimension_numbers = #tpu.dot_dimension_numbers<[1], [0], [0], [1], [0, 0, 1, 1], [], []>} : vector<16x16xbf16>, vector<16x64xbf16>, vector<16x64xf32> -> vector<16x64xf32>
    %114 = arith.mulf %86, %113 : vector<16x64xf32>
    %c0_64 = arith.constant 0 : index
    %c0_65 = arith.constant 0 : index
    %c0_66 = arith.constant 0 : index
    %115 = vector.load %arg21[%c0_64, %c0_65, %c0_66] : memref<2x64x32xf32, #tpu.memory_space<vmem>>, vector<1x64x32xf32>
    %116 = vector.shape_cast %115 : vector<1x64x32xf32> to vector<64x32xf32>
    %117 = arith.truncf %114 : vector<16x64xf32> to vector<16x64xbf16>
    %118 = arith.truncf %116 : vector<64x32xf32> to vector<64x32xbf16>
    %cst_67 = arith.constant dense<0.000000e+00> : vector<16x32xf32>
    %119 = tpu.matmul %117, %118, %cst_67 {dimension_numbers = #tpu.dot_dimension_numbers<[1], [0], [0], [1], [0, 0, 1, 1], [], []>} : vector<16x64xbf16>, vector<64x32xbf16>, vector<16x32xf32> -> vector<16x32xf32>
    %c0_68 = arith.constant 0 : index
    %c0_69 = arith.constant 0 : index
    %c0_70 = arith.constant 0 : index
    %120 = vector.load %arg22[%c0_68, %c0_69, %c0_70] : memref<2x1x32xf32, #tpu.memory_space<vmem>>, vector<1x1x32xf32>
    %121 = vector.shape_cast %120 : vector<1x1x32xf32> to vector<1x32xf32>
    %122 = vector.broadcast %121 : vector<1x32xf32> to vector<16x32xf32>
    %123 = arith.addf %119, %122 : vector<16x32xf32>
    %124 = arith.addf %123, %8 : vector<16x32xf32>
    %c0_71 = arith.constant 0 : index
    %c0_72 = arith.constant 0 : index
    %c0_73 = arith.constant 0 : index
    %125 = vector.load %arg23[%c0_71, %c0_72, %c0_73] : memref<3x32x128xf32, #tpu.memory_space<vmem>>, vector<1x32x128xf32>
    %126 = vector.shape_cast %125 : vector<1x32x128xf32> to vector<32x128xf32>
    %127 = arith.truncf %124 : vector<16x32xf32> to vector<16x32xbf16>
    %128 = arith.truncf %126 : vector<32x128xf32> to vector<32x128xbf16>
    %cst_74 = arith.constant dense<0.000000e+00> : vector<16x128xf32>
    %129 = tpu.matmul %127, %128, %cst_74 {dimension_numbers = #tpu.dot_dimension_numbers<[1], [0], [0], [1], [0, 0, 1, 1], [], []>} : vector<16x32xbf16>, vector<32x128xbf16>, vector<16x128xf32> -> vector<16x128xf32>
    %c0_75 = arith.constant 0 : index
    %c0_76 = arith.constant 0 : index
    %c0_77 = arith.constant 0 : index
    %130 = vector.load %arg24[%c0_75, %c0_76, %c0_77] : memref<3x1x128xf32, #tpu.memory_space<vmem>>, vector<1x1x128xf32>
    %131 = vector.shape_cast %130 : vector<1x1x128xf32> to vector<1x128xf32>
    %132 = vector.broadcast %131 : vector<1x128xf32> to vector<16x128xf32>
    %133 = arith.addf %129, %132 : vector<16x128xf32>
    %134 = vector.extract_strided_slice %133 {offsets = [0, 96], sizes = [16, 32], strides = [1, 1]} : vector<16x128xf32> to vector<16x32xf32>
    %c0_78 = arith.constant 0 : index
    %c0_79 = arith.constant 0 : index
    %c0_80 = arith.constant 0 : index
    %135 = vector.load %arg25[%c0_78, %c0_79, %c0_80] : memref<3x32x32xf32, #tpu.memory_space<vmem>>, vector<1x32x32xf32>
    %136 = vector.shape_cast %135 : vector<1x32x32xf32> to vector<32x32xf32>
    %137 = arith.truncf %40 : vector<32x32xf32> to vector<32x32xbf16>
    %138 = arith.truncf %136 : vector<32x32xf32> to vector<32x32xbf16>
    %cst_81 = arith.constant dense<0.000000e+00> : vector<32x32xf32>
    %139 = tpu.matmul %137, %138, %cst_81 {dimension_numbers = #tpu.dot_dimension_numbers<[1], [0], [0], [1], [0, 0, 1, 1], [], []>} : vector<32x32xbf16>, vector<32x32xbf16>, vector<32x32xf32> -> vector<32x32xf32>
    %c0_82 = arith.constant 0 : index
    %c0_83 = arith.constant 0 : index
    %c0_84 = arith.constant 0 : index
    %140 = vector.load %arg26[%c0_82, %c0_83, %c0_84] : memref<3x1x32xf32, #tpu.memory_space<vmem>>, vector<1x1x32xf32>
    %141 = vector.shape_cast %140 : vector<1x1x32xf32> to vector<1x32xf32>
    %142 = vector.broadcast %141 : vector<1x32xf32> to vector<32x32xf32>
    %143 = arith.addf %139, %142 : vector<32x32xf32>
    %144 = vector.extract_strided_slice %133 {offsets = [0, 0], sizes = [16, 64], strides = [1, 1]} : vector<16x128xf32> to vector<16x64xf32>
    %145 = vector.extract_strided_slice %133 {offsets = [0, 64], sizes = [16, 32], strides = [1, 1]} : vector<16x128xf32> to vector<16x32xf32>
    %cst_85 = arith.constant 0.000000e+00 : f32
    %146 = vector.broadcast %cst_85 : f32 to vector<16x32xf32>
    %147 = tpu.concatenate %145, %146 in 1 : vector<16x32xf32>, vector<16x32xf32> -> vector<16x64xf32>
    %148 = tpu.concatenate %144, %147 in 0 : vector<16x64xf32>, vector<16x64xf32> -> vector<32x64xf32>
    %149 = arith.truncf %148 : vector<32x64xf32> to vector<32x64xbf16>
    %cst_86 = arith.constant dense<0.000000e+00> : vector<32x64xf32>
    %150 = tpu.matmul %42, %149, %cst_86 {dimension_numbers = #tpu.dot_dimension_numbers<[1], [0], [0], [1], [0, 0, 1, 1], [], []>} : vector<32x32xbf16>, vector<32x64xbf16>, vector<32x64xf32> -> vector<32x64xf32>
    %151 = vector.extract_strided_slice %150 {offsets = [0, 0], sizes = [32, 32], strides = [1, 1]} : vector<32x64xf32> to vector<32x32xf32>
    %152 = arith.addf %151, %143 : vector<32x32xf32>
    %153 = arith.negf %152 : vector<32x32xf32>
    %154 = math.exp %153 : vector<32x32xf32>
    %cst_87 = arith.constant 1.000000e+00 : f32
    %155 = vector.broadcast %cst_87 : f32 to vector<32x32xf32>
    %156 = arith.addf %155, %154 : vector<32x32xf32>
    %157 = arith.divf %155, %156 : vector<32x32xf32>
    %158 = vector.extract_strided_slice %150 {offsets = [0, 32], sizes = [32, 32], strides = [1, 1]} : vector<32x64xf32> to vector<32x32xf32>
    %159 = arith.mulf %158, %157 : vector<32x32xf32>
    %160 = tpu.concatenate %159, %157 in 1 : vector<32x32xf32>, vector<32x32xf32> -> vector<32x64xf32>
    %161 = arith.truncf %160 : vector<32x64xf32> to vector<32x64xbf16>
    %cst_88 = arith.constant dense<0.000000e+00> : vector<16x64xf32>
    %162 = tpu.matmul %44, %161, %cst_88 {dimension_numbers = #tpu.dot_dimension_numbers<[1], [0], [0], [1], [0, 0, 1, 1], [], []>} : vector<16x32xbf16>, vector<32x64xbf16>, vector<16x64xf32> -> vector<16x64xf32>
    %163 = vector.extract_strided_slice %162 {offsets = [0, 0], sizes = [16, 32], strides = [1, 1]} : vector<16x64xf32> to vector<16x32xf32>
    %164 = vector.extract_strided_slice %162 {offsets = [0, 32], sizes = [16, 32], strides = [1, 1]} : vector<16x64xf32> to vector<16x32xf32>
    %cst_89 = arith.constant 9.99999997E-7 : f32
    %165 = vector.broadcast %cst_89 : f32 to vector<16x32xf32>
    %166 = arith.addf %164, %165 : vector<16x32xf32>
    %167 = tpu.reciprocal %166 {approx = true} : vector<16x32xf32> -> vector<16x32xf32>
    %168 = arith.mulf %163, %167 : vector<16x32xf32>
    %169 = arith.addf %134, %168 : vector<16x32xf32>
    %c0_90 = arith.constant 0 : index
    %c0_91 = arith.constant 0 : index
    %c0_92 = arith.constant 0 : index
    %170 = vector.load %arg27[%c0_90, %c0_91, %c0_92] : memref<3x1x32xf32, #tpu.memory_space<vmem>>, vector<1x1x32xf32>
    %171 = vector.shape_cast %170 : vector<1x1x32xf32> to vector<1x32xf32>
    %c0_93 = arith.constant 0 : index
    %c0_94 = arith.constant 0 : index
    %c0_95 = arith.constant 0 : index
    %172 = vector.load %arg28[%c0_93, %c0_94, %c0_95] : memref<3x1x32xf32, #tpu.memory_space<vmem>>, vector<1x1x32xf32>
    %173 = vector.shape_cast %172 : vector<1x1x32xf32> to vector<1x32xf32>
    %cst_96 = arith.constant dense<0.000000e+00> : vector<32xf32>
    %174 = vector.multi_reduction <add>, %169, %cst_96 [0] : vector<16x32xf32> to vector<32xf32>
    %175 = vector.shape_cast %174 : vector<32xf32> to vector<1x32xf32>
    %cst_97 = arith.constant 1.600000e+01 : f32
    %176 = vector.broadcast %cst_97 : f32 to vector<1x32xf32>
    %177 = arith.divf %175, %176 : vector<1x32xf32>
    %178 = vector.broadcast %177 : vector<1x32xf32> to vector<16x32xf32>
    %179 = arith.subf %169, %178 : vector<16x32xf32>
    %180 = arith.mulf %179, %179 : vector<16x32xf32>
    %cst_98 = arith.constant dense<0.000000e+00> : vector<32xf32>
    %181 = vector.multi_reduction <add>, %180, %cst_98 [0] : vector<16x32xf32> to vector<32xf32>
    %182 = vector.shape_cast %181 : vector<32xf32> to vector<1x32xf32>
    %cst_99 = arith.constant 1.600000e+01 : f32
    %183 = vector.broadcast %cst_99 : f32 to vector<1x32xf32>
    %184 = arith.divf %182, %183 : vector<1x32xf32>
    %185 = vector.broadcast %177 : vector<1x32xf32> to vector<16x32xf32>
    %186 = arith.subf %169, %185 : vector<16x32xf32>
    %cst_100 = arith.constant 9.99999974E-6 : f32
    %187 = vector.broadcast %cst_100 : f32 to vector<1x32xf32>
    %188 = arith.addf %184, %187 : vector<1x32xf32>
    %189 = math.rsqrt %188 : vector<1x32xf32>
    %190 = vector.broadcast %189 : vector<1x32xf32> to vector<16x32xf32>
    %191 = arith.mulf %186, %190 : vector<16x32xf32>
    %192 = vector.broadcast %171 : vector<1x32xf32> to vector<16x32xf32>
    %193 = arith.mulf %191, %192 : vector<16x32xf32>
    %194 = vector.broadcast %173 : vector<1x32xf32> to vector<16x32xf32>
    %195 = arith.addf %193, %194 : vector<16x32xf32>
    %196 = arith.negf %195 : vector<16x32xf32>
    %197 = math.exp %196 : vector<16x32xf32>
    %cst_101 = arith.constant 1.000000e+00 : f32
    %198 = vector.broadcast %cst_101 : f32 to vector<16x32xf32>
    %199 = arith.addf %198, %197 : vector<16x32xf32>
    %200 = arith.divf %198, %199 : vector<16x32xf32>
    %201 = arith.mulf %195, %200 : vector<16x32xf32>
    %c0_102 = arith.constant 0 : index
    %c0_103 = arith.constant 0 : index
    %c0_104 = arith.constant 0 : index
    %202 = vector.load %arg29[%c0_102, %c0_103, %c0_104] : memref<3x1x32xf32, #tpu.memory_space<vmem>>, vector<1x1x32xf32>
    %203 = vector.shape_cast %202 : vector<1x1x32xf32> to vector<1x32xf32>
    %c0_105 = arith.constant 0 : index
    %c0_106 = arith.constant 0 : index
    %c0_107 = arith.constant 0 : index
    %204 = vector.load %arg30[%c0_105, %c0_106, %c0_107] : memref<3x1x32xf32, #tpu.memory_space<vmem>>, vector<1x1x32xf32>
    %205 = vector.shape_cast %204 : vector<1x1x32xf32> to vector<1x32xf32>
    %cst_108 = arith.constant dense<0.000000e+00> : vector<32xf32>
    %206 = vector.multi_reduction <add>, %152, %cst_108 [0] : vector<32x32xf32> to vector<32xf32>
    %207 = vector.shape_cast %206 : vector<32xf32> to vector<1x32xf32>
    %cst_109 = arith.constant 3.200000e+01 : f32
    %208 = vector.broadcast %cst_109 : f32 to vector<1x32xf32>
    %209 = arith.divf %207, %208 : vector<1x32xf32>
    %210 = vector.broadcast %209 : vector<1x32xf32> to vector<32x32xf32>
    %211 = arith.subf %152, %210 : vector<32x32xf32>
    %212 = arith.mulf %211, %211 : vector<32x32xf32>
    %cst_110 = arith.constant dense<0.000000e+00> : vector<32xf32>
    %213 = vector.multi_reduction <add>, %212, %cst_110 [0] : vector<32x32xf32> to vector<32xf32>
    %214 = vector.shape_cast %213 : vector<32xf32> to vector<1x32xf32>
    %cst_111 = arith.constant 3.200000e+01 : f32
    %215 = vector.broadcast %cst_111 : f32 to vector<1x32xf32>
    %216 = arith.divf %214, %215 : vector<1x32xf32>
    %217 = vector.broadcast %209 : vector<1x32xf32> to vector<32x32xf32>
    %218 = arith.subf %152, %217 : vector<32x32xf32>
    %cst_112 = arith.constant 9.99999974E-6 : f32
    %219 = vector.broadcast %cst_112 : f32 to vector<1x32xf32>
    %220 = arith.addf %216, %219 : vector<1x32xf32>
    %221 = math.rsqrt %220 : vector<1x32xf32>
    %222 = vector.broadcast %221 : vector<1x32xf32> to vector<32x32xf32>
    %223 = arith.mulf %218, %222 : vector<32x32xf32>
    %224 = vector.broadcast %203 : vector<1x32xf32> to vector<32x32xf32>
    %225 = arith.mulf %223, %224 : vector<32x32xf32>
    %226 = vector.broadcast %205 : vector<1x32xf32> to vector<32x32xf32>
    %227 = arith.addf %225, %226 : vector<32x32xf32>
    %228 = arith.negf %227 : vector<32x32xf32>
    %229 = math.exp %228 : vector<32x32xf32>
    %cst_113 = arith.constant 1.000000e+00 : f32
    %230 = vector.broadcast %cst_113 : f32 to vector<32x32xf32>
    %231 = arith.addf %230, %229 : vector<32x32xf32>
    %232 = arith.divf %230, %231 : vector<32x32xf32>
    %233 = arith.mulf %227, %232 : vector<32x32xf32>
    %234 = arith.addf %124, %201 : vector<16x32xf32>
    %235 = arith.addf %40, %233 : vector<32x32xf32>
    %cst_114 = arith.constant dense<0.000000e+00> : vector<16xf32>
    %236 = vector.multi_reduction <add>, %234, %cst_114 [1] : vector<16x32xf32> to vector<16xf32>
    %237 = vector.shape_cast %236 : vector<16xf32> to vector<16x1xf32>
    %cst_115 = arith.constant 3.200000e+01 : f32
    %238 = vector.broadcast %cst_115 : f32 to vector<16x1xf32>
    %239 = arith.divf %237, %238 : vector<16x1xf32>
    %240 = vector.broadcast %239 : vector<16x1xf32> to vector<16x32xf32>
    %241 = arith.subf %234, %240 : vector<16x32xf32>
    %242 = arith.mulf %241, %241 : vector<16x32xf32>
    %cst_116 = arith.constant dense<0.000000e+00> : vector<16xf32>
    %243 = vector.multi_reduction <add>, %242, %cst_116 [1] : vector<16x32xf32> to vector<16xf32>
    %244 = vector.shape_cast %243 : vector<16xf32> to vector<16x1xf32>
    %cst_117 = arith.constant 3.200000e+01 : f32
    %245 = vector.broadcast %cst_117 : f32 to vector<16x1xf32>
    %246 = arith.divf %244, %245 : vector<16x1xf32>
    %247 = vector.broadcast %239 : vector<16x1xf32> to vector<16x32xf32>
    %248 = arith.subf %234, %247 : vector<16x32xf32>
    %cst_118 = arith.constant 9.99999974E-6 : f32
    %249 = vector.broadcast %cst_118 : f32 to vector<16x1xf32>
    %250 = arith.addf %246, %249 : vector<16x1xf32>
    %251 = math.rsqrt %250 : vector<16x1xf32>
    %252 = vector.broadcast %251 : vector<16x1xf32> to vector<16x32xf32>
    %253 = arith.mulf %248, %252 : vector<16x32xf32>
    %c1 = arith.constant 1 : index
    %c0_119 = arith.constant 0 : index
    %c0_120 = arith.constant 0 : index
    %254 = vector.load %arg13[%c1, %c0_119, %c0_120] : memref<2x1x32xf32, #tpu.memory_space<vmem>>, vector<1x1x32xf32>
    %255 = vector.shape_cast %254 : vector<1x1x32xf32> to vector<1x32xf32>
    %256 = vector.broadcast %255 : vector<1x32xf32> to vector<16x32xf32>
    %257 = arith.mulf %253, %256 : vector<16x32xf32>
    %c1_121 = arith.constant 1 : index
    %c0_122 = arith.constant 0 : index
    %c0_123 = arith.constant 0 : index
    %258 = vector.load %arg14[%c1_121, %c0_122, %c0_123] : memref<2x1x32xf32, #tpu.memory_space<vmem>>, vector<1x1x32xf32>
    %259 = vector.shape_cast %258 : vector<1x1x32xf32> to vector<1x32xf32>
    %260 = vector.broadcast %259 : vector<1x32xf32> to vector<16x32xf32>
    %261 = arith.addf %257, %260 : vector<16x32xf32>
    %c1_124 = arith.constant 1 : index
    %c0_125 = arith.constant 0 : index
    %c0_126 = arith.constant 0 : index
    %262 = vector.load %arg15[%c1_124, %c0_125, %c0_126] : memref<2x32x144xf32, #tpu.memory_space<vmem>>, vector<1x32x144xf32>
    %263 = vector.shape_cast %262 : vector<1x32x144xf32> to vector<32x144xf32>
    %264 = arith.truncf %261 : vector<16x32xf32> to vector<16x32xbf16>
    %265 = arith.truncf %263 : vector<32x144xf32> to vector<32x144xbf16>
    %cst_127 = arith.constant dense<0.000000e+00> : vector<16x144xf32>
    %266 = tpu.matmul %264, %265, %cst_127 {dimension_numbers = #tpu.dot_dimension_numbers<[1], [0], [0], [1], [0, 0, 1, 1], [], []>} : vector<16x32xbf16>, vector<32x144xbf16>, vector<16x144xf32> -> vector<16x144xf32>
    %c1_128 = arith.constant 1 : index
    %c0_129 = arith.constant 0 : index
    %c0_130 = arith.constant 0 : index
    %267 = vector.load %arg16[%c1_128, %c0_129, %c0_130] : memref<2x1x144xf32, #tpu.memory_space<vmem>>, vector<1x1x144xf32>
    %268 = vector.shape_cast %267 : vector<1x1x144xf32> to vector<1x144xf32>
    %269 = vector.broadcast %268 : vector<1x144xf32> to vector<16x144xf32>
    %270 = arith.addf %266, %269 : vector<16x144xf32>
    %271 = arith.negf %270 : vector<16x144xf32>
    %272 = math.exp %271 : vector<16x144xf32>
    %cst_131 = arith.constant 1.000000e+00 : f32
    %273 = vector.broadcast %cst_131 : f32 to vector<16x144xf32>
    %274 = arith.addf %273, %272 : vector<16x144xf32>
    %275 = arith.divf %273, %274 : vector<16x144xf32>
    %276 = arith.mulf %270, %275 : vector<16x144xf32>
    %277 = vector.extract_strided_slice %276 {offsets = [0, 0], sizes = [16, 64], strides = [1, 1]} : vector<16x144xf32> to vector<16x64xf32>
    %278 = vector.extract_strided_slice %276 {offsets = [0, 64], sizes = [16, 64], strides = [1, 1]} : vector<16x144xf32> to vector<16x64xf32>
    %279 = vector.extract_strided_slice %276 {offsets = [0, 128], sizes = [16, 16], strides = [1, 1]} : vector<16x144xf32> to vector<16x16xf32>
    %c1_132 = arith.constant 1 : index
    %c0_133 = arith.constant 0 : index
    %c0_134 = arith.constant 0 : index
    %280 = vector.load %arg17[%c1_132, %c0_133, %c0_134] : memref<2x1x16xf32, #tpu.memory_space<vmem>>, vector<1x1x16xf32>
    %281 = vector.shape_cast %280 : vector<1x1x16xf32> to vector<1x16xf32>
    %282 = vector.broadcast %281 : vector<1x16xf32> to vector<16x16xf32>
    %283 = arith.mulf %279, %282 : vector<16x16xf32>
    %c1_135 = arith.constant 1 : index
    %c0_136 = arith.constant 0 : index
    %c0_137 = arith.constant 0 : index
    %284 = vector.load %arg18[%c1_135, %c0_136, %c0_137] : memref<2x1x16xf32, #tpu.memory_space<vmem>>, vector<1x1x16xf32>
    %285 = vector.shape_cast %284 : vector<1x1x16xf32> to vector<1x16xf32>
    %286 = vector.broadcast %285 : vector<1x16xf32> to vector<16x16xf32>
    %287 = arith.addf %283, %286 : vector<16x16xf32>
    %c1_138 = arith.constant 1 : index
    %c0_139 = arith.constant 0 : index
    %c0_140 = arith.constant 0 : index
    %288 = vector.load %arg19[%c1_138, %c0_139, %c0_140] : memref<2x1x16xf32, #tpu.memory_space<vmem>>, vector<1x1x16xf32>
    %289 = vector.shape_cast %288 : vector<1x1x16xf32> to vector<1x16xf32>
    %290 = vector.broadcast %289 : vector<1x16xf32> to vector<16x16xf32>
    %291 = arith.mulf %279, %290 : vector<16x16xf32>
    %c1_141 = arith.constant 1 : index
    %c0_142 = arith.constant 0 : index
    %c0_143 = arith.constant 0 : index
    %292 = vector.load %arg20[%c1_141, %c0_142, %c0_143] : memref<2x1x16xf32, #tpu.memory_space<vmem>>, vector<1x1x16xf32>
    %293 = vector.shape_cast %292 : vector<1x1x16xf32> to vector<1x16xf32>
    %294 = vector.broadcast %293 : vector<1x16xf32> to vector<16x16xf32>
    %295 = arith.addf %291, %294 : vector<16x16xf32>
    %296 = arith.truncf %287 : vector<16x16xf32> to vector<16x16xbf16>
    %297 = arith.truncf %295 : vector<16x16xf32> to vector<16x16xbf16>
    %cst_144 = arith.constant dense<0.000000e+00> : vector<16x16xf32>
    %298 = tpu.matmul %296, %297, %cst_144 {dimension_numbers = #tpu.dot_dimension_numbers<[1], [1], [0], [0], [0, 0, 1, 0], [], []>} : vector<16x16xbf16>, vector<16x16xbf16>, vector<16x16xf32> -> vector<16x16xf32>
    %cst_145 = arith.constant 0.000000e+00 : f32
    %299 = vector.broadcast %cst_145 : f32 to vector<16x16xf32>
    %300 = arith.maximumf %298, %299 : vector<16x16xf32>
    %301 = arith.mulf %300, %300 : vector<16x16xf32>
    %302 = arith.truncf %301 : vector<16x16xf32> to vector<16x16xbf16>
    %303 = arith.truncf %278 : vector<16x64xf32> to vector<16x64xbf16>
    %cst_146 = arith.constant dense<0.000000e+00> : vector<16x64xf32>
    %304 = tpu.matmul %302, %303, %cst_146 {dimension_numbers = #tpu.dot_dimension_numbers<[1], [0], [0], [1], [0, 0, 1, 1], [], []>} : vector<16x16xbf16>, vector<16x64xbf16>, vector<16x64xf32> -> vector<16x64xf32>
    %305 = arith.mulf %277, %304 : vector<16x64xf32>
    %c1_147 = arith.constant 1 : index
    %c0_148 = arith.constant 0 : index
    %c0_149 = arith.constant 0 : index
    %306 = vector.load %arg21[%c1_147, %c0_148, %c0_149] : memref<2x64x32xf32, #tpu.memory_space<vmem>>, vector<1x64x32xf32>
    %307 = vector.shape_cast %306 : vector<1x64x32xf32> to vector<64x32xf32>
    %308 = arith.truncf %305 : vector<16x64xf32> to vector<16x64xbf16>
    %309 = arith.truncf %307 : vector<64x32xf32> to vector<64x32xbf16>
    %cst_150 = arith.constant dense<0.000000e+00> : vector<16x32xf32>
    %310 = tpu.matmul %308, %309, %cst_150 {dimension_numbers = #tpu.dot_dimension_numbers<[1], [0], [0], [1], [0, 0, 1, 1], [], []>} : vector<16x64xbf16>, vector<64x32xbf16>, vector<16x32xf32> -> vector<16x32xf32>
    %c1_151 = arith.constant 1 : index
    %c0_152 = arith.constant 0 : index
    %c0_153 = arith.constant 0 : index
    %311 = vector.load %arg22[%c1_151, %c0_152, %c0_153] : memref<2x1x32xf32, #tpu.memory_space<vmem>>, vector<1x1x32xf32>
    %312 = vector.shape_cast %311 : vector<1x1x32xf32> to vector<1x32xf32>
    %313 = vector.broadcast %312 : vector<1x32xf32> to vector<16x32xf32>
    %314 = arith.addf %310, %313 : vector<16x32xf32>
    %315 = arith.addf %314, %234 : vector<16x32xf32>
    %c1_154 = arith.constant 1 : index
    %c0_155 = arith.constant 0 : index
    %c0_156 = arith.constant 0 : index
    %316 = vector.load %arg23[%c1_154, %c0_155, %c0_156] : memref<3x32x128xf32, #tpu.memory_space<vmem>>, vector<1x32x128xf32>
    %317 = vector.shape_cast %316 : vector<1x32x128xf32> to vector<32x128xf32>
    %318 = arith.truncf %315 : vector<16x32xf32> to vector<16x32xbf16>
    %319 = arith.truncf %317 : vector<32x128xf32> to vector<32x128xbf16>
    %cst_157 = arith.constant dense<0.000000e+00> : vector<16x128xf32>
    %320 = tpu.matmul %318, %319, %cst_157 {dimension_numbers = #tpu.dot_dimension_numbers<[1], [0], [0], [1], [0, 0, 1, 1], [], []>} : vector<16x32xbf16>, vector<32x128xbf16>, vector<16x128xf32> -> vector<16x128xf32>
    %c1_158 = arith.constant 1 : index
    %c0_159 = arith.constant 0 : index
    %c0_160 = arith.constant 0 : index
    %321 = vector.load %arg24[%c1_158, %c0_159, %c0_160] : memref<3x1x128xf32, #tpu.memory_space<vmem>>, vector<1x1x128xf32>
    %322 = vector.shape_cast %321 : vector<1x1x128xf32> to vector<1x128xf32>
    %323 = vector.broadcast %322 : vector<1x128xf32> to vector<16x128xf32>
    %324 = arith.addf %320, %323 : vector<16x128xf32>
    %325 = vector.extract_strided_slice %324 {offsets = [0, 96], sizes = [16, 32], strides = [1, 1]} : vector<16x128xf32> to vector<16x32xf32>
    %c1_161 = arith.constant 1 : index
    %c0_162 = arith.constant 0 : index
    %c0_163 = arith.constant 0 : index
    %326 = vector.load %arg25[%c1_161, %c0_162, %c0_163] : memref<3x32x32xf32, #tpu.memory_space<vmem>>, vector<1x32x32xf32>
    %327 = vector.shape_cast %326 : vector<1x32x32xf32> to vector<32x32xf32>
    %328 = arith.truncf %235 : vector<32x32xf32> to vector<32x32xbf16>
    %329 = arith.truncf %327 : vector<32x32xf32> to vector<32x32xbf16>
    %cst_164 = arith.constant dense<0.000000e+00> : vector<32x32xf32>
    %330 = tpu.matmul %328, %329, %cst_164 {dimension_numbers = #tpu.dot_dimension_numbers<[1], [0], [0], [1], [0, 0, 1, 1], [], []>} : vector<32x32xbf16>, vector<32x32xbf16>, vector<32x32xf32> -> vector<32x32xf32>
    %c1_165 = arith.constant 1 : index
    %c0_166 = arith.constant 0 : index
    %c0_167 = arith.constant 0 : index
    %331 = vector.load %arg26[%c1_165, %c0_166, %c0_167] : memref<3x1x32xf32, #tpu.memory_space<vmem>>, vector<1x1x32xf32>
    %332 = vector.shape_cast %331 : vector<1x1x32xf32> to vector<1x32xf32>
    %333 = vector.broadcast %332 : vector<1x32xf32> to vector<32x32xf32>
    %334 = arith.addf %330, %333 : vector<32x32xf32>
    %335 = vector.extract_strided_slice %324 {offsets = [0, 0], sizes = [16, 64], strides = [1, 1]} : vector<16x128xf32> to vector<16x64xf32>
    %336 = vector.extract_strided_slice %324 {offsets = [0, 64], sizes = [16, 32], strides = [1, 1]} : vector<16x128xf32> to vector<16x32xf32>
    %cst_168 = arith.constant 0.000000e+00 : f32
    %337 = vector.broadcast %cst_168 : f32 to vector<16x32xf32>
    %338 = tpu.concatenate %336, %337 in 1 : vector<16x32xf32>, vector<16x32xf32> -> vector<16x64xf32>
    %339 = tpu.concatenate %335, %338 in 0 : vector<16x64xf32>, vector<16x64xf32> -> vector<32x64xf32>
    %340 = arith.truncf %339 : vector<32x64xf32> to vector<32x64xbf16>
    %cst_169 = arith.constant dense<0.000000e+00> : vector<32x64xf32>
    %341 = tpu.matmul %42, %340, %cst_169 {dimension_numbers = #tpu.dot_dimension_numbers<[1], [0], [0], [1], [0, 0, 1, 1], [], []>} : vector<32x32xbf16>, vector<32x64xbf16>, vector<32x64xf32> -> vector<32x64xf32>
    %342 = vector.extract_strided_slice %341 {offsets = [0, 0], sizes = [32, 32], strides = [1, 1]} : vector<32x64xf32> to vector<32x32xf32>
    %343 = arith.addf %342, %334 : vector<32x32xf32>
    %344 = arith.negf %343 : vector<32x32xf32>
    %345 = math.exp %344 : vector<32x32xf32>
    %cst_170 = arith.constant 1.000000e+00 : f32
    %346 = vector.broadcast %cst_170 : f32 to vector<32x32xf32>
    %347 = arith.addf %346, %345 : vector<32x32xf32>
    %348 = arith.divf %346, %347 : vector<32x32xf32>
    %349 = vector.extract_strided_slice %341 {offsets = [0, 32], sizes = [32, 32], strides = [1, 1]} : vector<32x64xf32> to vector<32x32xf32>
    %350 = arith.mulf %349, %348 : vector<32x32xf32>
    %351 = tpu.concatenate %350, %348 in 1 : vector<32x32xf32>, vector<32x32xf32> -> vector<32x64xf32>
    %352 = arith.truncf %351 : vector<32x64xf32> to vector<32x64xbf16>
    %cst_171 = arith.constant dense<0.000000e+00> : vector<16x64xf32>
    %353 = tpu.matmul %44, %352, %cst_171 {dimension_numbers = #tpu.dot_dimension_numbers<[1], [0], [0], [1], [0, 0, 1, 1], [], []>} : vector<16x32xbf16>, vector<32x64xbf16>, vector<16x64xf32> -> vector<16x64xf32>
    %354 = vector.extract_strided_slice %353 {offsets = [0, 0], sizes = [16, 32], strides = [1, 1]} : vector<16x64xf32> to vector<16x32xf32>
    %355 = vector.extract_strided_slice %353 {offsets = [0, 32], sizes = [16, 32], strides = [1, 1]} : vector<16x64xf32> to vector<16x32xf32>
    %cst_172 = arith.constant 9.99999997E-7 : f32
    %356 = vector.broadcast %cst_172 : f32 to vector<16x32xf32>
    %357 = arith.addf %355, %356 : vector<16x32xf32>
    %358 = tpu.reciprocal %357 {approx = true} : vector<16x32xf32> -> vector<16x32xf32>
    %359 = arith.mulf %354, %358 : vector<16x32xf32>
    %360 = arith.addf %325, %359 : vector<16x32xf32>
    %c1_173 = arith.constant 1 : index
    %c0_174 = arith.constant 0 : index
    %c0_175 = arith.constant 0 : index
    %361 = vector.load %arg27[%c1_173, %c0_174, %c0_175] : memref<3x1x32xf32, #tpu.memory_space<vmem>>, vector<1x1x32xf32>
    %362 = vector.shape_cast %361 : vector<1x1x32xf32> to vector<1x32xf32>
    %c1_176 = arith.constant 1 : index
    %c0_177 = arith.constant 0 : index
    %c0_178 = arith.constant 0 : index
    %363 = vector.load %arg28[%c1_176, %c0_177, %c0_178] : memref<3x1x32xf32, #tpu.memory_space<vmem>>, vector<1x1x32xf32>
    %364 = vector.shape_cast %363 : vector<1x1x32xf32> to vector<1x32xf32>
    %cst_179 = arith.constant dense<0.000000e+00> : vector<32xf32>
    %365 = vector.multi_reduction <add>, %360, %cst_179 [0] : vector<16x32xf32> to vector<32xf32>
    %366 = vector.shape_cast %365 : vector<32xf32> to vector<1x32xf32>
    %cst_180 = arith.constant 1.600000e+01 : f32
    %367 = vector.broadcast %cst_180 : f32 to vector<1x32xf32>
    %368 = arith.divf %366, %367 : vector<1x32xf32>
    %369 = vector.broadcast %368 : vector<1x32xf32> to vector<16x32xf32>
    %370 = arith.subf %360, %369 : vector<16x32xf32>
    %371 = arith.mulf %370, %370 : vector<16x32xf32>
    %cst_181 = arith.constant dense<0.000000e+00> : vector<32xf32>
    %372 = vector.multi_reduction <add>, %371, %cst_181 [0] : vector<16x32xf32> to vector<32xf32>
    %373 = vector.shape_cast %372 : vector<32xf32> to vector<1x32xf32>
    %cst_182 = arith.constant 1.600000e+01 : f32
    %374 = vector.broadcast %cst_182 : f32 to vector<1x32xf32>
    %375 = arith.divf %373, %374 : vector<1x32xf32>
    %376 = vector.broadcast %368 : vector<1x32xf32> to vector<16x32xf32>
    %377 = arith.subf %360, %376 : vector<16x32xf32>
    %cst_183 = arith.constant 9.99999974E-6 : f32
    %378 = vector.broadcast %cst_183 : f32 to vector<1x32xf32>
    %379 = arith.addf %375, %378 : vector<1x32xf32>
    %380 = math.rsqrt %379 : vector<1x32xf32>
    %381 = vector.broadcast %380 : vector<1x32xf32> to vector<16x32xf32>
    %382 = arith.mulf %377, %381 : vector<16x32xf32>
    %383 = vector.broadcast %362 : vector<1x32xf32> to vector<16x32xf32>
    %384 = arith.mulf %382, %383 : vector<16x32xf32>
    %385 = vector.broadcast %364 : vector<1x32xf32> to vector<16x32xf32>
    %386 = arith.addf %384, %385 : vector<16x32xf32>
    %387 = arith.negf %386 : vector<16x32xf32>
    %388 = math.exp %387 : vector<16x32xf32>
    %cst_184 = arith.constant 1.000000e+00 : f32
    %389 = vector.broadcast %cst_184 : f32 to vector<16x32xf32>
    %390 = arith.addf %389, %388 : vector<16x32xf32>
    %391 = arith.divf %389, %390 : vector<16x32xf32>
    %392 = arith.mulf %386, %391 : vector<16x32xf32>
    %c1_185 = arith.constant 1 : index
    %c0_186 = arith.constant 0 : index
    %c0_187 = arith.constant 0 : index
    %393 = vector.load %arg29[%c1_185, %c0_186, %c0_187] : memref<3x1x32xf32, #tpu.memory_space<vmem>>, vector<1x1x32xf32>
    %394 = vector.shape_cast %393 : vector<1x1x32xf32> to vector<1x32xf32>
    %c1_188 = arith.constant 1 : index
    %c0_189 = arith.constant 0 : index
    %c0_190 = arith.constant 0 : index
    %395 = vector.load %arg30[%c1_188, %c0_189, %c0_190] : memref<3x1x32xf32, #tpu.memory_space<vmem>>, vector<1x1x32xf32>
    %396 = vector.shape_cast %395 : vector<1x1x32xf32> to vector<1x32xf32>
    %cst_191 = arith.constant dense<0.000000e+00> : vector<32xf32>
    %397 = vector.multi_reduction <add>, %343, %cst_191 [0] : vector<32x32xf32> to vector<32xf32>
    %398 = vector.shape_cast %397 : vector<32xf32> to vector<1x32xf32>
    %cst_192 = arith.constant 3.200000e+01 : f32
    %399 = vector.broadcast %cst_192 : f32 to vector<1x32xf32>
    %400 = arith.divf %398, %399 : vector<1x32xf32>
    %401 = vector.broadcast %400 : vector<1x32xf32> to vector<32x32xf32>
    %402 = arith.subf %343, %401 : vector<32x32xf32>
    %403 = arith.mulf %402, %402 : vector<32x32xf32>
    %cst_193 = arith.constant dense<0.000000e+00> : vector<32xf32>
    %404 = vector.multi_reduction <add>, %403, %cst_193 [0] : vector<32x32xf32> to vector<32xf32>
    %405 = vector.shape_cast %404 : vector<32xf32> to vector<1x32xf32>
    %cst_194 = arith.constant 3.200000e+01 : f32
    %406 = vector.broadcast %cst_194 : f32 to vector<1x32xf32>
    %407 = arith.divf %405, %406 : vector<1x32xf32>
    %408 = vector.broadcast %400 : vector<1x32xf32> to vector<32x32xf32>
    %409 = arith.subf %343, %408 : vector<32x32xf32>
    %cst_195 = arith.constant 9.99999974E-6 : f32
    %410 = vector.broadcast %cst_195 : f32 to vector<1x32xf32>
    %411 = arith.addf %407, %410 : vector<1x32xf32>
    %412 = math.rsqrt %411 : vector<1x32xf32>
    %413 = vector.broadcast %412 : vector<1x32xf32> to vector<32x32xf32>
    %414 = arith.mulf %409, %413 : vector<32x32xf32>
    %415 = vector.broadcast %394 : vector<1x32xf32> to vector<32x32xf32>
    %416 = arith.mulf %414, %415 : vector<32x32xf32>
    %417 = vector.broadcast %396 : vector<1x32xf32> to vector<32x32xf32>
    %418 = arith.addf %416, %417 : vector<32x32xf32>
    %419 = arith.negf %418 : vector<32x32xf32>
    %420 = math.exp %419 : vector<32x32xf32>
    %cst_196 = arith.constant 1.000000e+00 : f32
    %421 = vector.broadcast %cst_196 : f32 to vector<32x32xf32>
    %422 = arith.addf %421, %420 : vector<32x32xf32>
    %423 = arith.divf %421, %422 : vector<32x32xf32>
    %424 = arith.mulf %418, %423 : vector<32x32xf32>
    %425 = arith.addf %315, %392 : vector<16x32xf32>
    %426 = arith.addf %235, %424 : vector<32x32xf32>
    %c2 = arith.constant 2 : index
    %c0_197 = arith.constant 0 : index
    %c0_198 = arith.constant 0 : index
    %427 = vector.load %arg23[%c2, %c0_197, %c0_198] : memref<3x32x128xf32, #tpu.memory_space<vmem>>, vector<1x32x128xf32>
    %428 = vector.shape_cast %427 : vector<1x32x128xf32> to vector<32x128xf32>
    %429 = arith.truncf %425 : vector<16x32xf32> to vector<16x32xbf16>
    %430 = arith.truncf %428 : vector<32x128xf32> to vector<32x128xbf16>
    %cst_199 = arith.constant dense<0.000000e+00> : vector<16x128xf32>
    %431 = tpu.matmul %429, %430, %cst_199 {dimension_numbers = #tpu.dot_dimension_numbers<[1], [0], [0], [1], [0, 0, 1, 1], [], []>} : vector<16x32xbf16>, vector<32x128xbf16>, vector<16x128xf32> -> vector<16x128xf32>
    %c2_200 = arith.constant 2 : index
    %c0_201 = arith.constant 0 : index
    %c0_202 = arith.constant 0 : index
    %432 = vector.load %arg24[%c2_200, %c0_201, %c0_202] : memref<3x1x128xf32, #tpu.memory_space<vmem>>, vector<1x1x128xf32>
    %433 = vector.shape_cast %432 : vector<1x1x128xf32> to vector<1x128xf32>
    %434 = vector.broadcast %433 : vector<1x128xf32> to vector<16x128xf32>
    %435 = arith.addf %431, %434 : vector<16x128xf32>
    %436 = vector.extract_strided_slice %435 {offsets = [0, 96], sizes = [16, 32], strides = [1, 1]} : vector<16x128xf32> to vector<16x32xf32>
    %c2_203 = arith.constant 2 : index
    %c0_204 = arith.constant 0 : index
    %c0_205 = arith.constant 0 : index
    %437 = vector.load %arg25[%c2_203, %c0_204, %c0_205] : memref<3x32x32xf32, #tpu.memory_space<vmem>>, vector<1x32x32xf32>
    %438 = vector.shape_cast %437 : vector<1x32x32xf32> to vector<32x32xf32>
    %439 = arith.truncf %426 : vector<32x32xf32> to vector<32x32xbf16>
    %440 = arith.truncf %438 : vector<32x32xf32> to vector<32x32xbf16>
    %cst_206 = arith.constant dense<0.000000e+00> : vector<32x32xf32>
    %441 = tpu.matmul %439, %440, %cst_206 {dimension_numbers = #tpu.dot_dimension_numbers<[1], [0], [0], [1], [0, 0, 1, 1], [], []>} : vector<32x32xbf16>, vector<32x32xbf16>, vector<32x32xf32> -> vector<32x32xf32>
    %c2_207 = arith.constant 2 : index
    %c0_208 = arith.constant 0 : index
    %c0_209 = arith.constant 0 : index
    %442 = vector.load %arg26[%c2_207, %c0_208, %c0_209] : memref<3x1x32xf32, #tpu.memory_space<vmem>>, vector<1x1x32xf32>
    %443 = vector.shape_cast %442 : vector<1x1x32xf32> to vector<1x32xf32>
    %444 = vector.broadcast %443 : vector<1x32xf32> to vector<32x32xf32>
    %445 = arith.addf %441, %444 : vector<32x32xf32>
    %446 = vector.extract_strided_slice %435 {offsets = [0, 0], sizes = [16, 64], strides = [1, 1]} : vector<16x128xf32> to vector<16x64xf32>
    %447 = vector.extract_strided_slice %435 {offsets = [0, 64], sizes = [16, 32], strides = [1, 1]} : vector<16x128xf32> to vector<16x32xf32>
    %cst_210 = arith.constant 0.000000e+00 : f32
    %448 = vector.broadcast %cst_210 : f32 to vector<16x32xf32>
    %449 = tpu.concatenate %447, %448 in 1 : vector<16x32xf32>, vector<16x32xf32> -> vector<16x64xf32>
    %450 = tpu.concatenate %446, %449 in 0 : vector<16x64xf32>, vector<16x64xf32> -> vector<32x64xf32>
    %451 = arith.truncf %450 : vector<32x64xf32> to vector<32x64xbf16>
    %cst_211 = arith.constant dense<0.000000e+00> : vector<32x64xf32>
    %452 = tpu.matmul %42, %451, %cst_211 {dimension_numbers = #tpu.dot_dimension_numbers<[1], [0], [0], [1], [0, 0, 1, 1], [], []>} : vector<32x32xbf16>, vector<32x64xbf16>, vector<32x64xf32> -> vector<32x64xf32>
    %453 = vector.extract_strided_slice %452 {offsets = [0, 0], sizes = [32, 32], strides = [1, 1]} : vector<32x64xf32> to vector<32x32xf32>
    %454 = arith.addf %453, %445 : vector<32x32xf32>
    %455 = arith.negf %454 : vector<32x32xf32>
    %456 = math.exp %455 : vector<32x32xf32>
    %cst_212 = arith.constant 1.000000e+00 : f32
    %457 = vector.broadcast %cst_212 : f32 to vector<32x32xf32>
    %458 = arith.addf %457, %456 : vector<32x32xf32>
    %459 = arith.divf %457, %458 : vector<32x32xf32>
    %460 = vector.extract_strided_slice %452 {offsets = [0, 32], sizes = [32, 32], strides = [1, 1]} : vector<32x64xf32> to vector<32x32xf32>
    %461 = arith.mulf %460, %459 : vector<32x32xf32>
    %462 = tpu.concatenate %461, %459 in 1 : vector<32x32xf32>, vector<32x32xf32> -> vector<32x64xf32>
    %463 = arith.truncf %462 : vector<32x64xf32> to vector<32x64xbf16>
    %cst_213 = arith.constant dense<0.000000e+00> : vector<16x64xf32>
    %464 = tpu.matmul %44, %463, %cst_213 {dimension_numbers = #tpu.dot_dimension_numbers<[1], [0], [0], [1], [0, 0, 1, 1], [], []>} : vector<16x32xbf16>, vector<32x64xbf16>, vector<16x64xf32> -> vector<16x64xf32>
    %465 = vector.extract_strided_slice %464 {offsets = [0, 0], sizes = [16, 32], strides = [1, 1]} : vector<16x64xf32> to vector<16x32xf32>
    %466 = vector.extract_strided_slice %464 {offsets = [0, 32], sizes = [16, 32], strides = [1, 1]} : vector<16x64xf32> to vector<16x32xf32>
    %cst_214 = arith.constant 9.99999997E-7 : f32
    %467 = vector.broadcast %cst_214 : f32 to vector<16x32xf32>
    %468 = arith.addf %466, %467 : vector<16x32xf32>
    %469 = tpu.reciprocal %468 {approx = true} : vector<16x32xf32> -> vector<16x32xf32>
    %470 = arith.mulf %465, %469 : vector<16x32xf32>
    %471 = arith.addf %436, %470 : vector<16x32xf32>
    %c2_215 = arith.constant 2 : index
    %c0_216 = arith.constant 0 : index
    %c0_217 = arith.constant 0 : index
    %472 = vector.load %arg27[%c2_215, %c0_216, %c0_217] : memref<3x1x32xf32, #tpu.memory_space<vmem>>, vector<1x1x32xf32>
    %473 = vector.shape_cast %472 : vector<1x1x32xf32> to vector<1x32xf32>
    %c2_218 = arith.constant 2 : index
    %c0_219 = arith.constant 0 : index
    %c0_220 = arith.constant 0 : index
    %474 = vector.load %arg28[%c2_218, %c0_219, %c0_220] : memref<3x1x32xf32, #tpu.memory_space<vmem>>, vector<1x1x32xf32>
    %475 = vector.shape_cast %474 : vector<1x1x32xf32> to vector<1x32xf32>
    %cst_221 = arith.constant dense<0.000000e+00> : vector<32xf32>
    %476 = vector.multi_reduction <add>, %471, %cst_221 [0] : vector<16x32xf32> to vector<32xf32>
    %477 = vector.shape_cast %476 : vector<32xf32> to vector<1x32xf32>
    %cst_222 = arith.constant 1.600000e+01 : f32
    %478 = vector.broadcast %cst_222 : f32 to vector<1x32xf32>
    %479 = arith.divf %477, %478 : vector<1x32xf32>
    %480 = vector.broadcast %479 : vector<1x32xf32> to vector<16x32xf32>
    %481 = arith.subf %471, %480 : vector<16x32xf32>
    %482 = arith.mulf %481, %481 : vector<16x32xf32>
    %cst_223 = arith.constant dense<0.000000e+00> : vector<32xf32>
    %483 = vector.multi_reduction <add>, %482, %cst_223 [0] : vector<16x32xf32> to vector<32xf32>
    %484 = vector.shape_cast %483 : vector<32xf32> to vector<1x32xf32>
    %cst_224 = arith.constant 1.600000e+01 : f32
    %485 = vector.broadcast %cst_224 : f32 to vector<1x32xf32>
    %486 = arith.divf %484, %485 : vector<1x32xf32>
    %487 = vector.broadcast %479 : vector<1x32xf32> to vector<16x32xf32>
    %488 = arith.subf %471, %487 : vector<16x32xf32>
    %cst_225 = arith.constant 9.99999974E-6 : f32
    %489 = vector.broadcast %cst_225 : f32 to vector<1x32xf32>
    %490 = arith.addf %486, %489 : vector<1x32xf32>
    %491 = math.rsqrt %490 : vector<1x32xf32>
    %492 = vector.broadcast %491 : vector<1x32xf32> to vector<16x32xf32>
    %493 = arith.mulf %488, %492 : vector<16x32xf32>
    %494 = vector.broadcast %473 : vector<1x32xf32> to vector<16x32xf32>
    %495 = arith.mulf %493, %494 : vector<16x32xf32>
    %496 = vector.broadcast %475 : vector<1x32xf32> to vector<16x32xf32>
    %497 = arith.addf %495, %496 : vector<16x32xf32>
    %498 = arith.negf %497 : vector<16x32xf32>
    %499 = math.exp %498 : vector<16x32xf32>
    %cst_226 = arith.constant 1.000000e+00 : f32
    %500 = vector.broadcast %cst_226 : f32 to vector<16x32xf32>
    %501 = arith.addf %500, %499 : vector<16x32xf32>
    %502 = arith.divf %500, %501 : vector<16x32xf32>
    %503 = arith.mulf %497, %502 : vector<16x32xf32>
    %504 = arith.addf %425, %503 : vector<16x32xf32>
    %c0_227 = arith.constant 0 : index
    %c0_228 = arith.constant 0 : index
    %c0_229 = arith.constant 0 : index
    %505 = vector.load %arg5[%c0_227, %c0_228, %c0_229] : memref<1x8x16xbf16, #tpu.memory_space<vmem>>, vector<1x8x16xbf16>
    %506 = vector.shape_cast %505 : vector<1x8x16xbf16> to vector<8x16xbf16>
    %507 = arith.truncf %504 : vector<16x32xf32> to vector<16x32xbf16>
    %cst_230 = arith.constant dense<0.000000e+00> : vector<8x32xf32>
    %508 = tpu.matmul %506, %507, %cst_230 {dimension_numbers = #tpu.dot_dimension_numbers<[1], [0], [0], [1], [0, 0, 1, 1], [], []>} : vector<8x16xbf16>, vector<16x32xbf16>, vector<8x32xf32> -> vector<8x32xf32>
    %c0_231 = arith.constant 0 : index
    %c0_232 = arith.constant 0 : index
    %509 = vector.load %arg31[%c0_231, %c0_232] : memref<32x32xf32, #tpu.memory_space<vmem>>, vector<32x32xf32>
    %510 = arith.truncf %508 : vector<8x32xf32> to vector<8x32xbf16>
    %511 = arith.truncf %509 : vector<32x32xf32> to vector<32x32xbf16>
    %cst_233 = arith.constant dense<0.000000e+00> : vector<8x32xf32>
    %512 = tpu.matmul %510, %511, %cst_233 {dimension_numbers = #tpu.dot_dimension_numbers<[1], [0], [0], [1], [0, 0, 1, 1], [], []>} : vector<8x32xbf16>, vector<32x32xbf16>, vector<8x32xf32> -> vector<8x32xf32>
    %c0_234 = arith.constant 0 : index
    %c0_235 = arith.constant 0 : index
    %513 = vector.load %arg32[%c0_234, %c0_235] : memref<1x32xf32, #tpu.memory_space<vmem>>, vector<1x32xf32>
    %514 = vector.broadcast %513 : vector<1x32xf32> to vector<8x32xf32>
    %515 = arith.addf %512, %514 : vector<8x32xf32>
    %516 = arith.negf %515 : vector<8x32xf32>
    %517 = math.exp %516 : vector<8x32xf32>
    %cst_236 = arith.constant 1.000000e+00 : f32
    %518 = vector.broadcast %cst_236 : f32 to vector<8x32xf32>
    %519 = arith.addf %518, %517 : vector<8x32xf32>
    %520 = arith.divf %518, %519 : vector<8x32xf32>
    %521 = arith.mulf %515, %520 : vector<8x32xf32>
    %c0_237 = arith.constant 0 : index
    %c0_238 = arith.constant 0 : index
    %522 = vector.load %arg33[%c0_237, %c0_238] : memref<32x128xf32, #tpu.memory_space<vmem>>, vector<32x128xf32>
    %523 = arith.truncf %521 : vector<8x32xf32> to vector<8x32xbf16>
    %524 = arith.truncf %522 : vector<32x128xf32> to vector<32x128xbf16>
    %cst_239 = arith.constant dense<0.000000e+00> : vector<8x128xf32>
    %525 = tpu.matmul %523, %524, %cst_239 {dimension_numbers = #tpu.dot_dimension_numbers<[1], [0], [0], [1], [0, 0, 1, 1], [], []>} : vector<8x32xbf16>, vector<32x128xbf16>, vector<8x128xf32> -> vector<8x128xf32>
    %c0_240 = arith.constant 0 : index
    %c0_241 = arith.constant 0 : index
    %526 = vector.load %arg34[%c0_240, %c0_241] : memref<1x128xf32, #tpu.memory_space<vmem>>, vector<1x128xf32>
    %527 = vector.broadcast %526 : vector<1x128xf32> to vector<8x128xf32>
    %528 = arith.addf %525, %527 : vector<8x128xf32>
    %c0_242 = arith.constant 0 : index
    %c0_243 = arith.constant 0 : index
    %c0_244 = arith.constant 0 : index
    %529 = vector.load %arg35[%c0_242, %c0_243, %c0_244] : memref<1x8x128xf32, #tpu.memory_space<vmem>>, vector<1x8x128xf32>
    %530 = vector.shape_cast %529 : vector<1x8x128xf32> to vector<8x128xf32>
    %531 = vector.shape_cast %528 : vector<8x128xf32> to vector<1x8x128xf32>
    tpu.vector_store %arg35[%c0_242, %c0_243, %c0_244], %531 {strides = array<i32>} : memref<1x8x128xf32, #tpu.memory_space<vmem>>, vector<1x8x128xf32>,
    return
  }
  func.func @transform_0(%arg0: i32) -> (i32, i32, i32) {
    %c0_i32 = arith.constant 0 : i32
    %c0_i32_0 = arith.constant 0 : i32
    %c0_i32_1 = arith.constant 0 : i32
    return %arg0, %c0_i32, %c0_i32_0 : i32, i32, i32
  }
  func.func @transform_1(%arg0: i32) -> (i32, i32, i32) {
    %c0_i32 = arith.constant 0 : i32
    %c0_i32_0 = arith.constant 0 : i32
    %c0_i32_1 = arith.constant 0 : i32
    return %arg0, %c0_i32, %c0_i32_0 : i32, i32, i32
  }
  func.func @transform_2(%arg0: i32) -> (i32, i32, i32) {
    %c0_i32 = arith.constant 0 : i32
    %c0_i32_0 = arith.constant 0 : i32
    %c0_i32_1 = arith.constant 0 : i32
    return %arg0, %c0_i32, %c0_i32_0 : i32, i32, i32
  }
  func.func @transform_3(%arg0: i32) -> (i32, i32, i32) {
    %c0_i32 = arith.constant 0 : i32
    %c0_i32_0 = arith.constant 0 : i32
    %c0_i32_1 = arith.constant 0 : i32
    return %arg0, %c0_i32, %c0_i32_0 : i32, i32, i32
  }
  func.func @transform_4(%arg0: i32) -> (i32, i32, i32) {
    %c0_i32 = arith.constant 0 : i32
    %c0_i32_0 = arith.constant 0 : i32
    %c0_i32_1 = arith.constant 0 : i32
    return %arg0, %c0_i32, %c0_i32_0 : i32, i32, i32
  }
  func.func @transform_5(%arg0: i32) -> (i32, i32) {
    %c0_i32 = arith.constant 0 : i32
    %c0_i32_0 = arith.constant 0 : i32
    %c0_i32_1 = arith.constant 0 : i32
    return %c0_i32, %c0_i32_0 : i32, i32
  }
  func.func @transform_6(%arg0: i32) -> (i32, i32) {
    %c0_i32 = arith.constant 0 : i32
    %c0_i32_0 = arith.constant 0 : i32
    %c0_i32_1 = arith.constant 0 : i32
    return %c0_i32, %c0_i32_0 : i32, i32
  }
  func.func @transform_7(%arg0: i32) -> (i32, i32) {
    %c0_i32 = arith.constant 0 : i32
    %c0_i32_0 = arith.constant 0 : i32
    %c0_i32_1 = arith.constant 0 : i32
    return %c0_i32, %c0_i32_0 : i32, i32
  }
  func.func @transform_8(%arg0: i32) -> (i32, i32) {
    %c0_i32 = arith.constant 0 : i32
    %c0_i32_0 = arith.constant 0 : i32
    %c0_i32_1 = arith.constant 0 : i32
    return %c0_i32, %c0_i32_0 : i32, i32
  }
  func.func @transform_9(%arg0: i32) -> (i32, i32) {
    %c0_i32 = arith.constant 0 : i32
    %c0_i32_0 = arith.constant 0 : i32
    %c0_i32_1 = arith.constant 0 : i32
    return %c0_i32, %c0_i32_0 : i32, i32
  }
  func.func @transform_10(%arg0: i32) -> (i32, i32) {
    %c0_i32 = arith.constant 0 : i32
    %c0_i32_0 = arith.constant 0 : i32
    %c0_i32_1 = arith.constant 0 : i32
    return %c0_i32, %c0_i32_0 : i32, i32
  }
  func.func @transform_11(%arg0: i32) -> (i32, i32) {
    %c0_i32 = arith.constant 0 : i32
    %c0_i32_0 = arith.constant 0 : i32
    %c0_i32_1 = arith.constant 0 : i32
    return %c0_i32, %c0_i32_0 : i32, i32
  }
  func.func @transform_12(%arg0: i32) -> (i32, i32, i32) {
    %c0_i32 = arith.constant 0 : i32
    %c0_i32_0 = arith.constant 0 : i32
    %c0_i32_1 = arith.constant 0 : i32
    %c0_i32_2 = arith.constant 0 : i32
    return %c0_i32, %c0_i32_0, %c0_i32_1 : i32, i32, i32
  }
  func.func @transform_13(%arg0: i32) -> (i32, i32, i32) {
    %c0_i32 = arith.constant 0 : i32
    %c0_i32_0 = arith.constant 0 : i32
    %c0_i32_1 = arith.constant 0 : i32
    %c0_i32_2 = arith.constant 0 : i32
    return %c0_i32, %c0_i32_0, %c0_i32_1 : i32, i32, i32
  }
  func.func @transform_14(%arg0: i32) -> (i32, i32, i32) {
    %c0_i32 = arith.constant 0 : i32
    %c0_i32_0 = arith.constant 0 : i32
    %c0_i32_1 = arith.constant 0 : i32
    %c0_i32_2 = arith.constant 0 : i32
    return %c0_i32, %c0_i32_0, %c0_i32_1 : i32, i32, i32
  }
  func.func @transform_15(%arg0: i32) -> (i32, i32, i32) {
    %c0_i32 = arith.constant 0 : i32
    %c0_i32_0 = arith.constant 0 : i32
    %c0_i32_1 = arith.constant 0 : i32
    %c0_i32_2 = arith.constant 0 : i32
    return %c0_i32, %c0_i32_0, %c0_i32_1 : i32, i32, i32
  }
  func.func @transform_16(%arg0: i32) -> (i32, i32, i32) {
    %c0_i32 = arith.constant 0 : i32
    %c0_i32_0 = arith.constant 0 : i32
    %c0_i32_1 = arith.constant 0 : i32
    %c0_i32_2 = arith.constant 0 : i32
    return %c0_i32, %c0_i32_0, %c0_i32_1 : i32, i32, i32
  }
  func.func @transform_17(%arg0: i32) -> (i32, i32, i32) {
    %c0_i32 = arith.constant 0 : i32
    %c0_i32_0 = arith.constant 0 : i32
    %c0_i32_1 = arith.constant 0 : i32
    %c0_i32_2 = arith.constant 0 : i32
    return %c0_i32, %c0_i32_0, %c0_i32_1 : i32, i32, i32
  }
  func.func @transform_18(%arg0: i32) -> (i32, i32, i32) {
    %c0_i32 = arith.constant 0 : i32
    %c0_i32_0 = arith.constant 0 : i32
    %c0_i32_1 = arith.constant 0 : i32
    %c0_i32_2 = arith.constant 0 : i32
    return %c0_i32, %c0_i32_0, %c0_i32_1 : i32, i32, i32
  }
  func.func @transform_19(%arg0: i32) -> (i32, i32, i32) {
    %c0_i32 = arith.constant 0 : i32
    %c0_i32_0 = arith.constant 0 : i32
    %c0_i32_1 = arith.constant 0 : i32
    %c0_i32_2 = arith.constant 0 : i32
    return %c0_i32, %c0_i32_0, %c0_i32_1 : i32, i32, i32
  }
  func.func @transform_20(%arg0: i32) -> (i32, i32, i32) {
    %c0_i32 = arith.constant 0 : i32
    %c0_i32_0 = arith.constant 0 : i32
    %c0_i32_1 = arith.constant 0 : i32
    %c0_i32_2 = arith.constant 0 : i32
    return %c0_i32, %c0_i32_0, %c0_i32_1 : i32, i32, i32
  }
  func.func @transform_21(%arg0: i32) -> (i32, i32, i32) {
    %c0_i32 = arith.constant 0 : i32
    %c0_i32_0 = arith.constant 0 : i32
    %c0_i32_1 = arith.constant 0 : i32
    %c0_i32_2 = arith.constant 0 : i32
    return %c0_i32, %c0_i32_0, %c0_i32_1 : i32, i32, i32
  }
  func.func @transform_22(%arg0: i32) -> (i32, i32, i32) {
    %c0_i32 = arith.constant 0 : i32
    %c0_i32_0 = arith.constant 0 : i32
    %c0_i32_1 = arith.constant 0 : i32
    %c0_i32_2 = arith.constant 0 : i32
    return %c0_i32, %c0_i32_0, %c0_i32_1 : i32, i32, i32
  }
  func.func @transform_23(%arg0: i32) -> (i32, i32, i32) {
    %c0_i32 = arith.constant 0 : i32
    %c0_i32_0 = arith.constant 0 : i32
    %c0_i32_1 = arith.constant 0 : i32
    %c0_i32_2 = arith.constant 0 : i32
    return %c0_i32, %c0_i32_0, %c0_i32_1 : i32, i32, i32
  }
  func.func @transform_24(%arg0: i32) -> (i32, i32, i32) {
    %c0_i32 = arith.constant 0 : i32
    %c0_i32_0 = arith.constant 0 : i32
    %c0_i32_1 = arith.constant 0 : i32
    %c0_i32_2 = arith.constant 0 : i32
    return %c0_i32, %c0_i32_0, %c0_i32_1 : i32, i32, i32
  }
  func.func @transform_25(%arg0: i32) -> (i32, i32, i32) {
    %c0_i32 = arith.constant 0 : i32
    %c0_i32_0 = arith.constant 0 : i32
    %c0_i32_1 = arith.constant 0 : i32
    %c0_i32_2 = arith.constant 0 : i32
    return %c0_i32, %c0_i32_0, %c0_i32_1 : i32, i32, i32
  }
  func.func @transform_26(%arg0: i32) -> (i32, i32, i32) {
    %c0_i32 = arith.constant 0 : i32
    %c0_i32_0 = arith.constant 0 : i32
    %c0_i32_1 = arith.constant 0 : i32
    %c0_i32_2 = arith.constant 0 : i32
    return %c0_i32, %c0_i32_0, %c0_i32_1 : i32, i32, i32
  }
  func.func @transform_27(%arg0: i32) -> (i32, i32, i32) {
    %c0_i32 = arith.constant 0 : i32
    %c0_i32_0 = arith.constant 0 : i32
    %c0_i32_1 = arith.constant 0 : i32
    %c0_i32_2 = arith.constant 0 : i32
    return %c0_i32, %c0_i32_0, %c0_i32_1 : i32, i32, i32
  }
  func.func @transform_28(%arg0: i32) -> (i32, i32, i32) {
    %c0_i32 = arith.constant 0 : i32
    %c0_i32_0 = arith.constant 0 : i32
    %c0_i32_1 = arith.constant 0 : i32
    %c0_i32_2 = arith.constant 0 : i32
    return %c0_i32, %c0_i32_0, %c0_i32_1 : i32, i32, i32
  }
  func.func @transform_29(%arg0: i32) -> (i32, i32, i32) {
    %c0_i32 = arith.constant 0 : i32
    %c0_i32_0 = arith.constant 0 : i32
    %c0_i32_1 = arith.constant 0 : i32
    %c0_i32_2 = arith.constant 0 : i32
    return %c0_i32, %c0_i32_0, %c0_i32_1 : i32, i32, i32
  }
  func.func @transform_30(%arg0: i32) -> (i32, i32) {
    %c0_i32 = arith.constant 0 : i32
    %c0_i32_0 = arith.constant 0 : i32
    %c0_i32_1 = arith.constant 0 : i32
    return %c0_i32, %c0_i32_0 : i32, i32
  }
  func.func @transform_31(%arg0: i32) -> (i32, i32) {
    %c0_i32 = arith.constant 0 : i32
    %c0_i32_0 = arith.constant 0 : i32
    %c0_i32_1 = arith.constant 0 : i32
    return %c0_i32, %c0_i32_0 : i32, i32
  }
  func.func @transform_32(%arg0: i32) -> (i32, i32) {
    %c0_i32 = arith.constant 0 : i32
    %c0_i32_0 = arith.constant 0 : i32
    %c0_i32_1 = arith.constant 0 : i32
    return %c0_i32, %c0_i32_0 : i32, i32
  }
  func.func @transform_33(%arg0: i32) -> (i32, i32) {
    %c0_i32 = arith.constant 0 : i32
    %c0_i32_0 = arith.constant 0 : i32
    %c0_i32_1 = arith.constant 0 : i32
    return %c0_i32, %c0_i32_0 : i32, i32
  }
  func.func @transform_34(%arg0: i32) -> (i32, i32, i32) {
    %c0_i32 = arith.constant 0 : i32
    %c0_i32_0 = arith.constant 0 : i32
    %c0_i32_1 = arith.constant 0 : i32
    return %arg0, %c0_i32, %c0_i32_0 : i32, i32, i32
  }
}

</mosaic_0001>

<bundles_post_ra>
// kernel: tpu_custom_call.1
= control target key start
LH: loop header
LB: loop body
LE: loop exit
PB: predicated region body
PF: predicated region fallthrough
CT: control target
= control target key end

     0   :  { %s6206_s6 = smov 1   ;;  %s6207_s10 = smov 2   ;;  %s7391_s0 = inlined_call_operand.smem [shape: u32[35], index: -1, kind: input, shape index: {}] }
   0x1   :  { %s6286_s5 = sld [smem:[%s7391_s0]]   ;;  %s6208_s14 = smov 3  }
   0x2   :  { %s6291_s9 = sld [smem:[%s7391_s0 + %s6206_s6]]   ;;  %s6209_s18 = smov 4  }
   0x3   :  { %s6296_s13 = sld [smem:[%s7391_s0 + %s6207_s10]]   ;;  %s6210_s22 = smov 5  }
   0x4   :  { %s6301_s17 = sld [smem:[%s7391_s0 + %s6208_s14]]   ;;  %s6211_s26 = smov 6  }
   0x5   :  { %s6306_s21 = sld [smem:[%s7391_s0 + %s6209_s18]]   ;;  %s6212_s30 = smov 7  }
   0x6   :  { %s6311_s25 = sld [smem:[%s7391_s0 + %s6210_s22]]   ;;  %s6213_s4 = smov 8  }
   0x7   :  { %7411 = sst [smem:[#allocation53_spill]] %s6286_s5  ;;  %s6214_s10 = smov 9  }
   0x8   :  { %7412 = sst [smem:[#allocation54_spill]] %s6291_s9  ;;  %s6215_s15 = smov 10  }
   0x9   :  { %7413 = sst [smem:[#allocation55_spill]] %s6296_s13  ;;  %s6216_s20 = smov 11  }
   0xa   :  { %7414 = sst [smem:[#allocation56_spill]] %s6301_s17  ;;  %s6218_s1 = smov 13  }
   0xb   :  { %7415 = sst [smem:[#allocation57_spill]] %s6306_s21  ;;  %s6219_s7 = smov 14  }
   0xc   :  { %7416 = sst [smem:[#allocation58_spill]] %s6311_s25  ;;  %s6221_s22 = smov 16  }
   0xd   :  { %s6316_s29 = sld [smem:[%s7391_s0 + %s6211_s26]]   ;;  %s6217_s26 = smov 12  }
   0xe   :  { %s6321_s3 = sld [smem:[%s7391_s0 + %s6212_s30]]   ;;  %s6222_s28 = smov 17  }
   0xf   :  { %s6326_s8 = sld [smem:[%s7391_s0 + %s6213_s4]]  }
  0x10   :  { %s6331_s14 = sld [smem:[%s7391_s0 + %s6214_s10]]  }
  0x11   :  { %s6336_s19 = sld [smem:[%s7391_s0 + %s6215_s15]]   ;;  %s6220_s15 = smov 15  }
  0x12   :  { %s6341_s24 = sld [smem:[%s7391_s0 + %s6216_s20]]  }
  0x13   :  { %s6346_s30 = sld [smem:[%s7391_s0 + %s6217_s26]]  }
  0x14   :  { %7417 = sst [smem:[#allocation59_spill]] %s6321_s3 }
  0x15   :  { %7418 = sst [smem:[#allocation60_spill]] %s6326_s8 }
  0x16   :  { %7419 = sst [smem:[#allocation61_spill]] %s6331_s14 }
  0x17   :  { %7420 = sst [smem:[#allocation62_spill]] %s6336_s19 }
  0x18   :  { %s6351_s6 = sld [smem:[%s7391_s0 + %s6218_s1]]  }
  0x19   :  { %s6356_s12 = sld [smem:[%s7391_s0 + %s6219_s7]]   ;;  %s6223_s7 = smov 18  }
  0x1a   :  { %s6361_s20 = sld [smem:[%s7391_s0 + %s6220_s15]]   ;;  %s6224_s15 = smov 19  }
  0x1b   :  { %s6366_s27 = sld [smem:[%s7391_s0 + %s6221_s22]]   ;;  %s6225_s22 = smov 20  }
  0x1c   :  { %s6371_s4 = sld [smem:[%s7391_s0 + %s6222_s28]]   ;;  %s6226_s28 = smov 21  }
  0x1d   :  { %s6376_s17 = sld [smem:[%s7391_s0 + %s6223_s7]]   ;;  %s6227_s7 = smov 22  }
  0x1e   :  { %7421 = sst [smem:[#allocation63_spill]] %s6351_s6 }
  0x1f   :  { %7422 = sst [smem:[#allocation64_spill]] %s6356_s12 }
  0x20   :  { %7423 = sst [smem:[#allocation65_spill]] %s6361_s20 }
  0x21   :  { %7424 = sst [smem:[#allocation66_spill]] %s6366_s27 }
  0x22   :  { %7425 = sst [smem:[#allocation67_spill]] %s6371_s4 }
  0x23   :  { %7426 = sst [smem:[#allocation68_spill]] %s6376_s17 }
  0x24   :  { %s6381_s12 = sld [smem:[%s7391_s0 + %s6224_s15]]   ;;  %s6228_s15 = smov 23  }
  0x25   :  { %s6386_s27 = sld [smem:[%s7391_s0 + %s6225_s22]]   ;;  %s6229_s22 = smov 24  }
  0x26   :  { %s6391_s9 = sld [smem:[%s7391_s0 + %s6226_s28]]   ;;  %s6230_s28 = smov 25  }
  0x27   :  { %s6396_s5 = sld [smem:[%s7391_s0 + %s6227_s7]]   ;;  %s6231_s7 = smov 26  }
  0x28   :  { %s6401_s21 = sld [smem:[%s7391_s0 + %s6228_s15]]   ;;  %s6232_s15 = smov 27  }
  0x29   :  { %s6411_s13 = sld [smem:[%s7391_s0 + %s6230_s28]]   ;;  %s6234_s28 = smov 29  }
  0x2a   :  { %7427 = sst [smem:[#allocation69_spill]] %s6381_s12 }
  0x2b   :  { %7428 = sst [smem:[#allocation70_spill]] %s6386_s27 }
  0x2c   :  { %7429 = sst [smem:[#allocation71_spill]] %s6391_s9 }
  0x2d   :  { %7430 = sst [smem:[#allocation72_spill]] %s6396_s5 }
  0x2e   :  { %7431 = sst [smem:[#allocation73_spill]] %s6401_s21 }
  0x2f   :  { %s6406_s27 = sld [smem:[%s7391_s0 + %s6229_s22]]   ;;  %s6233_s22 = smov 28  }
  0x30   :  { %7433 = sst [smem:[#allocation75_spill]] %s6411_s13 }
  0x31   :  { %s6416_s5 = sld [smem:[%s7391_s0 + %s6231_s7]]   ;;  %s6235_s7 = smov 30  }
  0x32   :  { %s6421_s21 = sld [smem:[%s7391_s0 + %s6232_s15]]   ;;  %s6236_s15 = smov 31  }
  0x33   :  { %s6431_s12 = sld [smem:[%s7391_s0 + %s6234_s28]]   ;;  %s6238_s28 = smov 33  }
  0x34   :  { %s6441_s4 = sld [smem:[%s7391_s0 + %s6236_s15]]  }
  0x35   :  { %7432 = sst [smem:[#allocation74_spill]] %s6406_s27 }
  0x36   :  { %s6426_s27 = sld [smem:[%s7391_s0 + %s6233_s22]]   ;;  %s6237_s22 = smov 32  }
  0x37   :  { %7434 = sst [smem:[#allocation76_spill]] %s6416_s5 }
  0x38   :  { %7435 = sst [smem:[#allocation77_spill]] %s6421_s21 }
  0x39   :  { %7437 = sst [smem:[#allocation79_spill]] %s6431_s12 }
  0x3a   :  { %s6436_s5 = sld [smem:[%s7391_s0 + %s6235_s7]]   ;;  %s6239_s7 = smov 34  }
  0x3b   :  { %7439 = sst [smem:[#allocation81_spill]] %s6441_s4 }
  0x3c   :  { %7436 = sst [smem:[#allocation78_spill]] %s6426_s27 }
  0x3d   :  { %s6446_s27 = sld [smem:[%s7391_s0 + %s6237_s22]]  }
  0x3e   :  { %s6451_s6 = sld [smem:[%s7391_s0 + %s6238_s28]]  }
  0x40   :  { %7438 = sst [smem:[#allocation80_spill]] %s6436_s5 }
  0x41   :  { %s6456_s5 = sld [smem:[%s7391_s0 + %s6239_s7]]  }
  0x43   :  { %7440 = sst [smem:[#allocation82_spill]] %s6446_s27 }
  0x44   :  { %7441 = sst [smem:[#allocation83_spill]] %s6451_s6 }
  0x47   :  { %7442 = sst [smem:[#allocation84_spill]] %s6456_s5 }
  0x48   :  { %74 = vsyncpa [#allocation3], 0 }
  0x49   :  { %76 = vsyncpa [#allocation3 + $0x1], 0 }
  0x4a   :  { %77 = vsyncpa [#allocation6], 0 }
  0x4b   :  { %79 = vsyncpa [#allocation6 + $0x1], 0 }
  0x4c   :  { %80 = vsyncpa [#allocation9], 0 }
  0x4d   :  { %81 = vsyncpa [#allocation12], 0 }
  0x4e   :  { %82 = vsyncpa [#allocation15], 0 }
  0x4f   :  { %83 = vsyncpa [#allocation18], 0 }
  0x50   :  { %84 = vsyncpa [#allocation21], 0 }
  0x51   :  { %85 = vsyncpa [#allocation24], 0 }
  0x52   :  { %86 = vsyncpa [#allocation27], 0 }
  0x53   :  { %87 = vsyncpa [#allocation30], 0 }
  0x54   :  { %88 = vsyncpa [#allocation33], 0 }
  0x55   :  { %89 = vsyncpa [#allocation36], 0 }
  0x56   :  { %90 = vsyncpa [#allocation4], 0 }
  0x57   :  { %92 = vsyncpa [#allocation4 + $0x1], 0  ;;  %s6458_s15 = smov 0   ;;  %s6460_s0 = smov 0  }
  0x58   :  { %s6462_s16 = smov 0   ;;  %s6464_s18 = smov 0  }
  0x59 LB: > { %s6240_s22 = smov [#allocation7]   ;;  %s6479_s26 = sadd.s32 4294967295, %s6204_s18   ;;  %s6204_s18 = sphi %s6464_s18, %s7523_s18   ;;  %s6200_s16 = sphi %s6462_s16, %s7522_s16   ;;  %s6196_s0 = sphi %s6460_s0, %s7521_s0   ;;  %s6192_s15 = sphi %s6458_s15, %s7520_s15  }
  0x5a   : > { %s880_s23 = sshll.u32 %s6240_s22, 4  ;;  %p4453_p0 = scmp.ge.s32.totalorder %s6204_s18, 1  ;;  %s881_s23 = int_to_ptr.vmem [resolvable:$true] %s880_s23 }
  0x5b   : > { %p7402_p1 = scmp.eq.s32.totalorder %s6479_s26, 0  ;;  %p868_p2 = scmp.lt.s32.totalorder %s6204_s18, 5 }
  0x5c   : > { %s6241_s1 = smov [#allocation8]   ;;  %s6242_s10 = smov [#allocation11]  }
  0x5d   : > { %p6484_p3 = pnand %p4453_p0, %p868_p2  ;;  %s894_s2 = sshll.u32 %s6241_s1, 4  ;;  %s895_s2 = int_to_ptr.vmem [resolvable:$true] %s894_s2 }
  0x5e   : > { %s915_s11 = sshll.u32 %s6242_s10, 4  ;;  %s5501_s5 = scalar_lea.vmem %s881_s23, 256  ;;  %s6496_s11 = int_to_ptr.vmem [resolvable:$true] %s915_s11 }
  0x5f   : > { %s7443_s28 = scalar_select %p6484_p3, 1, 0 }
  0x60   : > { %p5023_p4 = pneg %p6484_p3  ;;  %p5502_p7 = scmp.ne.s32.totalorder %s881_s23, %s5501_s5 }
  0x61   : > { %p5509_p10 = scmp.lt.s32.totalorder %s881_s23, %s881_s23  ;;  %p5510_p11 = scmp.lt.s32.totalorder %s5501_s5, %s5501_s5 }
  0x62   : > { %p6492_p5 = pnand %p5023_p4, %p7402_p1 }
  0x63   : > { %p5511_p12 = por %p5510_p11, %p5509_p10 }
  0x64   : > { %p6500_p6 = pneg %p6492_p5 }
  0x66   : > { %p5504_p8 = pnand %p5502_p7, %p6500_p6 }
  0x68   : > { %p5505_p9 = pneg %p5504_p8 }
  0x6a   : > { %p5512_p13 = pnand %p5511_p12, %p5505_p9 }
  0x6c   : > { %5515 = shalt.err (!%p5512_p13)
}
  0x6d   : > { %s6243_s1 = smov 128   ;;  %s7446_s25 = sld [smem:[#allocation58_spill]] }
  0x6e   : > { %s6244_s10 = smov 8   ;;  %s5527_s6 = scalar_lea.vmem %s895_s2, 16 }
  0x6f   : > { %p5528_p0 = scmp.ne.s32.totalorder %s895_s2, %s5527_s6  ;;  %s5534_s27 = scalar_lea.vmem %s895_s2, 32 }
  0x70   : > { %p5535_p7 = scmp.lt.s32.totalorder %s895_s2, %s895_s2  ;;  %p5536_p8 = scmp.lt.s32.totalorder %s5534_s27, %s5527_s6 }
  0x71   : > { %p5530_p2 = pnand %p5528_p0, %p6500_p6 }
  0x72   : > { %p5537_p9 = por %p5536_p8, %p5535_p7 }
  0x73   : > { %5026 = dma.hbm_to_vmem [thread:$0]  (!%p6492_p5), %s7446_s25, 256, %s881_s23, [#allocation6], %s6243_s1, %s6243_s1, %s6244_s10  }
  0x74   : > { %p5531_p4 = pneg %p5530_p2 }
  0x76   : > { %p5538_p10 = pnand %p5537_p9, %p5531_p4 }
  0x78   : > { %5541 = shalt.err (!%p5538_p10)
}
  0x79   : > { %5029 = dma.hbm_to_vmem [thread:$0]  (!%p6492_p5), %s6316_s29, 16, %s895_s2, [#allocation9]  }
  0x7a   : > { %s5553_s5 = scalar_lea.vmem %s6496_s11, 256  ;;  %p5561_p0 = scmp.lt.s32.totalorder %s6496_s11, %s6496_s11 }
  0x7b   : > { %p5554_p11 = scmp.ne.s32.totalorder %s6496_s11, %s5553_s5  ;;  %p5562_p2 = scmp.lt.s32.totalorder %s5553_s5, %s5553_s5 }
  0x7d   : > { %p5556_p12 = pnand %p5554_p11, %p6500_p6  ;;  %p5563_p1 = por %p5562_p2, %p5561_p0 }
  0x7f   : > { %p5557_p13 = pneg %p5556_p12 }
  0x81   : > { %p5564_p7 = pnand %p5563_p1, %p5557_p13 }
  0x83   : > { %5567 = shalt.err (!%p5564_p7)
}
  0x84   : > { %s7447_s8 = sld [smem:[#allocation60_spill]]  ;;  %s6245_s6 = smov [#allocation14]  }
  0x85   : > { %s939_s27 = sshll.u32 %s6245_s6, 4  ;;  %s6246_s23 = smov [#allocation17]   ;;  %s940_s27 = int_to_ptr.vmem [resolvable:$true] %s939_s27 }
  0x86   : > { %s963_s2 = sshll.u32 %s6246_s23, 4  ;;  %s5579_s25 = scalar_lea.vmem %s940_s27, 512  ;;  %s964_s2 = int_to_ptr.vmem [resolvable:$true] %s963_s2 }
  0x87   : > { %p5580_p4 = scmp.ne.s32.totalorder %s940_s27, %s5579_s25  ;;  %p5587_p9 = scmp.lt.s32.totalorder %s940_s27, %s940_s27 }
  0x88   : > { %p5588_p10 = scmp.lt.s32.totalorder %s5579_s25, %s5579_s25 }
  0x89   : > { %p5582_p8 = pnand %p5580_p4, %p6500_p6 }
  0x8a   : > { %5035 = dma.hbm_to_vmem [thread:$0]  (!%p6492_p5), %s7447_s8, 256, %s6496_s11, [#allocation12], %s6243_s1, %s6243_s1, %s6244_s10  }
  0x8b   : > { %p5583_p1 = pneg %p5582_p8  ;;  %p5589_p11 = por %p5588_p10, %p5587_p9 }
  0x8d   : > { %p5590_p12 = pnand %p5589_p11, %p5583_p1 }
  0x8f   : > { %5593 = shalt.err (!%p5590_p12)
}
  0x90   : > { %s7448_s19 = sld [smem:[#allocation62_spill]]  ;;  %s5605_s11 = scalar_lea.vmem %s964_s2, 32 }
  0x91   : > { %p5606_p13 = scmp.ne.s32.totalorder %s964_s2, %s5605_s11  ;;  %p5613_p7 = scmp.lt.s32.totalorder %s964_s2, %s964_s2 }
  0x92   : > { %p5614_p4 = scmp.lt.s32.totalorder %s5605_s11, %s5605_s11 }
  0x93   : > { %p5608_p0 = pnand %p5606_p13, %p6500_p6 }
  0x94   : > { %p5615_p8 = por %p5614_p4, %p5613_p7 }
  0x95   : > { %p5609_p2 = pneg %p5608_p0 }
  0x96   : > { %5041 = dma.hbm_to_vmem [thread:$0]  (!%p6492_p5), %s7448_s19, 512, %s940_s27, [#allocation15], %s6243_s1, %s6243_s1, %s6244_s10  }
  0x97   : > { %p5616_p9 = pnand %p5615_p8, %p5609_p2 }
  0x99   : > { %5619 = shalt.err (!%p5616_p9)
}
  0x9a   : > { %s7403_s25 = smov 16   ;;  %s7405_s5 = smov 1  }
  0x9b   : > { %5047 = dma.hbm_to_vmem [thread:$0]  (!%p6492_p5), %s6346_s30, 32, %s964_s2, [#allocation18], %s7403_s25, %s7403_s25, %s7405_s5  }
  0x9c   : > { %s6249_s1 = smov [#allocation20]  }
  0x9d   : > { %s992_s10 = sshll.u32 %s6249_s1, 4  ;;  %s993_s10 = int_to_ptr.vmem [resolvable:$true] %s992_s10 }
  0x9e   : > { %s5631_s6 = scalar_lea.vmem %s993_s10, 64  ;;  %p5639_p12 = scmp.lt.s32.totalorder %s993_s10, %s993_s10 }
  0x9f   : > { %p5632_p1 = scmp.ne.s32.totalorder %s993_s10, %s5631_s6  ;;  %p5640_p13 = scmp.lt.s32.totalorder %s5631_s6, %s5631_s6 }
  0xa1   : > { %p5634_p10 = pnand %p5632_p1, %p6500_p6  ;;  %p5641_p0 = por %p5640_p13, %p5639_p12 }
  0xa3   : > { %p5635_p11 = pneg %p5634_p10 }
  0xa5   : > { %p5642_p2 = pnand %p5641_p0, %p5635_p11 }
  0xa7   : > { %5645 = shalt.err (!%p5642_p2)
}
  0xa8   : > { %s6250_s27 = smov 32   ;;  %s7449_s20 = sld [smem:[#allocation65_spill]] }
  0xa9   : > { %s6251_s23 = smov 2   ;;  %s6252_s2 = smov [#allocation23]  }
  0xaa   : > { %s1021_s11 = sshll.u32 %s6252_s2, 4  ;;  %s6253_s1 = smov [#allocation26]   ;;  %s1022_s11 = int_to_ptr.vmem [resolvable:$true] %s1021_s11 }
  0xab   : > { %s1050_s25 = sshll.u32 %s6253_s1, 4  ;;  %s5657_s5 = scalar_lea.vmem %s1022_s11, 32  ;;  %s1051_s25 = int_to_ptr.vmem [resolvable:$true] %s1050_s25 }
  0xac   : > { %p5658_p7 = scmp.ne.s32.totalorder %s1022_s11, %s5657_s5  ;;  %p5665_p9 = scmp.lt.s32.totalorder %s1022_s11, %s1022_s11 }
  0xad   : > { %p5666_p1 = scmp.lt.s32.totalorder %s5657_s5, %s5657_s5 }
  0xae   : > { %5053 = dma.hbm_to_vmem [thread:$0]  (!%p6492_p5), %s7449_s20, 64, %s993_s10, [#allocation21], %s6250_s27, %s6250_s27, %s6251_s23  }
  0xaf   : > { %p5660_p4 = pnand %p5658_p7, %p6500_p6  ;;  %p5667_p10 = por %p5666_p1, %p5665_p9 }
  0xb1   : > { %p5661_p8 = pneg %p5660_p4 }
  0xb3   : > { %p5668_p11 = pnand %p5667_p10, %p5661_p8 }
  0xb5   : > { %5671 = shalt.err (!%p5668_p11)
}
  0xb6   : > { %s7450_s6 = smov 1   ;;  %s7451_s10 = smov 16  }
  0xb7   : > { %s7452_s17 = sld [smem:[#allocation68_spill]]  ;;  %s5683_s27 = scalar_lea.vmem %s1051_s25, 32 }
  0xb8   : > { %p5684_p12 = scmp.ne.s32.totalorder %s1051_s25, %s5683_s27  ;;  %p5691_p2 = scmp.lt.s32.totalorder %s1051_s25, %s1051_s25 }
  0xb9   : > { %p5692_p7 = scmp.lt.s32.totalorder %s5683_s27, %s5683_s27 }
  0xba   : > { %p5686_p13 = pnand %p5684_p12, %p6500_p6 }
  0xbb   : > { %p5693_p4 = por %p5692_p7, %p5691_p2 }
  0xbc   : > { %p5687_p0 = pneg %p5686_p13 }
  0xbd   : > { %5059 = dma.hbm_to_vmem [thread:$0]  (!%p6492_p5), %s7452_s17, 32, %s1022_s11, [#allocation24], %s7451_s10, %s7451_s10, %s7450_s6  }
  0xbe   : > { %p5694_p3 = pnand %p5693_p4, %p5687_p0 }
  0xc0   : > { %5697 = shalt.err (!%p5694_p3)
}
  0xc1   : > { %s7453_s9 = sld [smem:[#allocation71_spill]]  ;;  %s6254_s5 = smov [#allocation29]  }
  0xc2   : > { %s1082_s23 = sshll.u32 %s6254_s5, 4  ;;  %s6255_s2 = smov [#allocation32]   ;;  %s1083_s23 = int_to_ptr.vmem [resolvable:$true] %s1082_s23 }
  0xc3   : > { %s1108_s11 = sshll.u32 %s6255_s2, 4  ;;  %s5709_s1 = scalar_lea.vmem %s1083_s23, 48  ;;  %s1109_s11 = int_to_ptr.vmem [resolvable:$true] %s1108_s11 }
  0xc4   : > { %p5710_p8 = scmp.ne.s32.totalorder %s1083_s23, %s5709_s1  ;;  %s5716_s27 = scalar_lea.vmem %s1083_s23, 64 }
  0xc5   : > { %p5717_p3 = scmp.lt.s32.totalorder %s1083_s23, %s1083_s23  ;;  %p5718_p10 = scmp.lt.s32.totalorder %s5716_s27, %s5709_s1 }
  0xc6   : > { %p5712_p9 = pnand %p5710_p8, %p6500_p6 }
  0xc7   : > { %5065 = dma.hbm_to_vmem [thread:$0]  (!%p6492_p5), %s7453_s9, 32, %s1051_s25, [#allocation27], %s7451_s10, %s7451_s10, %s7450_s6  }
  0xc8   : > { %p5713_p1 = pneg %p5712_p9  ;;  %p5719_p11 = por %p5718_p10, %p5717_p3 }
  0xca   : > { %p5720_p12 = pnand %p5719_p11, %p5713_p1 }
  0xcc   : > { %5723 = shalt.err (!%p5720_p12)
}
  0xcd   : > { %s7454_s13 = sld [smem:[#allocation75_spill]]  ;;  %s5735_s25 = scalar_lea.vmem %s1109_s11, 48 }
  0xce   : > { %p5736_p13 = scmp.ne.s32.totalorder %s1109_s11, %s5735_s25  ;;  %s5742_s5 = scalar_lea.vmem %s1109_s11, 64 }
  0xcf   : > { %p5743_p7 = scmp.lt.s32.totalorder %s1109_s11, %s1109_s11  ;;  %p5744_p4 = scmp.lt.s32.totalorder %s5742_s5, %s5735_s25 }
  0xd0   : > { %p5738_p0 = pnand %p5736_p13, %p6500_p6 }
  0xd1   : > { %p5745_p8 = por %p5744_p4, %p5743_p7 }
  0xd2   : > { %p5739_p2 = pneg %p5738_p0 }
  0xd3   : > { %5071 = dma.hbm_to_vmem [thread:$0]  (!%p6492_p5), %s7454_s13, 48, %s1083_s23, [#allocation30], %s7451_s10, %s7451_s10, %s7450_s6  }
  0xd4   : > { %p5746_p9 = pnand %p5745_p8, %p5739_p2 }
  0xd6   : > { %5749 = shalt.err (!%p5746_p9)
}
  0xd7   : > { %s7455_s21 = sld [smem:[#allocation77_spill]]  ;;  %s6256_s23 = smov [#allocation35]  }
  0xd8   : > { %s1134_s2 = sshll.u32 %s6256_s23, 4  ;;  %s6257_s1 = smov [#allocation10]   ;;  %s1135_s2 = int_to_ptr.vmem [resolvable:$true] %s1134_s2 }
  0xd9   : > { %s905_s27 = sshll.u32 %s6257_s1, 4  ;;  %s5761_s8 = scalar_lea.vmem %s1135_s2, 48  ;;  %s906_s27 = int_to_ptr.vmem [resolvable:$true] %s905_s27 }
  0xda   : > { %p5762_p1 = scmp.ne.s32.totalorder %s1135_s2, %s5761_s8  ;;  %s5768_s25 = scalar_lea.vmem %s1135_s2, 64 }
  0xdb   : > { %p5769_p11 = scmp.lt.s32.totalorder %s1135_s2, %s1135_s2  ;;  %p5770_p12 = scmp.lt.s32.totalorder %s5768_s25, %s5761_s8 }
  0xdc   : > { %p5764_p3 = pnand %p5762_p1, %p6500_p6 }
  0xdd   : > { %5077 = dma.hbm_to_vmem [thread:$0]  (!%p6492_p5), %s7455_s21, 48, %s1109_s11, [#allocation33], %s7451_s10, %s7451_s10, %s7450_s6  }
  0xde   : > { %p5765_p10 = pneg %p5764_p3  ;;  %p5771_p13 = por %p5770_p12, %p5769_p11 }
  0xe0   : > { %p5772_p0 = pnand %p5771_p13, %p5765_p10 }
  0xe2   : > { %5775 = shalt.err (!%p5772_p0)
}
  0xe3   : > { %s7456_s12 = sld [smem:[#allocation79_spill]]  ;;  %s5787_s11 = scalar_lea.vmem %s906_s27, 16 }
  0xe4   : > { %p5788_p2 = scmp.ne.s32.totalorder %s906_s27, %s5787_s11  ;;  %s5794_s5 = scalar_lea.vmem %s906_s27, 32 }
  0xe5   : > { %p5795_p8 = scmp.lt.s32.totalorder %s906_s27, %s906_s27  ;;  %p5796_p9 = scmp.lt.s32.totalorder %s5794_s5, %s5787_s11 }
  0xe6   : > { %p5790_p7 = pnand %p5788_p2, %p6500_p6 }
  0xe7   : > { %p5797_p1 = por %p5796_p9, %p5795_p8 }
  0xe8   : > { %p5791_p4 = pneg %p5790_p7 }
  0xe9   : > { %5083 = dma.hbm_to_vmem [thread:$0]  (!%p6492_p5), %s7456_s12, 48, %s1135_s2, [#allocation36], %s7451_s10, %s7451_s10, %s7450_s6  }
  0xea   : > { %p5798_p3 = pnand %p5797_p1, %p5791_p4 }
  0xec   : > { %5801 = shalt.err (!%p5798_p3)
}
  0xed   : > { %s7457_s3 = sld [smem:[#allocation59_spill]]  ;;  %s6258_s8 = smov [#allocation13]  }
  0xee   : > { %s929_s23 = sshll.u32 %s6258_s8, 4  ;;  %s6259_s1 = smov [#allocation16]   ;;  %s930_s23 = int_to_ptr.vmem [resolvable:$true] %s929_s23 }
  0xef   : > { %s953_s2 = sshll.u32 %s6259_s1, 4  ;;  %s5813_s25 = scalar_lea.vmem %s930_s23, 16  ;;  %s954_s2 = int_to_ptr.vmem [resolvable:$true] %s953_s2 }
  0xf0   : > { %p5814_p10 = scmp.ne.s32.totalorder %s930_s23, %s5813_s25  ;;  %s5820_s11 = scalar_lea.vmem %s930_s23, 32 }
  0xf1   : > { %p5821_p13 = scmp.lt.s32.totalorder %s930_s23, %s930_s23  ;;  %p5822_p0 = scmp.lt.s32.totalorder %s5820_s11, %s5813_s25 }
  0xf2   : > { %p5816_p11 = pnand %p5814_p10, %p6500_p6 }
  0xf3   : > { %5032 = dma.hbm_to_vmem [thread:$0]  (!%p6492_p5), %s7457_s3, 16, %s906_s27, [#allocation9]  }
  0xf4   : > { %p5817_p12 = pneg %p5816_p11  ;;  %p5823_p2 = por %p5822_p0, %p5821_p13 }
  0xf6   : > { %p5824_p7 = pnand %p5823_p2, %p5817_p12 }
  0xf8   : > { %5827 = shalt.err (!%p5824_p7)
}
  0xf9   : > { %s7458_s14 = sld [smem:[#allocation61_spill]]  ;;  %s5839_s27 = scalar_lea.vmem %s954_s2, 16 }
  0xfa   : > { %p5840_p4 = scmp.ne.s32.totalorder %s954_s2, %s5839_s27  ;;  %s5846_s5 = scalar_lea.vmem %s954_s2, 32 }
  0xfb   : > { %p5847_p1 = scmp.lt.s32.totalorder %s954_s2, %s954_s2  ;;  %p5848_p3 = scmp.lt.s32.totalorder %s5846_s5, %s5839_s27 }
  0xfc   : > { %p5842_p8 = pnand %p5840_p4, %p6500_p6 }
  0xfd   : > { %p5849_p10 = por %p5848_p3, %p5847_p1 }
  0xfe   : > { %p5843_p9 = pneg %p5842_p8 }
  0xff   : > { %5038 = dma.hbm_to_vmem [thread:$0]  (!%p6492_p5), %s7458_s14, 16, %s930_s23, [#allocation12]  }
 0x100   : > { %p5850_p11 = pnand %p5849_p10, %p5843_p9 }
 0x102   : > { %5853 = shalt.err (!%p5850_p11)
}
 0x103   : > { %5044 = dma.hbm_to_vmem [thread:$0]  (!%p6492_p5), %s6341_s24, 16, %s954_s2, [#allocation15]  }
 0x104   : > { %s6260_s8 = smov [#allocation19]   ;;  %s6261_s25 = smov [#allocation22]  }
 0x105   : > { %s976_s1 = sshll.u32 %s6260_s8, 4  ;;  %s1008_s23 = sshll.u32 %s6261_s25, 4  ;;  %s977_s1 = int_to_ptr.vmem [resolvable:$true] %s976_s1  ;;  %s1009_s23 = int_to_ptr.vmem [resolvable:$true] %s1008_s23 }
 0x106   : > { %s5865_s11 = scalar_lea.vmem %s977_s1, 32  ;;  %p5873_p2 = scmp.lt.s32.totalorder %s977_s1, %s977_s1 }
 0x107   : > { %p5866_p12 = scmp.ne.s32.totalorder %s977_s1, %s5865_s11  ;;  %p5874_p7 = scmp.lt.s32.totalorder %s5865_s11, %s5865_s11 }
 0x109   : > { %p5868_p13 = pnand %p5866_p12, %p6500_p6  ;;  %p5875_p4 = por %p5874_p7, %p5873_p2 }
 0x10b   : > { %p5869_p0 = pneg %p5868_p13 }
 0x10d   : > { %p5876_p8 = pnand %p5875_p4, %p5869_p0 }
 0x10f   : > { %5879 = shalt.err (!%p5876_p8)
}
 0x110   : > { %s7459_s2 = sld [smem:[#allocation63_spill]]  ;;  %s5891_s27 = scalar_lea.vmem %s1009_s23, 32 }
 0x111   : > { %p5892_p9 = scmp.ne.s32.totalorder %s1009_s23, %s5891_s27  ;;  %p5899_p10 = scmp.lt.s32.totalorder %s1009_s23, %s1009_s23 }
 0x112   : > { %p5900_p11 = scmp.lt.s32.totalorder %s5891_s27, %s5891_s27 }
 0x113   : > { %p5894_p1 = pnand %p5892_p9, %p6500_p6 }
 0x114   : > { %p5901_p12 = por %p5900_p11, %p5899_p10 }
 0x115   : > { %p5895_p3 = pneg %p5894_p1 }
 0x116   : > { %5050 = dma.hbm_to_vmem [thread:$0]  (!%p6492_p5), %s7459_s2, 32, %s977_s1, [#allocation18], %s7451_s10, %s7451_s10, %s7450_s6  }
 0x117   : > { %p5902_p13 = pnand %p5901_p12, %p5895_p3 }
 0x119   : > { %5905 = shalt.err (!%p5902_p13)
}
 0x11a   : > { %s7460_s5 = sld [smem:[#allocation67_spill]]  ;;  %s6262_s8 = smov [#allocation25]  }
 0x11b   : > { %s1034_s1 = sshll.u32 %s6262_s8, 4  ;;  %s6263_s25 = smov [#allocation28]   ;;  %s1035_s1 = int_to_ptr.vmem [resolvable:$true] %s1034_s1 }
 0x11c   : > { %s1066_s11 = sshll.u32 %s6263_s25, 4  ;;  %s5917_s2 = scalar_lea.vmem %s1035_s1, 32  ;;  %s1067_s11 = int_to_ptr.vmem [resolvable:$true] %s1066_s11 }
 0x11d   : > { %p5918_p0 = scmp.ne.s32.totalorder %s1035_s1, %s5917_s2  ;;  %p5925_p4 = scmp.lt.s32.totalorder %s1035_s1, %s1035_s1 }
 0x11e   : > { %p5926_p8 = scmp.lt.s32.totalorder %s5917_s2, %s5917_s2 }
 0x11f   : > { %p5920_p2 = pnand %p5918_p0, %p6500_p6 }
 0x120   : > { %5056 = dma.hbm_to_vmem [thread:$0]  (!%p6492_p5), %s7460_s5, 32, %s1009_s23, [#allocation21], %s7451_s10, %s7451_s10, %s7450_s6  }
 0x121   : > { %p5921_p7 = pneg %p5920_p2  ;;  %p5927_p9 = por %p5926_p8, %p5925_p4 }
 0x123   : > { %p5928_p1 = pnand %p5927_p9, %p5921_p7 }
 0x125   : > { %5931 = shalt.err (!%p5928_p1)
}
 0x126   : > { %s7461_s23 = sld [smem:[#allocation69_spill]]  ;;  %s5943_s27 = scalar_lea.vmem %s1067_s11, 48 }
 0x127   : > { %p5944_p3 = scmp.ne.s32.totalorder %s1067_s11, %s5943_s27  ;;  %s5950_s5 = scalar_lea.vmem %s1067_s11, 64 }
 0x128   : > { %p5951_p12 = scmp.lt.s32.totalorder %s1067_s11, %s1067_s11  ;;  %p5952_p13 = scmp.lt.s32.totalorder %s5950_s5, %s5943_s27 }
 0x129   : > { %p5946_p10 = pnand %p5944_p3, %p6500_p6 }
 0x12a   : > { %p5953_p0 = por %p5952_p13, %p5951_p12 }
 0x12b   : > { %p5947_p11 = pneg %p5946_p10 }
 0x12c   : > { %5062 = dma.hbm_to_vmem [thread:$0]  (!%p6492_p5), %s7461_s23, 32, %s1035_s1, [#allocation24], %s7451_s10, %s7451_s10, %s7450_s6  }
 0x12d   : > { %p5954_p2 = pnand %p5953_p0, %p5947_p11 }
 0x12f   : > { %5957 = shalt.err (!%p5954_p2)
}
 0x130   : > { %s7462_s8 = sld [smem:[#allocation73_spill]]  ;;  %s6264_s1 = smov [#allocation31]  }
 0x131   : > { %s1095_s25 = sshll.u32 %s6264_s1, 4  ;;  %s6265_s2 = smov [#allocation34]   ;;  %s1096_s25 = int_to_ptr.vmem [resolvable:$true] %s1095_s25 }
 0x132   : > { %s1121_s23 = sshll.u32 %s6265_s2, 4  ;;  %s5969_s3 = scalar_lea.vmem %s1096_s25, 48  ;;  %s1122_s23 = int_to_ptr.vmem [resolvable:$true] %s1121_s23 }
 0x133   : > { %p5970_p7 = scmp.ne.s32.totalorder %s1096_s25, %s5969_s3  ;;  %s5976_s27 = scalar_lea.vmem %s1096_s25, 64 }
 0x134   : > { %p5977_p9 = scmp.lt.s32.totalorder %s1096_s25, %s1096_s25  ;;  %p5978_p1 = scmp.lt.s32.totalorder %s5976_s27, %s5969_s3 }
 0x135   : > { %p5972_p4 = pnand %p5970_p7, %p6500_p6 }
 0x136   : > { %5068 = dma.hbm_to_vmem [thread:$0]  (!%p6492_p5), %s7462_s8, 48, %s1067_s11, [#allocation27], %s7451_s10, %s7451_s10, %s7450_s6  }
 0x137   : > { %p5973_p8 = pneg %p5972_p4  ;;  %p5979_p3 = por %p5978_p1, %p5977_p9 }
 0x139   : > { %p5980_p10 = pnand %p5979_p3, %p5973_p8 }
 0x13b   : > { %5983 = shalt.err (!%p5980_p10)
}
 0x13c   : > { %s7463_s11 = sld [smem:[#allocation76_spill]]  ;;  %s5995_s5 = scalar_lea.vmem %s1122_s23, 48 }
 0x13d   : > { %p5996_p11 = scmp.ne.s32.totalorder %s1122_s23, %s5995_s5  ;;  %s6002_s8 = scalar_lea.vmem %s1122_s23, 64 }
 0x13e   : > { %p6003_p0 = scmp.lt.s32.totalorder %s1122_s23, %s1122_s23  ;;  %p6004_p2 = scmp.lt.s32.totalorder %s6002_s8, %s5995_s5 }
 0x13f   : > { %p5998_p12 = pnand %p5996_p11, %p6500_p6 }
 0x140   : > { %p6005_p7 = por %p6004_p2, %p6003_p0 }
 0x141   : > { %p5999_p13 = pneg %p5998_p12 }
 0x142   : > { %5074 = dma.hbm_to_vmem [thread:$0]  (!%p6492_p5), %s7463_s11, 48, %s1096_s25, [#allocation30], %s7451_s10, %s7451_s10, %s7450_s6  }
 0x143   : > { %p6006_p4 = pnand %p6005_p7, %p5999_p13 }
 0x145   : > { %6009 = shalt.err (!%p6006_p4)
}
 0x146   : > { %s7464_s3 = sld [smem:[#allocation78_spill]]  ;;  %s6266_s1 = smov [#allocation37]  }
 0x147   : > { %s1151_s25 = sshll.u32 %s6266_s1, 4  ;;  %s1152_s25 = int_to_ptr.vmem [resolvable:$true] %s1151_s25 }
 0x148   : > { %s6021_s2 = scalar_lea.vmem %s1152_s25, 16  ;;  %s6028_s27 = scalar_lea.vmem %s1152_s25, 32 }
 0x149   : > { %p6022_p8 = scmp.ne.s32.totalorder %s1152_s25, %s6021_s2  ;;  %p6029_p3 = scmp.lt.s32.totalorder %s1152_s25, %s1152_s25 }
 0x14a   : > { %p6030_p10 = scmp.lt.s32.totalorder %s6028_s27, %s6021_s2 }
 0x14b   : > { %p6024_p9 = pnand %p6022_p8, %p6500_p6 }
 0x14c   : > { %5080 = dma.hbm_to_vmem [thread:$0]  (!%p6492_p5), %s7464_s3, 48, %s1122_s23, [#allocation33], %s7451_s10, %s7451_s10, %s7450_s6  }
 0x14d   : > { %p6025_p1 = pneg %p6024_p9  ;;  %p6031_p11 = por %p6030_p10, %p6029_p3 }
 0x14f   : > { %p6032_p12 = pnand %p6031_p11, %p6025_p1 }
 0x151   : > { %6035 = shalt.err (!%p6032_p12)
}
 0x152   : > { %s7465_s4 = sld [smem:[#allocation81_spill]]  ;;  %s4452_s22 = sadd.s32 4294967294, %s6204_s18  }
 0x153   : > { %s6661_s6 = sadd.s32 1, %s6204_s18   ;;  %s157_s7 = sadd.s32 1, %s6200_s16 }
 0x154   : > { %s154_s10 = ssub.s32 %s6204_s18, %s6661_s6  ;;  %s7466_s23 = sld [smem:[#allocation55_spill]] }
 0x155   : > { %p164_p6 = scmp.ne.s32.totalorder %s6200_s16, %s6196_s0  ;;  %p155_p13 = scmp.eq.s32.totalorder %s154_s10, 0 }
 0x156   : > { %p165_p0 = scmp.eq.s32.totalorder %s6204_s18, 0  ;;  %p170_p2 = scmp.ne.s32.totalorder %s6196_s0, %s6192_s15 }
 0x157   : > { %p855_p7 = scmp.eq.s32.totalorder %s6479_s26, 3  ;;  %p7467_p8 = scmp.eq.s32.totalorder %s6479_s26, 0 }
 0x158   : > { %5086 = dma.hbm_to_vmem [thread:$0]  (!%p6492_p5), %s7465_s4, 16, %s1152_s25, [#allocation36]  }
 0x159   : > { %s6673_s11 = scalar_select %p155_p13, %s6200_s16, %s157_s7  }
 0x15a   : > { %p166_p4 = por %p165_p0, %p164_p6  ;;  %p6677_p9 = por %p7467_p8, %p170_p2 }
 0x15b   : > { %p6681_p5 = por %p855_p7, %p164_p6  ;;  %p861_p1 = scmp.eq.s32.totalorder %s4452_s22, 3 }
 0x15c   : > { %s7468_s5 = scalar_select %p6677_p9, 1, 0 }
 0x15d   : > { %s7469_s8 = scalar_select %p6681_p5, 1, 0 }
 0x15e   : > { %p5119_p3 = scmp.lt.s32.totalorder %s6204_s18, 4  ;;  %s6687_s3 = sand.u32 1, %s6200_s16  }
 0x15f   : > { %p6689_p10 = por %p861_p1, %p170_p2  ;;  %s4476_s25 = sshll.u32 %s6687_s3, 4 }
 0x160   : > { %s4666_s2 = sshll.u32 %s6204_s18, 8  ;;  %s1188_s7 = scalar_lea.vmem [#allocation2], %s4476_s25 }
 0x161   : > { %s7470_s1 = scalar_select %p6689_p10, 1, 0 }
 0x162   : > { %s6696_s27 = scalar_lea.hbm %s7466_s23, %s4666_s2  ;;  %s1195_s22 = sshll.u32 %s1188_s7, 4  ;;  %s6702_s22 = int_to_ptr.vmem [resolvable:$true] %s1195_s22 }
 0x163   : > { %p6698_p11 = pnand %p5119_p3, %p166_p4  ;;  %s6036_s9 = scalar_lea.hbm %s6696_s27, 256 }
 0x164   : > { %p6037_p12 = scmp.ne.s32.totalorder %s6696_s27, %s6036_s9  ;;  %s6041_s2 = scalar_lea.hbm %s7466_s23, 1024 }
 0x165   : > { %p6038_p6 = pneg %p6698_p11  ;;  %p6042_p2 = scmp.lt.s32.totalorder %s6696_s27, %s7466_s23 }
 0x166   : > { %p6043_p7 = scmp.lt.s32.totalorder %s6041_s2, %s6036_s9 }
 0x167   : > { %p6039_p13 = pnand %p6038_p6, %p6037_p12 }
 0x168   : > { %p6044_p4 = por %p6043_p7, %p6042_p2 }
 0x169   : > { %p6040_p0 = pneg %p6039_p13 }
 0x16b   : > { %p6045_p8 = pnand %p6044_p4, %p6040_p0 }
 0x16d   : > { %6048 = shalt.err (!%p6045_p8)
}
 0x16e   : > { %s6049_s25 = scalar_lea.vmem %s6702_s22, 256  ;;  %s6267_s7 = smov [#allocation2]  }
 0x16f   : > { %p6050_p1 = scmp.ne.s32.totalorder %s6702_s22, %s6049_s25  ;;  %s6054_s4 = sshll.u32 %s6267_s7, 4  ;;  %s6055_s4 = int_to_ptr.vmem [resolvable:$false] %s6054_s4 }
 0x170   : > { %s6056_s12 = scalar_lea.vmem %s6055_s4, 512  ;;  %p6057_p12 = scmp.lt.s32.totalorder %s6702_s22, %s6055_s4 }
 0x171   : > { %p6052_p3 = pnand %p6050_p1, %p6038_p6  ;;  %p6058_p13 = scmp.lt.s32.totalorder %s6056_s12, %s6049_s25 }
 0x173   : > { %p6053_p10 = pneg %p6052_p3  ;;  %p6059_p5 = por %p6058_p13, %p6057_p12 }
 0x175   : > { %p6060_p2 = pnand %p6059_p5, %p6053_p10 }
 0x177   : > { %6063 = shalt.err (!%p6060_p2)
}
 0x178   : > { %s6268_s9 = smov 64   ;;  %s7472_s2 = sld [smem:[#allocation57_spill]] }
 0x179   : > { %s6269_s7 = smov 4   ;;  %s7473_s13 = scalar_lea.sflag [#allocation3], %s6687_s3 }
 0x17a   : > { %5090 = dma.hbm_to_vmem [thread:$0]  (!%p6698_p11), %s6696_s27, 256, %s6702_s22, %s7473_s13, %s6268_s9, %s6268_s9, %s6269_s7  }
 0x17b   : > { %s1213_s12 = sand.u32 1, %s6204_s18   ;;  %s4479_s4 = sshll.u32 %s6687_s3, 2 }
 0x17c   : > { %s4480_s25 = sshll.u32 %s6204_s18, 6  ;;  %s1217_s14 = scalar_lea.vmem [#allocation5], %s4479_s4 }
 0x17d   : > { %s1224_s17 = sshll.u32 %s1217_s14, 4  ;;  %s1214_s20 = scalar_lea.sflag [#allocation6], %s1213_s12  ;;  %s1225_s17 = int_to_ptr.vmem [resolvable:$true] %s1224_s17 }
 0x17e   : > { %s1222_s19 = scalar_lea.hbm %s7472_s2, %s4480_s25  ;;  %s6069_s23 = scalar_lea.hbm %s7472_s2, 256 }
 0x17f   : > { %s6064_s21 = scalar_lea.hbm %s1222_s19, 64  ;;  %p6070_p7 = scmp.lt.s32.totalorder %s1222_s19, %s7472_s2 }
 0x180   : > { %p6065_p5 = scmp.ne.s32.totalorder %s1222_s19, %s6064_s21  ;;  %p6071_p4 = scmp.lt.s32.totalorder %s6069_s23, %s6064_s21 }
 0x182   : > { %p6067_p10 = pnand %p6065_p5, %p6038_p6  ;;  %p6072_p8 = por %p6071_p4, %p6070_p7 }
 0x184   : > { %p6068_p0 = pneg %p6067_p10 }
 0x186   : > { %p6073_p1 = pnand %p6072_p8, %p6068_p0 }
 0x188   : > { %6076 = shalt.err (!%p6073_p1)
}
 0x189   : > { %s6077_s13 = scalar_lea.vmem %s1225_s17, 64  ;;  %s6270_s14 = smov [#allocation5]  }
 0x18a   : > { %p6078_p3 = scmp.ne.s32.totalorder %s1225_s17, %s6077_s13  ;;  %s6082_s3 = sshll.u32 %s6270_s14, 4  ;;  %s6083_s3 = int_to_ptr.vmem [resolvable:$false] %s6082_s3 }
 0x18b   : > { %s6084_s27 = scalar_lea.vmem %s6083_s3, 128  ;;  %p6085_p2 = scmp.lt.s32.totalorder %s1225_s17, %s6083_s3 }
 0x18c   : > { %p6080_p12 = pnand %p6078_p3, %p6038_p6  ;;  %p6086_p5 = scmp.lt.s32.totalorder %s6084_s27, %s6077_s13 }
 0x18e   : > { %p6081_p13 = pneg %p6080_p12  ;;  %p6087_p10 = por %p6086_p5, %p6085_p2 }
 0x190   : > { %p6088_p9 = pnand %p6087_p10, %p6081_p13 }
 0x192   : > { %6091 = shalt.err (!%p6088_p9)
}
 0x193   : > { %5093 = dma.hbm_to_vmem [thread:$0]  (!%p6698_p11), %s1222_s19, 64, %s1225_s17, %s1214_s20  }
 0x194   : > { %p7474_p0 = scmp.ne.s32.totalorder %s7443_s28, 0 }
 0x195   : > { %s6744_s21 = sand.u32 (!%p7474_p0), 1, %s6196_s0   ;;  %p7475_p6 = scmp.ne.s32.totalorder (!%p7474_p0), %s7468_s5, 0 }
 0x196   : > { %1233 = sbr.rel (%p7474_p0) target bundleno = 8035 (0x1f63), region = 156  ;;  %s4482_s23 = sshll.u32 (!%p7474_p0), %s6744_s21, 4 }
 0x197   : > { %s1236_s22 = scalar_lea.sflag (!%p7474_p0), [#allocation3], %s6744_s21  ;;  %s6748_s9 = scalar_lea.vmem (!%p7474_p0), [#allocation2], %s4482_s23 }
 0x19b   : > { %6135 = dma.done.wait (%p7475_p6), %s1236_s22, 256  }
 0x19c   : > { %6137 = vsyncadd (%p7475_p6), %s1236_s22, 4294967040  ;;  %s1244_s17 = sand.u32 1, %s6479_s26   ;;  %s4483_s19 = sshll.u32 %s6744_s21, 2 }
 0x19d   : > { %s1245_s20 = scalar_lea.sflag [#allocation6], %s1244_s17  ;;  %s6756_s28 = scalar_lea.vmem [#allocation5], %s4483_s19 }
 0x19e   : > { %6139 = dma.done.wait (%p7475_p6), %s1245_s20, 64  }
 0x19f   : > { %6141 = vsyncadd (%p7475_p6), %s1245_s20, 4294967232  ;;  %p7476_p9 = scmp.eq.s32.totalorder %s6479_s26, 0 }
 0x1a1   : > { %6143 = dma.done.wait (%p7476_p9), [#allocation6], 256   ;;  %p7477_p11 = pmov %p7476_p9 }
 0x1a2   : > { %p7478_p7 = pmov %p7476_p9 }
 0x1a3   : > { %6145 = vsyncadd (%p7477_p11), [#allocation6], 4294967040 }
 0x1a4   : > { %6147 = dma.done.wait (%p7478_p7), [#allocation9], 32   ;;  %p7479_p4 = pmov %p7478_p7 }
 0x1a6   : > { %6149 = vsyncadd (%p7479_p4), [#allocation9], 4294967264  ;;  %p7480_p8 = pmov %p7479_p4 }
 0x1a7   : > { %p7481_p1 = pmov %p7479_p4 }
 0x1a8   : > { %6151 = dma.done.wait (%p7480_p8), [#allocation12], 272  }
 0x1a9   : > { %6153 = vsyncadd (%p7481_p1), [#allocation12], 4294967024  ;;  %p7482_p3 = pmov %p7481_p1 }
 0x1aa   : > { %p7483_p12 = pmov %p7481_p1 }
 0x1ab   : > { %6155 = dma.done.wait (%p7482_p3), [#allocation15], 528  }
 0x1ac   : > { %6157 = vsyncadd (%p7483_p12), [#allocation15], 4294966768  ;;  %p7484_p13 = pmov %p7481_p1 }
 0x1ad   : > { %p7485_p2 = pmov %p7481_p1 }
 0x1ae   : > { %6159 = dma.done.wait (%p7484_p13), [#allocation18], 64  }
 0x1af   : > { %6161 = vsyncadd (%p7485_p2), [#allocation18], 4294967232  ;;  %p7486_p5 = pmov %p7481_p1 }
 0x1b0   : > { %p7487_p10 = pmov %p7481_p1 }
 0x1b1   : > { %6163 = dma.done.wait (%p7486_p5), [#allocation21], 96  }
 0x1b2   : > { %6165 = vsyncadd (%p7487_p10), [#allocation21], 4294967200  ;;  %p7488_p0 = pmov %p7481_p1 }
 0x1b4   : > { %6167 = dma.done.wait (%p7488_p0), [#allocation24], 64   ;;  %p7489_p6 = pmov %p7488_p0 }
 0x1b5   : > { %p7490_p9 = pmov %p7488_p0 }
 0x1b6   : > { %6169 = vsyncadd (%p7489_p6), [#allocation24], 4294967232 }
 0x1b7   : > { %6171 = dma.done.wait (%p7490_p9), [#allocation27], 80   ;;  %p7491_p11 = pmov %p7488_p0 }
 0x1b8   : > { %p7492_p7 = pmov %p7488_p0 }
 0x1b9   : > { %6173 = vsyncadd (%p7491_p11), [#allocation27], 4294967216 }
 0x1ba   : > { %6175 = dma.done.wait (%p7492_p7), [#allocation30], 96   ;;  %p7493_p4 = pmov %p7488_p0 }
 0x1bb   : > { %p7494_p8 = pmov %p7488_p0 }
 0x1bc   : > { %6177 = vsyncadd (%p7493_p4), [#allocation30], 4294967200 }
 0x1bd   : > { %6179 = dma.done.wait (%p7494_p8), [#allocation33], 96   ;;  %p7495_p1 = pmov %p7488_p0 }
 0x1be   : > { %p7496_p3 = pmov %p7488_p0 }
 0x1bf   : > { %6181 = vsyncadd (%p7495_p1), [#allocation33], 4294967200 }
 0x1c0   : > { %6183 = dma.done.wait (%p7496_p3), [#allocation36], 64   ;;  %p7497_p12 = pmov %p7488_p0 }
 0x1c1   : > { %s7498_s5 = sld [smem:[#allocation53_spill]]  ;;  %p1437_p13 = scmp.lt.s32.totalorder %s6479_s26, 3  ;;  %v6271_v0 = vmov 0.0   ;;  %vm6272_vm0 = vmmov 0   ;;  %v1455_v1 = vld [vmem:[#allocation7] sm:$0xff]  ;;  %vm1470_vm1 = vcmask 1044480  }
 0x1c2   : > { %6185 = vsyncadd (%p7497_p12), [#allocation36], 4294967232  ;;  %4747 = vmatprep.subr.bf16.mxu0 %v6271_v0  ;;  %4749 = vmatprep.mubr.msk.bf16.mxu0 %vm6272_vm0, %v6271_v0  ;;  %s7499_s12 = sld [smem:[#allocation54_spill]]  ;;  %v1456_v2 = vld [vmem:[#allocation7 + $0x8] sm:$0x3]  ;;  %vm1466_vm2 = vcmask 80896  }
 0x1c3   : > { %s6811_s10 = scalar_select %p1437_p13, %s6479_s26, 3  ;;  %v1458_v4 = vpack.c.bf16 %v1456_v2, %v1455_v1  ;;  %v6273_v8 = vmov 0   ;;  %v4512_v11 = vld [vmem:[#allocation8] ss:$0 sm:$0xff]  ;;  %vm1709_vm3 = vcmask 261120   ;;  %vm1578_vm4 = vcmask 130048  }
 0x1c4   : > { %5243 = vset.pattern.permute.xlu1 %v6273_v8  ;;  %5244 = vset.pattern.permute.xlu0 %v6273_v8  ;;  %v4514_v20 = vld [vmem:[#allocation10] ss:$0 sm:$0xff]  ;;  %s7500_s14 = sld [smem:[#allocation64_spill]]  ;;  %v1566_v46 = vld [vmem:[#allocation11] sm:$0xff]  ;;  %v1567_v47 = vld [vmem:[#allocation11 + $0x8] sm:$0xff]  ;;  %s6274_s27 = smov 64  }
 0x1c5   : > { %s4667_s7 = sshll.u32 %s6811_s10, 4  ;;  %v1472_v6 = vsel %vm1470_vm1, %v1458_v4, 0  ;;  %s4668_s25 = sshll.u32 %s6811_s10, 5  ;;  %v1570_v48 = vpack.c.bf16 %v1567_v47, %v1566_v46  ;;  %vm2076_vm9 = vcmask 523264   ;;  %vm7001_vm10 = vmpackc.low %vm1709_vm3, %vm1709_vm3  ;;  %vm2473_vm11 = vcmask 1048320  }
 0x1c6   : > { %4748 = vmatpush3.bf16.msra.mxu0 %v1472_v6  ;;  %s7507_s3 = sld [smem:[#allocation66_spill]]  ;;  %s6275_s19 = smov 32  }
 0x1c7   : > { %s1441_s4 = scalar_lea.vmem %s7498_s5, %s4667_s7  ;;  %4753 = vmatprep.subr.bf16.mxu1 %v1570_v48  ;;  %s7508_s23 = sld [smem:[#allocation70_spill]] }
 0x1c8   : > { %v1453_v3 = vld [vmem:[%s1441_s4] sm:$0xff]  ;;  %v1454_v5 = vld [vmem:[%s1441_s4 + $0x8] sm:$0xff]  ;;  %s6818_s13 = scalar_lea.vmem %s7499_s12, %s4668_s25  ;;  %4754 = vmatpush3.bf16.msra.mxu1 %v1570_v48  ;;  %s7509_s22 = sld [smem:[#allocation72_spill]] }
 0x1c9   : > { %v1457_v7 = vpack.c.bf16 %v1454_v5, %v1453_v3  ;;  %v1515_v9 = vld [vmem:[%s6818_s13] sm:$0xff]  ;;  %v1516_v10 = vld [vmem:[%s6818_s13 + $0x8] sm:$0xff]  ;;  %v1518_v44 = vld [vmem:[%s6818_s13 + $0x18] sm:$0xff]  ;;  %s7510_s17 = sld [smem:[#allocation74_spill]]  ;;  %s4669_s5 = sshll.u32 %s6811_s10, 3 }
 0x1ca   : > { %1522 = vperm.xlu1 %5243, %v1515_v9   ;;  %v1517_v45 = vld [vmem:[%s6818_s13 + $0x10] sm:$0xff]  ;;  %v1821_v49 = vld [vmem:[%s7500_s14 + $0x28] sm:$0xff]  ;;  %v1823_v50 = vld [vmem:[%s7500_s14 + $0x38] sm:$0xff]  ;;  %s7513_s20 = sld [smem:[#allocation56_spill]]  ;;  %s6276_s12 = smov 96  }
 0x1cb   : > { %4750 = vmatmul.mubr.msk.bf16.vlgmr.msra.gmra.mxu0 %vm1466_vm2, %v1457_v7  ;;  %v1828_v51 = vpack.c.bf16 %v1823_v50, %v1821_v49  ;;  %v1820_v9 = vld [vmem:[%s7500_s14 + $0x20] sm:$0xff]  ;;  %s7515_s10 = sld [smem:[#allocation82_spill]]  ;;  %s4505_s25 = sshll.u32 %s6744_s21, 3 }
 0x1cc   : > { %s7517_s4 = sld [smem:[#allocation84_spill]]  ;;  %s4663_s13 = sshll.u32 %s6479_s26, 7 }
 0x1cd   : > { %1856 = vmatprep.subr.bf16.mxu1 %v1828_v51  ;;  %p7518_p5 = scmp.ne.s32.totalorder %s7469_s8, 0  ;;  %s6277_s26 = smov [#allocation38]  }
 0x1ce   : > { %1527 = vperm.xlu1 %5243, %v1516_v10   ;;  %v1822_v10 = vld [vmem:[%s7500_s14 + $0x30] sm:$0xff] }
 0x1d0   : > { %s7053_s7 = scalar_lea.vmem %s7513_s20, %s4669_s5  ;;  %s4077_s5 = scalar_lea.sflag [#allocation4], %s6744_s21 }
 0x1d2   : > { %s7353_s20 = scalar_lea.hbm %s7517_s4, %s4663_s13 }
 0x245   : > { %v1523_v21 = vpop.permute.xlu1 %1522 }
 0x246   : > { %v1546_v22 = vsub.f32 %v1523_v21, %v4514_v20 }
 0x248   : > { %v1550_v23 = vmul.f32 %v1546_v22, %v1546_v22  ;;  %v1816_v22 = vld [vmem:[%s7500_s14] sm:$0xff] }
 0x249   : > { %v1528_v24 = vpop.permute.xlu1 %1527 }
 0x24a   : > { %v1554_v25 = vmul.f32 -1.875, %v1550_v23  ;;  %v1547_v26 = vsub.f32 %v1528_v24, %v4514_v20  ;;  %v1818_v23 = vld [vmem:[%s7500_s14 + $0x10] sm:$0xff] }
 0x24c   : > { %v1558_v27 = vmul.f32 1.442695, %v1554_v25  ;;  %v1551_v28 = vmul.f32 %v1547_v26, %v1547_v26  ;;  %v1825_v26 = vpack.c.bf16 %v1818_v23, %v1816_v22 }
 0x24e   : > { %v1555_v29 = vmul.f32 -1.875, %v1551_v28  ;;  %5293 = vpow2.f32 %v1558_v27  ;;  %v4522_v27 = vld [vmem:[#allocation19] ss:$0 sm:$0xff] }
 0x250   : > { %v1560_v30 = vmul.f32 1.442695, %v1555_v29 }
 0x252   : > { %5295 = vpow2.f32 %v1560_v30 }
 0x25b   : > { %v5294_v31 = vpop.eup %5293 }
 0x25f   : > { %v5296_v32 = vpop.eup %5295 }
 0x260   : > { %v1568_v33 = vpack.c.bf16 %v5296_v32, %v5294_v31  ;;  %v1696_v31 = vld [vmem:[#allocation14 + $0x10] sm:$0xff]  ;;  %v1697_v32 = vld [vmem:[#allocation14 + $0x18] sm:$0xff] }
 0x262   : > { %4755 = vmatprep.mubr.msk.bf16.mxu1 %vm1578_vm4, %v1568_v33  ;;  %v1701_v33 = vpack.c.bf16 %v1697_v32, %v1696_v31 }
 0x264   : > { %4759 = vmatprep.subr.bf16.mxu0 %v1701_v33 }
 0x265   : > { %4760 = vmatpush3.bf16.msra.mxu0 %v1701_v33 }
 0x28b   : > { %v1508_v12 = vpop.f32.mrf.mxu0 }
 0x28c   : > { %v6823_v13 = vadd.f32 %v4512_v11, %v1508_v12  ;;  %v1819_v12 = vld [vmem:[%s7500_s14 + $0x18] sm:$0xff] }
 0x28d   : > { %v4751_v14 = vpop.f32.mrf.mxu0 }
 0x28e   : > { %v1771_v15 = vsel %vm1709_vm3, %v6823_v13, 0.0 }
 0x28f   : > { %1772 = vadd.xlane.f32.xlu0 %v1771_v15  ;;  %v1511_v16 = vpop.f32.mrf.mxu0 }
 0x290   : > { %v6827_v17 = vadd.f32 %v4512_v11, %v1511_v16  ;;  %v1817_v11 = vld [vmem:[%s7500_s14 + $0x8] sm:$0xff] }
 0x291   : > { %v4752_v18 = vpop.f32.mrf.mxu0  ;;  %v1826_v21 = vpack.c.bf16 %v1819_v12, %v1817_v11 }
 0x292   : > { %v1774_v19 = vsel %vm1709_vm3, %v6827_v17, 0.0  ;;  %v1827_v18 = vpack.c.bf16 %v1822_v10, %v1820_v9 }
 0x293   : > { %1775 = vadd.xlane.f32.xlu0 %v1774_v19  ;;  %v4521_v19 = vld [vmem:[#allocation17] ss:$0 sm:$0xff] }
 0x318   : > { %v1773_v34 = vpop.xlane.xlu0 %1772 }
 0x319   : > { %v1778_v35 = vmul.f32 0.03125, %v1773_v34  ;;  %v1694_v34 = vld [vmem:[#allocation14] sm:$0xff] }
 0x31b   : > { %v1780_v36 = vsub.f32 %v6823_v13, %v1778_v35  ;;  %v1695_v35 = vld [vmem:[#allocation14 + $0x8] sm:$0xff] }
 0x31c   : > { %v1776_v37 = vpop.xlane.xlu0 %1775 }
 0x31d   : > { %v1779_v38 = vmul.f32 0.03125, %v1776_v37  ;;  %v1782_v39 = vmul.f32 %v1780_v36, %v1780_v36  ;;  %v1831_v37 = vlaneseq }
 0x31f   : > { %v1781_v40 = vsub.f32 %v6827_v17, %v1779_v38  ;;  %v1784_v41 = vsel %vm1709_vm3, %v1782_v39, 0.0  ;;  %v6853_v38 = vshrl.u32 %v1831_v37, 7  ;;  %v4515_v39 = vld [vmem:[#allocation13] ss:$0 sm:$0xff] }
 0x320   : > { %1785 = vadd.xlane.f32.xlu0 %v1784_v41 }
 0x321   : > { %v1783_v42 = vmul.f32 %v1781_v40, %v1781_v40  ;;  %v1837_v47 = vsub.s32 1, %v6853_v38 }
 0x323   : > { %v1787_v43 = vsel %vm1709_vm3, %v1783_v42, 0.0  ;;  %v1833_v42 = vsub.s32 0, %v6853_v38 }
 0x324   : > { %1788 = vadd.xlane.f32.xlu1 %v1787_v43 }
 0x335   : > { %1537 = vperm.xlu1 %5243, %v1518_v44   ;;  %v1829_v44 = vld [vmem:[#allocation20] sm:$0x3] }
 0x336   : > { %1532 = vperm.xlu0 %5244, %v1517_v45  }
 0x3a9   : > { %v1786_v52 = vpop.xlane.xlu0 %1785 }
 0x3aa   : > { %v1790_v55 = vmul.f32 0.03125, %v1786_v52  ;;  %v1834_v52 = vrot.slane %v1829_v44, %v1833_v42 }
 0x3ac   : > { %v1792_v61 = vadd.f32 1e-05, %v1790_v55 }
 0x3ad   : > { %v1789_v53 = vpop.xlane.xlu1 %1788 }
 0x3ae   : > { %v1791_v54 = vmul.f32 0.03125, %v1789_v53 }
 0x3b0   : > { %v1793_v56 = vadd.f32 1e-05, %v1791_v54 }
 0x3b1   : > { %v1538_v57 = vpop.permute.xlu1 %1537  ;;  %v1533_v58 = vpop.permute.xlu0 %1532 }
 0x3b2   : > { %v1549_v59 = vsub.f32 %v1538_v57, %v4514_v20  ;;  %v1548_v60 = vsub.f32 %v1533_v58, %v4514_v20  ;;  %5297 = vrsqrt.f32 %v1793_v56  ;;  %v1838_v57 = vrot.slane %v1829_v44, %v1837_v47 }
 0x3b3   : > { %5299 = vrsqrt.f32 %v1792_v61 }
 0x3b4   : > { %v1553_v62 = vmul.f32 %v1549_v59, %v1549_v59  ;;  %v1552_v63 = vmul.f32 %v1548_v60, %v1548_v60 }
 0x3b6   : > { %v1557_v1 = vmul.f32 -1.875, %v1553_v62  ;;  %v1556_v2 = vmul.f32 -1.875, %v1552_v63 }
 0x3b8   : > { %v1564_v3 = vmul.f32 1.442695, %v1557_v1  ;;  %v1562_v4 = vmul.f32 1.442695, %v1556_v2 }
 0x3ba   : > { %5301 = vpow2.f32 %v1564_v3 }
 0x3bb   : > { %5303 = vpow2.f32 %v1562_v4 }
 0x3bf   : > { %v5298_v5 = vpop.eup %5297 }
 0x3c0   : > { %v5300_v6 = vpop.eup %5299  ;;  %v1797_v7 = vmul.f32 %v5298_v5, %v1781_v40 }
 0x3c1   : > { %v1796_v15 = vmul.f32 %v5300_v6, %v1780_v36  ;;  %v1700_v36 = vpack.c.bf16 %v1695_v35, %v1694_v34 }
 0x3c2   : > { %v1806_v24 = vmul.f32 %v4521_v19, %v1797_v7 }
 0x3c3   : > { %v1805_v25 = vmul.f32 %v4521_v19, %v1796_v15  ;;  %4761 = vmatprep.subr.bf16.mxu0 %v1700_v36 }
 0x3c4   : > { %v1815_v28 = vadd.f32 %v4522_v27, %v1806_v24  ;;  %4762 = vmatpush3.bf16.msra.mxu0 %v1700_v36 }
 0x3c5   : > { %v1814_v29 = vadd.f32 %v4522_v27, %v1805_v25  ;;  %4767 = vmatprep.subr.bf16.mxu0 %v6271_v0 }
 0x3c7   : > { %v5302_v14 = vpop.eup %5301  ;;  %v1824_v30 = vpack.c.bf16 %v1815_v28, %v1814_v29 }
 0x3c8   : > { %v5304_v16 = vpop.eup %5303 }
 0x3c9   : > { %v1569_v20 = vpack.c.bf16 %v5302_v14, %v5304_v16 }
 0x3cb   : > { %4756 = vmatmul.mubr.msk.bf16.vlgmr.msra.gmra.mxu1 %vm1578_vm4, %v1569_v20 }
 0x3cc   : > { %1857 = vmatpush1.bf16.msra.mxu1 %v1827_v18  ;;  %1876 = vmatprep.mubr.bf16.mxu1 %v6273_v8 }
 0x3cd   : > { %1858 = vmatprep.subr.bf16.mxu1 %v1826_v21 }
 0x3d0   : > { %1859 = vmatpush1.bf16.msra.mxu1 %v1825_v26 }
 0x3d1   : > { %4773 = vmatprep.subr.bf16.mxu1 %v6271_v0 }
 0x3d3   : > { %4523 = vmatmul.mubr.msk.bf16.vlgmr.msra.gmra.mxu1 %vm1709_vm3, %v1824_v30 }
 0x3d4   : > { %4775 = vmatprep.mubr.msk.bf16.mxu1 %vm6272_vm0, %v6271_v0 }
 0x48b   : > { %v4757_v40 = vpop.f32.mrf.mxu1 }
 0x48c   : > { %v6855_v41 = vadd.f32 %v4757_v40, %v4515_v39 }
 0x48d   : > { %v1619_v43 = vpop.f32.mrf.mxu1 }
 0x48e   : > { %v1640_v45 = vand.u32 2147483647, %v6855_v41  ;;  %v6859_v46 = vadd.f32 %v4515_v39, %v1619_v43 }
 0x48f   : > { %v4758_v48 = vpop.f32.mrf.mxu1 }
 0x490   : > { %v1644_v49 = vsub.f32 0.0, %v1640_v45  ;;  %v1638_v50 = vand.u32 2147483647, %v6859_v46  ;;  %v6863_v51 = vadd.f32 %v4758_v48, %v4515_v39 }
 0x491   : > { %v1622_v53 = vpop.f32.mrf.mxu1 }
 0x492   : > { %v1650_v54 = vmul.f32 1.442695, %v1644_v49  ;;  %v1642_v55 = vsub.f32 0.0, %v1638_v50  ;;  %v1641_v56 = vand.u32 2147483647, %v6863_v51  ;;  %v6870_v58 = vadd.f32 %v4515_v39, %v1622_v53 }
 0x493   : > { %v1878_v59 = vpop.f32.mrf.mxu1 }
 0x494   : > { %5305 = vpow2.f32 %v1650_v54  ;;  %v1646_v60 = vmul.f32 1.442695, %v1642_v55  ;;  %v1645_v61 = vsub.f32 0.0, %v1641_v56  ;;  %v6872_v62 = vadd.f32 %v1878_v59, %v1834_v52 }
 0x495   : > { %v1639_v63 = vand.u32 2147483647, %v6870_v58  ;;  %v1880_v1 = vpop.f32.mrf.mxu1 }
 0x496   : > { %5307 = vpow2.f32 %v1646_v60  ;;  %v1652_v2 = vmul.f32 1.442695, %v1645_v61  ;;  %v4524_v3 = vmul.f32 -1.442695, %v6872_v62  ;;  %v6876_v4 = vadd.f32 %v1880_v1, %v1838_v57 }
 0x497   : > { %v1643_v5 = vsub.f32 0.0, %v1639_v63  ;;  %v1882_v6 = vpop.f32.mrf.mxu1  ;;  %v1636_v60 = vmax.f32 %v6855_v41, 0.0  ;;  %v1634_v61 = vmax.f32 %v6859_v46, 0.0 }
 0x498   : > { %5309 = vpow2.f32 %v1652_v2  ;;  %v4525_v7 = vmul.f32 -1.442695, %v6876_v4  ;;  %v6879_v9 = vadd.f32 %v1882_v6, %v1834_v52  ;;  %v1637_v6 = vmax.f32 %v6863_v51, 0.0 }
 0x499   : > { %v1648_v10 = vmul.f32 1.442695, %v1643_v5  ;;  %5311 = vpow2.f32 %v4524_v3  ;;  %v1884_v11 = vpop.f32.mrf.mxu1 }
 0x49a   : > { %5313 = vpow2.f32 %v4525_v7  ;;  %v4526_v12 = vmul.f32 -1.442695, %v6879_v9  ;;  %v6882_v14 = vadd.f32 %v1884_v11, %v1838_v57 }
 0x49b   : > { %5315 = vpow2.f32 %v1648_v10 }
 0x49c   : > { %5317 = vpow2.f32 %v4526_v12  ;;  %v4527_v15 = vmul.f32 -1.442695, %v6882_v14 }
 0x49e   : > { %5319 = vpow2.f32 %v4527_v15 }
 0x4a1   : > { %v5306_v16 = vpop.eup %5305 }
 0x4a2   : > { %v1672_v18 = vadd.f32 1.0, %v5306_v16  ;;  %v1675_v35 = vmul.f32 -0.5, %v5306_v16  ;;  %v1678_v50 = vand.u32 2147483647, %v5306_v16 }
 0x4a3   : > { %v5308_v19 = vpop.eup %5307 }
 0x4a4   : > { %v1654_v20 = vadd.f32 1.0, %v5308_v19  ;;  %5321 = vlog2.f32 %v1672_v18  ;;  %v1657_v34 = vmul.f32 -0.5, %v5308_v19  ;;  %v1676_v45 = vadd.f32 1.0, %v1675_v35 }
 0x4a5   : > { %v5310_v21 = vpop.eup %5309  ;;  %v1660_v48 = vand.u32 2147483647, %v5308_v19  ;;  %vm6898_vm7 = vcmp.lt.f32.partialorder %v1678_v50, 0.0004427343  ;;  %v1635_v18 = vmax.f32 %v6870_v58, 0.0  ;;  %v2061_v50 = vld [vmem:[%s7508_s23 + $0x28] sm:$0xff] }
 0x4a6   : > { %v5312_v22 = vpop.eup %5311  ;;  %5323 = vlog2.f32 %v1654_v20  ;;  %v1681_v23 = vadd.f32 1.0, %v5310_v21  ;;  %v1684_v33 = vmul.f32 -0.5, %v5310_v21  ;;  %v1658_v43 = vadd.f32 1.0, %v1657_v34 }
 0x4a7   : > { %v5314_v24 = vpop.eup %5313  ;;  %v1899_v25 = vadd.f32 1.0, %v5312_v22  ;;  %v1687_v44 = vand.u32 2147483647, %v5310_v21  ;;  %v1677_v3 = vmul.f32 %v5306_v16, %v1676_v45  ;;  %vm6891_vm6 = vcmp.lt.f32.partialorder %v1660_v48, 0.0004427343  ;;  %v2063_v45 = vld [vmem:[%s7508_s23 + $0x38] sm:$0xff] }
 0x4a8   : > { %v5316_v26 = vpop.eup %5315  ;;  %5325 = vlog2.f32 %v1681_v23  ;;  %v1900_v27 = vadd.f32 1.0, %v5314_v24  ;;  %v1685_v39 = vadd.f32 1.0, %v1684_v33  ;;  %v1659_v63 = vmul.f32 %v5308_v19, %v1658_v43  ;;  %v4530_v19 = vld [vmem:[#allocation23] ss:$0 sm:$0xff]  ;;  %v2060_v48 = vld [vmem:[%s7508_s23 + $0x20] sm:$0xff] }
 0x4a9   : > { %v5318_v28 = vpop.eup %5317  ;;  %v1663_v29 = vadd.f32 1.0, %v5316_v26  ;;  %5327 = vrcp.f32 %v1899_v25  ;;  %v1666_v36 = vmul.f32 -0.5, %v5316_v26  ;;  %v1669_v57 = vand.u32 2147483647, %v5316_v26 }
 0x4aa   : > { %v1901_v30 = vadd.f32 1.0, %v5318_v28  ;;  %v1686_v56 = vmul.f32 %v5310_v21, %v1685_v39  ;;  %vm6887_vm5 = vcmp.lt.f32.partialorder %v1687_v44, 0.0004427343  ;;  %v2062_v44 = vld [vmem:[%s7508_s23 + $0x30] sm:$0xff] }
 0x4ab   : > { %v5320_v31 = vpop.eup %5319  ;;  %5329 = vlog2.f32 %v1663_v29  ;;  %v1667_v53 = vadd.f32 1.0, %v1666_v36  ;;  %vm1670_vm8 = vcmp.lt.f32.partialorder %v1669_v57, 0.0004427343 }
 0x4ac   : > { %5331 = vrcp.f32 %v1900_v27  ;;  %v1902_v32 = vadd.f32 1.0, %v5320_v31 }
 0x4ad   : > { %5333 = vrcp.f32 %v1901_v30  ;;  %v1668_v12 = vmul.f32 %v5316_v26, %v1667_v53  ;;  %v4531_v30 = vld [vmem:[#allocation25] ss:$0 sm:$0xff] }
 0x4ae   : > { %5335 = vrcp.f32 %v1902_v32 }
 0x4b1   : > { %v5322_v37 = vpop.eup %5321 }
 0x4b2   : > { %v1674_v54 = vmul.f32 0.6931472, %v5322_v37  ;;  %v4529_v37 = vld [vmem:[#allocation22] ss:$0 sm:$0xff] }
 0x4b3   : > { %v5324_v40 = vpop.eup %5323 }
 0x4b4   : > { %v1656_v52 = vmul.f32 0.6931472, %v5324_v40  ;;  %v1680_v16 = vsel %vm6898_vm7, %v1677_v3, %v1674_v54 }
 0x4b5   : > { %v5326_v49 = vpop.eup %5325  ;;  %v1692_v28 = vadd.f32 %v1680_v16, %v1636_v60 }
 0x4b6   : > { %v1683_v55 = vmul.f32 0.6931472, %v5326_v49  ;;  %v5328_v59 = vpop.eup %5327  ;;  %v1662_v46 = vsel %vm6891_vm6, %v1659_v63, %v1656_v52  ;;  %v2068_v49 = vpack.c.bf16 %v2063_v45, %v2062_v44  ;;  %v2067_v52 = vpack.c.bf16 %v2061_v50, %v2060_v48  ;;  %v4536_v50 = vld [vmem:[#allocation28] ss:$0 sm:$0xff] }
 0x4b7   : > { %v6909_v23 = vmul.f32 %v5328_v59, %v6872_v62  ;;  %v1690_v25 = vadd.f32 %v1662_v46, %v1634_v61  ;;  %v2056_v46 = vld [vmem:[%s7508_s23] sm:$0xff] }
 0x4b8   : > { %v5330_v2 = vpop.eup %5329  ;;  %v1689_v7 = vsel %vm6887_vm5, %v1686_v56, %v1683_v55 }
 0x4b9   : > { %v5332_v10 = vpop.eup %5331  ;;  %v1665_v11 = vmul.f32 0.6931472, %v5330_v2  ;;  %v1693_v21 = vadd.f32 %v1689_v7, %v1637_v6  ;;  %v2058_v7 = vld [vmem:[%s7508_s23 + $0x10] sm:$0xff] }
 0x4ba   : > { %v5334_v15 = vpop.eup %5333  ;;  %v1912_v51 = vmul.f32 %v5332_v10, %v6876_v4  ;;  %v2059_v10 = vld [vmem:[%s7508_s23 + $0x18] sm:$0xff] }
 0x4bb   : > { %v5336_v20 = vpop.eup %5335  ;;  %v1671_v22 = vsel %vm1670_vm8, %v1668_v12, %v1665_v11  ;;  %v6912_v24 = vmul.f32 %v5334_v15, %v6879_v9  ;;  %v1699_v31 = vpack.c.bf16 %v1693_v21, %v1692_v28  ;;  %v2066_v41 = vpack.c.bf16 %v2059_v10, %v2058_v7  ;;  %v2057_v11 = vld [vmem:[%s7508_s23 + $0x8] sm:$0xff]  ;;  %v4538_v10 = vld [vmem:[#allocation29] ss:$0 sm:$0xff] }
 0x4bc   : > { %v1691_v26 = vadd.f32 %v1671_v22, %v1635_v18  ;;  %v1914_v27 = vmul.f32 %v5336_v20, %v6882_v14  ;;  %v1940_v58 = vmul.f32 %v4530_v19, %v1912_v51  ;;  %v4528_v14 = vld [vmem:[%s7507_s3] ss:$0 sm:$0xff]  ;;  %v2065_v12 = vpack.c.bf16 %v2057_v11, %v2056_v46  ;;  %v2125_v22 = vld [vmem:[%s7509_s22 + $0x10] sm:$0xff]  ;;  %v2124_v28 = vld [vmem:[%s7509_s22 + $0x8] sm:$0xff] }
 0x4bd   : > { %v2005_v4 = vpack.c.bf16 %v6912_v24, %v6909_v23  ;;  %v1922_v35 = vmul.f32 %v4528_v14, %v1912_v51 }
 0x4be   : > { %v1698_v29 = vpack.c.bf16 %v1691_v26, %v1690_v25  ;;  %v1941_v32 = vmul.f32 %v4530_v19, %v1914_v27  ;;  %v1949_v62 = vadd.f32 %v4531_v30, %v1940_v58  ;;  %v1923_v33 = vmul.f32 %v4528_v14, %v1914_v27  ;;  %v2126_v25 = vld [vmem:[%s7509_s22 + $0x18] sm:$0xff]  ;;  %v2123_v27 = vld [vmem:[%s7509_s22] sm:$0xff] }
 0x4bf   : > { %2007 = vrot.lane.b32.xlu0 %v2005_v4, %s6274_s27  ;;  %v1931_v40 = vadd.f32 %v4529_v37, %v1922_v35  ;;  %v2129_v26 = vpack.c.bf16 %v2126_v25, %v2125_v22  ;;  %v2128_v58 = vpack.c.bf16 %v2124_v28, %v2123_v27  ;;  %v2184_v4 = vld [vmem:[%s7510_s17 + $0x18] sm:$0xff]  ;;  %v2181_v35 = vld [vmem:[%s7510_s17] sm:$0xff] }
 0x4c0   : > { %4763 = vmatprep.mubr.msk.bf16.mxu0 %vm1709_vm3, %v1698_v29  ;;  %v1950_v9 = vadd.f32 %v4531_v30, %v1941_v32  ;;  %v1932_v39 = vadd.f32 %v4529_v37, %v1923_v33  ;;  %v4534_v29 = vld [vmem:[#allocation26] ss:$0 sm:$0xff] }
 0x4c1   : > { %4764 = vmatmul.mubr.msk.bf16.vlgmr.msra.gmra.mxu0 %vm1709_vm3, %v1699_v31 }
 0x4c2   : > { %4769 = vmatprep.mubr.msk.bf16.mxu0 %vm6272_vm0, %v6271_v0  ;;  %v1952_v34 = vpack.c.bf16 %v1950_v9, %v1949_v62  ;;  %v1951_v43 = vpack.c.bf16 %v1932_v39, %v1931_v40  ;;  %v4518_v9 = vld [vmem:[#allocation16] ss:$0 sm:$0xff] }
 0x4c4   : > { %v1957_v36 = vsel %vm1578_vm4, %v1952_v34, 0 }
 0x4c5   : > { %4768 = vmatpush3.bf16.xpose.msra.mxu0 %v1957_v36  ;;  %v2182_v36 = vld [vmem:[%s7510_s17 + $0x8] sm:$0xff] }
 0x4c6   : > { %4779 = vmatprep.subr.bf16.mxu0 %v6271_v0  ;;  %v2187_v44 = vpack.c.bf16 %v2182_v36, %v2181_v35 }
 0x4cc   : > { %4770 = vmatmul.mubr.msk.bf16.vlgmr.msra.gmra.mxu0 %vm1578_vm4, %v1951_v43 }
 0x4cd   : > { %4787 = vmatprep.mubr.msk.bf16.mxu0 %vm6272_vm0, %v6271_v0  ;;  %4780 = vmatpush3.bf16.msra.mxu0 %v2068_v49 }
 0x4ce   : > { %4781 = vmatprep.subr.bf16.mxu0 %v6271_v0 }
 0x4d1   : > { %4782 = vmatpush3.bf16.msra.mxu0 %v2067_v52 }
 0x4d2   : > { %4783 = vmatprep.subr.bf16.mxu0 %v6271_v0 }
 0x4d5   : > { %4784 = vmatpush3.bf16.msra.mxu0 %v2066_v41 }
 0x4d6   : > { %4785 = vmatprep.subr.bf16.mxu0 %v6271_v0 }
 0x4d9   : > { %4786 = vmatpush3.bf16.msra.mxu0 %v2065_v12 }
 0x531   : > { %v2008_v53 = vpop.permute.xlu0 %2007 }
 0x532   : > { %4774 = vmatpush3.bf16.msra.mxu1 %v2008_v53 }
 0x533   : > { %4791 = vmatprep.subr.bf16.mxu1 %v6271_v0 }
 0x581   : > { %v6935_v54 = vpop.f32.mrf.mxu0 }
 0x583   : > { %v1750_v55 = vpop.f32.mrf.mxu0 }
 0x584   : > { %v6967_v40 = vadd.f32 %v4518_v9, %v1750_v55 }
 0x585   : > { %v6937_v56 = vpop.f32.mrf.mxu0 }
 0x587   : > { %v1753_v57 = vpop.f32.mrf.mxu0 }
 0x588   : > { %v6957_v33 = vadd.f32 %v4518_v9, %v1753_v57 }
 0x58a   : > { %v2185_v45 = vpack.c.bf16 %v6957_v33, %v6967_v40 }
 0x58c   : > { %v1993_v59 = vpop.f32.mrf.mxu0 }
 0x58d   : > { %v2000_v61 = vmax.f32 %v1993_v59, 0.0 }
 0x58e   : > { %v4771_v60 = vpop.f32.mrf.mxu0 }
 0x58f   : > { %v2002_v3 = vmul.f32 %v2000_v61, %v2000_v61 }
 0x590   : > { %v1996_v63 = vpop.f32.mrf.mxu0 }
 0x591   : > { %v2001_v1 = vmax.f32 %v1996_v63, 0.0 }
 0x592   : > { %v4772_v2 = vpop.f32.mrf.mxu0 }
 0x593   : > { %v2003_v5 = vmul.f32 %v2001_v1, %v2001_v1 }
 0x595   : > { %v2004_v6 = vpack.c.bf16 %v2003_v5, %v2002_v3  ;;  %v7012_v5 = vld [vmem:[%s6748_s9 + $0x8] sm:$0xff]  }
 0x597   : > { %4776 = vmatmul.mubr.msk.bf16.vlgmr.msra.gmra.mxu1 %vm1578_vm4, %v2004_v6 }
 0x598   : > { %4795 = vmatprep.mubr.msk.bf16.mxu1 %vm6272_vm0, %v6271_v0  ;;  %4792 = vmatpush3.bf16.msra.mxu1 %v2129_v26 }
 0x599   : > { %4793 = vmatprep.subr.bf16.mxu1 %v6271_v0 }
 0x59c   : > { %4794 = vmatpush3.bf16.msra.mxu1 %v2128_v58 }
 0x657   : > { %v2047_v15 = vpop.f32.mrf.mxu1 }
 0x658   : > { %v2054_v51 = vmul.f32 %v2047_v15, %v6909_v23  ;;  %v2183_v23 = vld [vmem:[%s7510_s17 + $0x10] sm:$0xff] }
 0x659   : > { %v4777_v16 = vpop.f32.mrf.mxu1 }
 0x65b   : > { %v2050_v18 = vpop.f32.mrf.mxu1 }
 0x65c   : > { %v2055_v19 = vmul.f32 %v2050_v18, %v6912_v24  ;;  %v2188_v24 = vpack.c.bf16 %v2184_v4, %v2183_v23 }
 0x65d   : > { %v4778_v20 = vpop.f32.mrf.mxu1 }
 0x65e   : > { %v2064_v21 = vpack.c.bf16 %v2055_v19, %v2054_v51  ;;  %4799 = vmatprep.subr.bf16.mxu1 %v2188_v24 }
 0x660   : > { %4788 = vmatmul.mubr.msk.bf16.vlgmr.msra.gmra.mxu0 %vm2076_vm9, %v2064_v21 }
 0x720   : > { %v2114_v30 = vpop.f32.mrf.mxu0 }
 0x721   : > { %v2115_v32 = vadd.f32 %v4534_v29, %v2114_v30 }
 0x722   : > { %v4789_v31 = vpop.f32.mrf.mxu0 }
 0x723   : > { %v6962_v37 = vadd.f32 %v2115_v32, %v6823_v13  ;;  %v6976_v13 = vadd.f32 %v6937_v56, %v4518_v9  ;;  %v6992_v56 = vld [vmem:[%s6748_s9] sm:$0xff]  }
 0x724   : > { %v2117_v62 = vpop.f32.mrf.mxu0  ;;  %4811 = vmatprep.mubr.msk.bf16.mxu0 %vm1709_vm3, %v6992_v56 }
 0x725   : > { %v2118_v14 = vadd.f32 %v4534_v29, %v2117_v62 }
 0x726   : > { %v4790_v34 = vpop.f32.mrf.mxu0 }
 0x727   : > { %v6965_v39 = vadd.f32 %v2118_v14, %v6827_v17  ;;  %v6979_v17 = vadd.f32 %v6935_v54, %v4518_v9 }
 0x729   : > { %v2127_v43 = vpack.c.bf16 %v6965_v39, %v6962_v37  ;;  %v2186_v48 = vpack.c.bf16 %v6976_v13, %v6979_v17 }
 0x72b   : > { %4796 = vmatmul.mubr.msk.bf16.vlgmr.msra.gmra.mxu1 %vm1709_vm3, %v2127_v43 }
 0x72c   : > { %4800 = vmatpush3.bf16.msra.mxu1 %v2188_v24  ;;  %4803 = vmatprep.mubr.msk.bf16.mxu1 %vm1709_vm3, %v2185_v45 }
 0x72d   : > { %4801 = vmatprep.subr.bf16.mxu1 %v2187_v44 }
 0x730   : > { %4802 = vmatpush3.bf16.msra.mxu1 %v2187_v44 }
 0x731   : > { %4815 = vmatprep.subr.bf16.mxu1 %v6271_v0 }
 0x733   : > { %4804 = vmatmul.mubr.msk.bf16.vlgmr.msra.gmra.mxu1 %vm1709_vm3, %v2186_v48 }
 0x734   : > { %4819 = vmatprep.mubr.msk.bf16.mxu1 %vm6272_vm0, %v6271_v0 }
 0x7eb   : > { %v2174_v49 = vpop.f32.mrf.mxu1 }
 0x7ec   : > { %v6987_v55 = vadd.f32 %v4536_v50, %v2174_v49 }
 0x7ed   : > { %v4797_v52 = vpop.f32.mrf.mxu1 }
 0x7ef   : > { %v2177_v53 = vpop.f32.mrf.mxu1 }
 0x7f0   : > { %v6989_v54 = vadd.f32 %v4536_v50, %v2177_v53 }
 0x7f1   : > { %v4798_v57 = vpop.f32.mrf.mxu1 }
 0x7f2   : > { %v5245_v59 = vpack.i.bf16 %v6989_v54, %v6987_v55  ;;  %v2261_v3 = vpack.c.bf16 %v6989_v54, %v6987_v55 }
 0x7f3   : > { %v4805_v6 = vpop.f32.mrf.mxu1 }
 0x7f4   : > { %5246 = vrot.lane.b32.xlu0 %v5245_v59, %s6274_s27  ;;  %v2245_v46 = vadd.f32 %v4805_v6, %v4538_v10 }
 0x7f5   : > { %v2236_v7 = vpop.f32.mrf.mxu1 }
 0x7f6   : > { %v2237_v12 = vadd.f32 %v4538_v10, %v2236_v7 }
 0x7f7   : > { %v4806_v41 = vpop.f32.mrf.mxu1 }
 0x7f8   : > { %v2248_v51 = vadd.f32 %v4806_v41, %v4538_v10 }
 0x7f9   : > { %v2239_v16 = vpop.f32.mrf.mxu1 }
 0x866   : > { %v5247_v60 = vpop.permute.xlu0 %5246 }
 0x867   : > { %v5249_v61 = vunpack.i.h.bf16 %v5247_v60  ;;  %v5248_v63 = vunpack.i.l.bf16 %v5247_v60 }
 0x869   : > { %v4544_v2 = vpack.c.bf16 %v5249_v61, %v5248_v63 }
 0x86b   : > { %4807 = vmatprep.subr.msk.bf16.mxu0 %vm7001_vm10, %v4544_v2 }
 0x86c   : > { %4808 = vmatpush3.bf16.msk.msra.mxu0 %vm7001_vm10, %v4544_v2 }
 0x86d   : > { %4809 = vmatprep.subr.bf16.mxu0 %v2261_v3 }
 0x870   : > { %4810 = vmatpush3.bf16.msra.mxu0 %v2261_v3 }
 0x873   : > { %4812 = vmatmul.mubr.msk.bf16.vlgmr.msra.gmra.mxu0 %vm1709_vm3, %v7012_v5 }
 0x874   : > { %2751 = vmatprep.mubr.bf16.mxu0 %v6273_v8  ;;  %v2240_v8 = vadd.f32 %v4538_v10, %v2239_v16 }
 0x933   : > { %v7017_v11 = vpop.f32.mrf.mxu0 }
 0x934   : > { %v2330_v15 = vadd.f32 %v7017_v11, %v2245_v46 }
 0x935   : > { %v7020_v18 = vpop.f32.mrf.mxu0 }
 0x936   : > { %v4550_v19 = vmul.f32 -1.442695, %v2330_v15  ;;  %v2328_v20 = vadd.f32 %v7020_v18, %v2237_v12  ;;  %v2542_v29 = vsel %vm1709_vm3, %v2330_v15, 0.0 }
 0x937   : > { %v7023_v21 = vpop.f32.mrf.mxu0 }
 0x938   : > { %5337 = vpow2.f32 %v4550_v19  ;;  %v4548_v22 = vmul.f32 -1.442695, %v2328_v20  ;;  %v2331_v25 = vadd.f32 %v7023_v21, %v2248_v51  ;;  %v2539_v58 = vsel %vm1709_vm3, %v2328_v20, 0.0 }
 0x939   : > { %v7026_v26 = vpop.f32.mrf.mxu0 }
 0x93a   : > { %5339 = vpow2.f32 %v4548_v22  ;;  %v4551_v27 = vmul.f32 -1.442695, %v2331_v25  ;;  %v2329_v28 = vadd.f32 %v7026_v26, %v2240_v8  ;;  %v2544_v31 = vsel %vm1709_vm3, %v2331_v25, 0.0 }
 0x93c   : > { %5341 = vpow2.f32 %v4551_v27  ;;  %v4549_v23 = vmul.f32 -1.442695, %v2329_v28  ;;  %v2540_v4 = vsel %vm1709_vm3, %v2329_v28, 0.0 }
 0x93d   : > { %v2541_v24 = vadd.f32 %v2540_v4, %v2539_v58 }
 0x93e   : > { %5343 = vpow2.f32 %v4549_v23 }
 0x93f   : > { %v2543_v30 = vadd.f32 %v2542_v29, %v2541_v24 }
 0x941   : > { %v2545_v32 = vadd.f32 %v2544_v31, %v2543_v30 }
 0x943   : > { %v2546_v62 = vrot.slane %v2545_v32, 4 }
 0x945   : > { %v5338_v9 = vpop.eup %5337  ;;  %v2547_v14 = vadd.f32 %v2546_v62, %v2545_v32 }
 0x946   : > { %v2346_v34 = vadd.f32 1.0, %v5338_v9 }
 0x947   : > { %v5340_v35 = vpop.eup %5339  ;;  %v2548_v36 = vrot.slane %v2547_v14, 2 }
 0x948   : > { %5345 = vrcp.f32 %v2346_v34  ;;  %v2344_v43 = vadd.f32 1.0, %v5340_v35 }
 0x949   : > { %v5342_v44 = vpop.eup %5341  ;;  %v2549_v45 = vadd.f32 %v2548_v36, %v2547_v14 }
 0x94a   : > { %v2347_v48 = vadd.f32 1.0, %v5342_v44  ;;  %5347 = vrcp.f32 %v2344_v43 }
 0x94b   : > { %v5344_v49 = vpop.eup %5343  ;;  %v2550_v50 = vrot.slane %v2549_v45, 1 }
 0x94c   : > { %5349 = vrcp.f32 %v2347_v48  ;;  %v2345_v52 = vadd.f32 1.0, %v5344_v49 }
 0x94d   : > { %v2551_v53 = vadd.f32 %v2550_v50, %v2549_v45 }
 0x94e   : > { %5351 = vrcp.f32 %v2345_v52 }
 0x94f   : > { %v2552_v57 = vmul.f32 0.03125, %v2551_v53 }
 0x951   : > { %v2553_v59 = vsub.f32 %v2328_v20, %v2552_v57  ;;  %v2554_v60 = vsub.f32 %v2329_v28, %v2552_v57  ;;  %v2555_v61 = vsub.f32 %v2330_v15, %v2552_v57  ;;  %v2556_v63 = vsub.f32 %v2331_v25, %v2552_v57 }
 0x953   : > { %v2557_v2 = vmul.f32 %v2553_v59, %v2553_v59  ;;  %v2558_v3 = vmul.f32 %v2554_v60, %v2554_v60  ;;  %v2559_v6 = vmul.f32 %v2555_v61, %v2555_v61  ;;  %v2560_v10 = vmul.f32 %v2556_v63, %v2556_v63 }
 0x955   : > { %v5346_v7 = vpop.eup %5345  ;;  %v2561_v41 = vsel %vm1709_vm3, %v2557_v2, 0.0  ;;  %v2562_v46 = vsel %vm1709_vm3, %v2558_v3, 0.0  ;;  %v2564_v16 = vsel %vm1709_vm3, %v2559_v6, 0.0  ;;  %v2566_v15 = vsel %vm1709_vm3, %v2560_v10, 0.0  ;;  %v7065_v3 = vld [vmem:[%s7053_s7] sm:$0xff]  }
 0x956   : > { %v2563_v12 = vadd.f32 %v2562_v46, %v2561_v41  ;;  %2364 = vrot.lane.b32.xlu1 %v5346_v7, %s6275_s19 }
 0x957   : > { %v5348_v51 = vpop.eup %5347 }
 0x958   : > { %v2565_v19 = vadd.f32 %v2564_v16, %v2563_v12 }
 0x959   : > { %v5350_v20 = vpop.eup %5349 }
 0x95a   : > { %v2567_v8 = vadd.f32 %v2566_v15, %v2565_v19  ;;  %2366 = vrot.lane.b32.xlu0 %v5350_v20, %s6275_s19  ;;  %2360 = vrot.lane.b32.xlu1 %v5348_v51, %s6275_s19 }
 0x95b   : > { %v5352_v25 = vpop.eup %5351 }
 0x95c   : > { %v2568_v22 = vrot.slane %v2567_v8, 4 }
 0x95e   : > { %v2569_v27 = vadd.f32 %v2568_v22, %v2567_v8  ;;  %2362 = vrot.lane.b32.xlu0 %v5352_v25, %s6275_s19  ;;  %v4554_v8 = vld [vmem:[#allocation31] ss:$0 sm:$0xff]  ;;  %v4555_v25 = vld [vmem:[#allocation32] ss:$0 sm:$0xff] }
 0x960   : > { %v2570_v28 = vrot.slane %v2569_v27, 2 }
 0x962   : > { %v2571_v58 = vadd.f32 %v2570_v28, %v2569_v27 }
 0x964   : > { %v2572_v23 = vrot.slane %v2571_v58, 1 }
 0x966   : > { %v2573_v4 = vadd.f32 %v2572_v23, %v2571_v58 }
 0x968   : > { %v2574_v24 = vmul.f32 0.03125, %v2573_v4 }
 0x96a   : > { %v2575_v29 = vadd.f32 1e-05, %v2574_v24 }
 0x96c   : > { %5353 = vrsqrt.f32 %v2575_v29 }
 0x979   : > { %v5354_v30 = vpop.eup %5353 }
 0x97a   : > { %v7041_v31 = vmul.f32 %v5354_v30, %v2554_v60  ;;  %v7043_v32 = vmul.f32 %v5354_v30, %v2555_v61  ;;  %v7045_v62 = vmul.f32 %v5354_v30, %v2556_v63  ;;  %v7047_v9 = vmul.f32 %v5354_v30, %v2553_v59 }
 0x9c8   : > { %v2365_v14 = vpop.permute.xlu1 %2364 }
 0x9c9   : > { %v2374_v35 = vmul.f32 %v7017_v11, %v2365_v14 }
 0x9cc   : > { %v2367_v34 = vpop.permute.xlu0 %2366  ;;  %v2361_v43 = vpop.permute.xlu1 %2360 }
 0x9cd   : > { %v2375_v36 = vmul.f32 %v7023_v21, %v2367_v34  ;;  %v2372_v48 = vmul.f32 %v2361_v43, %v7020_v18 }
 0x9cf   : > { %v5250_v44 = vpack.i.bf16 %v2375_v36, %v2374_v35 }
 0x9d0   : > { %v2363_v45 = vpop.permute.xlu0 %2362 }
 0x9d1   : > { %v2373_v49 = vmul.f32 %v2363_v45, %v7026_v26  ;;  %5251 = vrot.lane.b32.xlu1 %v5250_v44, %s6276_s12 }
 0x9d3   : > { %v5255_v50 = vpack.i.bf16 %v2373_v49, %v2372_v48 }
 0x9d5   : > { %5256 = vrot.lane.b32.xlu0 %v5255_v50, %s6276_s12 }
 0xa43   : > { %v5252_v11 = vpop.permute.xlu1 %5251 }
 0xa44   : > { %v5254_v52 = vunpack.i.h.bf16 %v5252_v11  ;;  %v5253_v21 = vunpack.i.l.bf16 %v5252_v11 }
 0xa46   : > { %v2395_v53 = vsel %vm1709_vm3, %v5254_v52, %v2367_v34  ;;  %v2394_v57 = vsel %vm1709_vm3, %v5253_v21, %v2365_v14 }
 0xa47   : > { %v2397_v59 = vpack.c.bf16 %v2395_v53, %v2394_v57  ;;  %v5257_v60 = vpop.permute.xlu0 %5256 }
 0xa48   : > { %v5259_v61 = vunpack.i.h.bf16 %v5257_v60  ;;  %v5258_v18 = vunpack.i.l.bf16 %v5257_v60 }
 0xa49   : > { %4816 = vmatpush3.bf16.msra.mxu1 %v2397_v59 }
 0xa4a   : > { %v2393_v26 = vsel %vm1709_vm3, %v5259_v61, %v2363_v45  ;;  %v2392_v63 = vsel %vm1709_vm3, %v5258_v18, %v2361_v43  ;;  %4817 = vmatprep.subr.bf16.mxu1 %v6271_v0 }
 0xa4b   : > { %v2396_v2 = vpack.c.bf16 %v2393_v26, %v2392_v63 }
 0xa4d   : > { %4818 = vmatpush3.bf16.msra.mxu1 %v2396_v2 }
 0xa4e   : > { %4823 = vmatprep.subr.bf16.mxu1 %v6271_v0 }
 0xa50   : > { %4820 = vmatmul.mubr.msk.bf16.vlgmr.msra.gmra.mxu1 %vm1709_vm3, %v7065_v3 }
 0xa51   : > { %4825 = vmatprep.mubr.msk.bf16.mxu1 %vm6272_vm0, %v6271_v0 }
 0xb10   : > { %v2440_v6 = vpop.f32.mrf.mxu1 }
 0xb11   : > { %v2447_v7 = vadd.f32 1e-06, %v2440_v6 }
 0xb12   : > { %v4821_v10 = vpop.f32.mrf.mxu1 }
 0xb13   : > { %5355 = vrcp.f32 %v2447_v7 }
 0xb14   : > { %v2443_v41 = vpop.f32.mrf.mxu1 }
 0xb15   : > { %v2448_v46 = vadd.f32 1e-06, %v2443_v41 }
 0xb16   : > { %v4822_v12 = vpop.f32.mrf.mxu1 }
 0xb17   : > { %5357 = vrcp.f32 %v2448_v46 }
 0xb20   : > { %v5356_v16 = vpop.eup %5355 }
 0xb21   : > { %2453 = vrot.lane.b32.xlu1 %v5356_v16, %s6276_s12 }
 0xb24   : > { %v5358_v51 = vpop.eup %5357 }
 0xb25   : > { %2455 = vrot.lane.b32.xlu0 %v5358_v51, %s6276_s12 }
 0xb93   : > { %v2454_v19 = vpop.permute.xlu1 %2453 }
 0xb94   : > { %v2459_v20 = vmul.f32 %v2454_v19, %v2440_v6 }
 0xb96   : > { %2463 = vrot.lane.b32.xlu1 %v2459_v20, %s6276_s12 }
 0xb97   : > { %v2456_v15 = vpop.permute.xlu0 %2455 }
 0xb98   : > { %v2460_v22 = vmul.f32 %v2456_v15, %v2443_v41 }
 0xb9a   : > { %2465 = vrot.lane.b32.xlu0 %v2460_v22, %s6276_s12  ;;  %2508 = vrot.lane.b32.xlu1 %v4554_v8, %s6276_s12 }
 0xb9e   : > { %2518 = vrot.lane.b32.xlu0 %v4555_v25, %s6276_s12 }
 0xc08   : > { %v2464_v27 = vpop.permute.xlu1 %2463 }
 0xc09   : > { %v2469_v28 = vadd.f32 %v2464_v27, %v6987_v55 }
 0xc0b   : > { %v2474_v4 = vsel %vm2473_vm11, %v2469_v28, 0.0 }
 0xc0c   : > { %v2466_v58 = vpop.permute.xlu0 %2465  ;;  %v2509_v63 = vpop.permute.xlu1 %2508 }
 0xc0d   : > { %v2470_v23 = vadd.f32 %v2466_v58, %v6989_v54 }
 0xc0f   : > { %v2475_v24 = vsel %vm2473_vm11, %v2470_v23, 0.0 }
 0xc10   : > { %v2476_v29 = vadd.f32 %v2475_v24, %v2474_v4  ;;  %v2519_v7 = vpop.permute.xlu0 %2518 }
 0xc12   : > { %v2477_v30 = vrot.slane %v2476_v29, 4 }
 0xc14   : > { %v2478_v14 = vadd.f32 %v2477_v30, %v2476_v29 }
 0xc16   : > { %v2479_v34 = vrot.slane %v2478_v14, 2 }
 0xc18   : > { %v2480_v35 = vadd.f32 %v2479_v34, %v2478_v14 }
 0xc1a   : > { %v2481_v36 = vrot.slane %v2480_v35, 1 }
 0xc1c   : > { %v2482_v43 = vadd.f32 %v2481_v36, %v2480_v35 }
 0xc1e   : > { %v2484_v44 = vmul.f32 0.0625, %v2482_v43 }
 0xc20   : > { %v2486_v45 = vsub.f32 %v2470_v23, %v2484_v44  ;;  %v2485_v48 = vsub.f32 %v2469_v28, %v2484_v44 }
 0xc22   : > { %v2488_v49 = vmul.f32 %v2486_v45, %v2486_v45  ;;  %v2487_v55 = vmul.f32 %v2485_v48, %v2485_v48 }
 0xc24   : > { %v2490_v50 = vsel %vm2473_vm11, %v2488_v49, 0.0  ;;  %v2489_v54 = vsel %vm2473_vm11, %v2487_v55, 0.0  ;;  %v4571_v49 = vld [vmem:[%s7500_s14 + $0x68] sm:$0xff]  ;;  %v4573_v55 = vld [vmem:[%s7500_s14 + $0x78] sm:$0xff] }
 0xc25   : > { %v2491_v11 = vadd.f32 %v2490_v50, %v2489_v54  ;;  %v2702_v50 = vpack.c.bf16 %v4573_v55, %v4571_v49  ;;  %v4570_v54 = vld [vmem:[%s7500_s14 + $0x60] sm:$0xff] }
 0xc27   : > { %v2492_v52 = vrot.slane %v2491_v11, 4  ;;  %2731 = vmatprep.subr.bf16.mxu0 %v2702_v50 }
 0xc29   : > { %v2493_v21 = vadd.f32 %v2492_v52, %v2491_v11  ;;  %v4572_v11 = vld [vmem:[%s7500_s14 + $0x70] sm:$0xff] }
 0xc2a   : > { %v2701_v52 = vpack.c.bf16 %v4572_v11, %v4570_v54 }
 0xc2b   : > { %v2494_v53 = vrot.slane %v2493_v21, 2 }
 0xc2c   : > { %2732 = vmatpush1.bf16.msra.mxu0 %v2701_v52 }
 0xc2d   : > { %v2495_v57 = vadd.f32 %v2494_v53, %v2493_v21  ;;  %v4567_v21 = vld [vmem:[%s7500_s14 + $0x48] sm:$0xff]  ;;  %v4569_v53 = vld [vmem:[%s7500_s14 + $0x58] sm:$0xff] }
 0xc2f   : > { %v2496_v59 = vrot.slane %v2495_v57, 1 }
 0xc31   : > { %v2497_v60 = vadd.f32 %v2496_v59, %v2495_v57  ;;  %v4566_v57 = vld [vmem:[%s7500_s14 + $0x40] sm:$0xff]  ;;  %v2700_v59 = vpack.c.bf16 %v4569_v53, %v4567_v21  ;;  %v4582_v53 = vld [vmem:[#allocation23 + $0x1] ss:$0 sm:$0xff] }
 0xc33   : > { %v2498_v61 = vmul.f32 0.0625, %v2497_v60  ;;  %v4568_v60 = vld [vmem:[%s7500_s14 + $0x50] sm:$0xff]  ;;  %2733 = vmatprep.subr.bf16.mxu0 %v2700_v59 }
 0xc35   : > { %v2499_v18 = vadd.f32 1e-05, %v2498_v61  ;;  %v2699_v61 = vpack.c.bf16 %v4568_v60, %v4566_v57 }
 0xc37   : > { %5359 = vrsqrt.f32 %v2499_v18  ;;  %2734 = vmatpush1.bf16.msra.mxu0 %v2699_v61 }
 0xc38   : > { %4829 = vmatprep.subr.bf16.mxu0 %v6271_v0 }
 0xc44   : > { %v5360_v26 = vpop.eup %5359 }
 0xc45   : > { %v2501_v2 = vmul.f32 %v5360_v26, %v2485_v48  ;;  %v2502_v6 = vmul.f32 %v5360_v26, %v2486_v45 }
 0xc47   : > { %v2511_v10 = vmul.f32 %v2509_v63, %v2501_v2  ;;  %v2512_v41 = vmul.f32 %v2509_v63, %v2502_v6 }
 0xc49   : > { %v2521_v46 = vadd.f32 %v2519_v7, %v2511_v10  ;;  %v2522_v12 = vadd.f32 %v2519_v7, %v2512_v41  ;;  %v4564_v41 = vld [vmem:[#allocation17 + $0x1] ss:$0 sm:$0xff] }
 0xc4b   : > { %v4556_v16 = vmul.f32 -1.442695, %v2521_v46  ;;  %v4557_v51 = vmul.f32 -1.442695, %v2522_v12 }
 0xc4d   : > { %5361 = vpow2.f32 %v4556_v16 }
 0xc4e   : > { %5363 = vpow2.f32 %v4557_v51  ;;  %v4565_v51 = vld [vmem:[#allocation19 + $0x1] ss:$0 sm:$0xff] }
 0xc5a   : > { %v5362_v19 = vpop.eup %5361 }
 0xc5b   : > { %v5364_v20 = vpop.eup %5363  ;;  %v2529_v15 = vadd.f32 1.0, %v5362_v19 }
 0xc5c   : > { %v2530_v8 = vadd.f32 1.0, %v5364_v20 }
 0xc5d   : > { %5365 = vrcp.f32 %v2529_v15 }
 0xc5e   : > { %5367 = vrcp.f32 %v2530_v8 }
 0xc6a   : > { %v5366_v22 = vpop.eup %5365 }
 0xc6b   : > { %v5368_v25 = vpop.eup %5367  ;;  %v2535_v27 = vmul.f32 %v5366_v22, %v2521_v46 }
 0xc6c   : > { %v2536_v28 = vmul.f32 %v5368_v25, %v2522_v12  ;;  %v2704_v25 = vld [vmem:[#allocation20 + $0x2] sm:$0x3] }
 0xc6d   : > { %2631 = vrot.lane.b32.xlu1 %v2535_v27, %s6275_s19  ;;  %v2709_v27 = vrot.slane %v2704_v25, %v1833_v42 }
 0xc6e   : > { %2633 = vrot.lane.b32.xlu0 %v2536_v28, %s6275_s19  ;;  %v2713_v28 = vrot.slane %v2704_v25, %v1837_v47  ;;  %v4590_v25 = vld [vmem:[%s7508_s23 + $0x60] sm:$0xff] }
 0xcdf   : > { %v2632_v58 = vpop.permute.xlu1 %2631 }
 0xce0   : > { %v2634_v23 = vpop.permute.xlu0 %2633  ;;  %v7087_v4 = vadd.f32 %v2632_v58, %v6962_v37 }
 0xce1   : > { %v7090_v24 = vadd.f32 %v2634_v23, %v6965_v39 }
 0xce2   : > { %v2643_v29 = vsel %vm1709_vm3, %v7087_v4, 0.0 }
 0xce3   : > { %v2646_v30 = vsel %vm1709_vm3, %v7090_v24, 0.0  ;;  %2644 = vadd.xlane.f32.xlu1 %v2643_v29 }
 0xce4   : > { %2647 = vadd.xlane.f32.xlu0 %v2646_v30 }
 0xd6c   : > { %v2645_v14 = vpop.xlane.xlu1 %2644 }
 0xd6d   : > { %v2648_v34 = vpop.xlane.xlu0 %2647  ;;  %v2649_v35 = vmul.f32 0.03125, %v2645_v14 }
 0xd6e   : > { %v2650_v37 = vmul.f32 0.03125, %v2648_v34 }
 0xd6f   : > { %v2651_v39 = vsub.f32 %v7087_v4, %v2649_v35 }
 0xd70   : > { %v2652_v36 = vsub.f32 %v7090_v24, %v2650_v37 }
 0xd71   : > { %v2653_v43 = vmul.f32 %v2651_v39, %v2651_v39 }
 0xd72   : > { %v2654_v44 = vmul.f32 %v2652_v36, %v2652_v36 }
 0xd73   : > { %v2655_v45 = vsel %vm1709_vm3, %v2653_v43, 0.0 }
 0xd74   : > { %v2658_v48 = vsel %vm1709_vm3, %v2654_v44, 0.0  ;;  %2656 = vadd.xlane.f32.xlu0 %v2655_v45 }
 0xd75   : > { %2659 = vadd.xlane.f32.xlu1 %v2658_v48 }
 0xdfd   : > { %v2657_v18 = vpop.xlane.xlu0 %2656 }
 0xdfe   : > { %v2661_v26 = vmul.f32 0.03125, %v2657_v18  ;;  %v2660_v63 = vpop.xlane.xlu1 %2659 }
 0xdff   : > { %v2662_v2 = vmul.f32 0.03125, %v2660_v63  ;;  %v4583_v63 = vld [vmem:[#allocation25 + $0x1] ss:$0 sm:$0xff] }
 0xe00   : > { %v2663_v6 = vadd.f32 1e-05, %v2661_v26 }
 0xe01   : > { %v2664_v7 = vadd.f32 1e-05, %v2662_v2 }
 0xe02   : > { %5369 = vrsqrt.f32 %v2663_v6 }
 0xe03   : > { %5371 = vrsqrt.f32 %v2664_v7 }
 0xe0f   : > { %v5370_v10 = vpop.eup %5369 }
 0xe10   : > { %v5372_v46 = vpop.eup %5371  ;;  %v2667_v12 = vmul.f32 %v5370_v10, %v2651_v39  ;;  %v4580_v10 = vld [vmem:[%s7507_s3 + $0x1] ss:$0 sm:$0xff] }
 0xe11   : > { %v2668_v16 = vmul.f32 %v5372_v46, %v2652_v36 }
 0xe12   : > { %v2677_v19 = vmul.f32 %v4564_v41, %v2667_v12 }
 0xe13   : > { %v2678_v20 = vmul.f32 %v4564_v41, %v2668_v16 }
 0xe14   : > { %v2687_v15 = vadd.f32 %v4565_v51, %v2677_v19 }
 0xe15   : > { %v2688_v8 = vadd.f32 %v4565_v51, %v2678_v20  ;;  %v4581_v51 = vld [vmem:[#allocation22 + $0x1] ss:$0 sm:$0xff] }
 0xe17   : > { %v2698_v22 = vpack.c.bf16 %v2688_v8, %v2687_v15  ;;  %v4592_v8 = vld [vmem:[%s7508_s23 + $0x70] sm:$0xff] }
 0xe19   : > { %4574 = vmatmul.mubr.msk.bf16.vlgmr.msra.gmra.mxu0 %vm1709_vm3, %v2698_v22  ;;  %v4593_v22 = vld [vmem:[%s7508_s23 + $0x78] sm:$0xff] }
 0xe1a   : > { %4831 = vmatprep.mubr.msk.bf16.mxu0 %vm6272_vm0, %v6271_v0 }
 0xed9   : > { %v2753_v58 = vpop.f32.mrf.mxu0 }
 0xeda   : > { %v2754_v23 = vadd.f32 %v2753_v58, %v2709_v27 }
 0xedb   : > { %v2755_v29 = vpop.f32.mrf.mxu0 }
 0xedc   : > { %v4575_v30 = vmul.f32 -1.442695, %v2754_v23  ;;  %v2756_v14 = vadd.f32 %v2755_v29, %v2713_v28 }
 0xedd   : > { %v2757_v34 = vpop.f32.mrf.mxu0 }
 0xede   : > { %5373 = vpow2.f32 %v4575_v30  ;;  %v4576_v35 = vmul.f32 -1.442695, %v2756_v14  ;;  %v2758_v37 = vadd.f32 %v2757_v34, %v2709_v27  ;;  %v2948_v27 = vpack.c.bf16 %v4593_v22, %v4592_v8 }
 0xedf   : > { %v2759_v39 = vpop.f32.mrf.mxu0 }
 0xee0   : > { %5375 = vpow2.f32 %v4576_v35  ;;  %v4577_v36 = vmul.f32 -1.442695, %v2758_v37  ;;  %v2760_v43 = vadd.f32 %v2759_v39, %v2713_v28  ;;  %v4591_v28 = vld [vmem:[%s7508_s23 + $0x68] sm:$0xff] }
 0xee1   : > { %v2947_v58 = vpack.c.bf16 %v4591_v28, %v4590_v25 }
 0xee2   : > { %5377 = vpow2.f32 %v4577_v36  ;;  %v4578_v44 = vmul.f32 -1.442695, %v2760_v43 }
 0xee4   : > { %5379 = vpow2.f32 %v4578_v44  ;;  %v4588_v44 = vld [vmem:[%s7508_s23 + $0x50] sm:$0xff] }
 0xeeb   : > { %v5374_v42 = vpop.eup %5373 }
 0xeec   : > { %v2774_v45 = vadd.f32 1.0, %v5374_v42  ;;  %v4589_v42 = vld [vmem:[%s7508_s23 + $0x58] sm:$0xff] }
 0xeed   : > { %v5376_v38 = vpop.eup %5375 }
 0xeee   : > { %v2775_v47 = vadd.f32 1.0, %v5376_v38  ;;  %5381 = vrcp.f32 %v2774_v45  ;;  %v2946_v45 = vpack.c.bf16 %v4589_v42, %v4588_v44  ;;  %v4586_v38 = vld [vmem:[%s7508_s23 + $0x40] sm:$0xff] }
 0xeef   : > { %v5378_v48 = vpop.eup %5377 }
 0xef0   : > { %5383 = vrcp.f32 %v2775_v47  ;;  %v2776_v49 = vadd.f32 1.0, %v5378_v48  ;;  %v4587_v47 = vld [vmem:[%s7508_s23 + $0x48] sm:$0xff] }
 0xef1   : > { %v5380_v55 = vpop.eup %5379  ;;  %v2945_v48 = vpack.c.bf16 %v4587_v47, %v4586_v38 }
 0xef2   : > { %5385 = vrcp.f32 %v2776_v49  ;;  %v2777_v50 = vadd.f32 1.0, %v5380_v55 }
 0xef4   : > { %5387 = vrcp.f32 %v2777_v50 }
 0xefb   : > { %v5382_v54 = vpop.eup %5381 }
 0xefc   : > { %v2786_v57 = vmul.f32 %v5382_v54, %v2754_v23 }
 0xefd   : > { %v5384_v11 = vpop.eup %5383 }
 0xefe   : > { %v2787_v52 = vmul.f32 %v5384_v11, %v2756_v14 }
 0xeff   : > { %v5386_v21 = vpop.eup %5385 }
 0xf00   : > { %v2788_v59 = vmul.f32 %v5386_v21, %v2758_v37  ;;  %v2818_v61 = vmul.f32 %v4582_v53, %v2787_v52  ;;  %v2798_v12 = vmul.f32 %v4580_v10, %v2787_v52 }
 0xf01   : > { %v5388_v60 = vpop.eup %5387 }
 0xf02   : > { %v2789_v18 = vmul.f32 %v5388_v60, %v2760_v43  ;;  %v2884_v26 = vpack.c.bf16 %v2788_v59, %v2786_v57  ;;  %v2828_v6 = vadd.f32 %v4583_v63, %v2818_v61  ;;  %v2808_v20 = vadd.f32 %v4581_v51, %v2798_v12  ;;  %v4599_v60 = vld [vmem:[%s7509_s22 + $0x38] sm:$0xff] }
 0xf04   : > { %v2819_v2 = vmul.f32 %v4582_v53, %v2789_v18  ;;  %2886 = vrot.lane.b32.xlu0 %v2884_v26, %s6274_s27  ;;  %v2799_v41 = vmul.f32 %v4580_v10, %v2789_v18  ;;  %v4598_v53 = vld [vmem:[%s7509_s22 + $0x30] sm:$0xff]  ;;  %v4596_v18 = vld [vmem:[%s7509_s22 + $0x20] sm:$0xff]  ;;  %v4597_v26 = vld [vmem:[%s7509_s22 + $0x28] sm:$0xff] }
 0xf05   : > { %v3010_v61 = vpack.c.bf16 %v4599_v60, %v4598_v53  ;;  %v4559_v10 = vld [vmem:[#allocation35] ss:$0 sm:$0xff]  ;;  %v4600_v60 = vld [vmem:[#allocation28 + $0x1] ss:$0 sm:$0xff] }
 0xf06   : > { %v2829_v7 = vadd.f32 %v4583_v63, %v2819_v2  ;;  %v2809_v19 = vadd.f32 %v4581_v51, %v2799_v41  ;;  %v3009_v63 = vpack.c.bf16 %v4597_v26, %v4596_v18  ;;  %v4605_v2 = vld [vmem:[%s7510_s17 + $0x38] sm:$0xff] }
 0xf08   : > { %v2831_v46 = vpack.c.bf16 %v2829_v7, %v2828_v6  ;;  %v2830_v15 = vpack.c.bf16 %v2809_v19, %v2808_v20  ;;  %v4558_v6 = vld [vmem:[#allocation34] ss:$0 sm:$0xff] }
 0xf09   : > { %v2588_v7 = vmul.f32 %v4558_v6, %v7041_v31  ;;  %v2589_v12 = vmul.f32 %v4558_v6, %v7043_v32 }
 0xf0a   : > { %v2836_v16 = vsel %vm1578_vm4, %v2831_v46, 0 }
 0xf0b   : > { %4824 = vmatpush3.bf16.xpose.msra.mxu1 %v2836_v16  ;;  %v2598_v41 = vadd.f32 %v4559_v10, %v2588_v7  ;;  %v2590_v16 = vmul.f32 %v4558_v6, %v7045_v62  ;;  %v2599_v20 = vadd.f32 %v4559_v10, %v2589_v12 }
 0xf0c   : > { %4835 = vmatprep.subr.bf16.mxu1 %v6271_v0 }
 0xf0d   : > { %v4561_v51 = vmul.f32 -1.442695, %v2598_v41  ;;  %v4562_v8 = vmul.f32 -1.442695, %v2599_v20 }
 0xf0f   : > { %5389 = vpow2.f32 %v4561_v51 }
 0xf12   : > { %4826 = vmatmul.mubr.msk.bf16.vlgmr.msra.gmra.mxu1 %vm1578_vm4, %v2830_v15  ;;  %v2600_v15 = vadd.f32 %v4559_v10, %v2590_v16 }
 0xf13   : > { %4843 = vmatprep.mubr.msk.bf16.mxu1 %vm6272_vm0, %v6271_v0  ;;  %4836 = vmatpush3.bf16.msra.mxu1 %v2948_v27 }
 0xf14   : > { %4837 = vmatprep.subr.bf16.mxu1 %v6271_v0  ;;  %v4563_v22 = vmul.f32 -1.442695, %v2600_v15 }
 0xf17   : > { %4838 = vmatpush3.bf16.msra.mxu1 %v2947_v58 }
 0xf18   : > { %4839 = vmatprep.subr.bf16.mxu1 %v6271_v0 }
 0xf1b   : > { %4840 = vmatpush3.bf16.msra.mxu1 %v2946_v45 }
 0xf1c   : > { %4841 = vmatprep.subr.bf16.mxu1 %v6271_v0  ;;  %v5390_v31 = vpop.eup %5389 }
 0xf1d   : > { %v2614_v27 = vadd.f32 1.0, %v5390_v31 }
 0xf1f   : > { %4842 = vmatpush3.bf16.msra.mxu1 %v2945_v48  ;;  %v4602_v48 = vld [vmem:[%s7510_s17 + $0x20] sm:$0xff] }
 0xf76   : > { %v2887_v23 = vpop.permute.xlu0 %2886 }
 0xf77   : > { %4830 = vmatpush3.bf16.msra.mxu0 %v2887_v23 }
 0xf78   : > { %4847 = vmatprep.subr.bf16.mxu0 %v6271_v0 }
 0xfd2   : > { %v2872_v29 = vpop.f32.mrf.mxu1 }
 0xfd3   : > { %v2879_v14 = vmax.f32 %v2872_v29, 0.0 }
 0xfd4   : > { %v4827_v30 = vpop.f32.mrf.mxu1 }
 0xfd5   : > { %v2881_v39 = vmul.f32 %v2879_v14, %v2879_v14  ;;  %v4594_v30 = vld [vmem:[#allocation26 + $0x1] ss:$0 sm:$0xff] }
 0xfd6   : > { %v2875_v34 = vpop.f32.mrf.mxu1 }
 0xfd7   : > { %v2880_v35 = vmax.f32 %v2875_v34, 0.0 }
 0xfd8   : > { %v4828_v37 = vpop.f32.mrf.mxu1 }
 0xfd9   : > { %v2882_v36 = vmul.f32 %v2880_v35, %v2880_v35 }
 0xfdb   : > { %v2883_v43 = vpack.c.bf16 %v2882_v36, %v2881_v39 }
 0xfdd   : > { %4832 = vmatmul.mubr.msk.bf16.vlgmr.msra.gmra.mxu0 %vm1578_vm4, %v2883_v43 }
 0xfde   : > { %4851 = vmatprep.mubr.msk.bf16.mxu0 %vm6272_vm0, %v6271_v0  ;;  %4848 = vmatpush3.bf16.msra.mxu0 %v3010_v61 }
 0xfdf   : > { %4849 = vmatprep.subr.bf16.mxu0 %v6271_v0 }
 0xfe2   : > { %4850 = vmatpush3.bf16.msra.mxu0 %v3009_v63 }
0x109d   : > { %v2926_v49 = vpop.f32.mrf.mxu0 }
0x109e   : > { %v2933_v54 = vmul.f32 %v2926_v49, %v2786_v57  ;;  %v4604_v57 = vld [vmem:[%s7510_s17 + $0x30] sm:$0xff]  ;;  %v4603_v49 = vld [vmem:[%s7510_s17 + $0x28] sm:$0xff] }
0x109f   : > { %v4833_v55 = vpop.f32.mrf.mxu0 }
0x10a1   : > { %v2929_v50 = vpop.f32.mrf.mxu0 }
0x10a2   : > { %v2934_v11 = vmul.f32 %v2929_v50, %v2788_v59  ;;  %v3071_v59 = vpack.c.bf16 %v4605_v2, %v4604_v57 }
0x10a3   : > { %v4834_v52 = vpop.f32.mrf.mxu0 }
0x10a4   : > { %v2944_v21 = vpack.c.bf16 %v2934_v11, %v2933_v54  ;;  %4855 = vmatprep.subr.bf16.mxu0 %v3071_v59  ;;  %v3070_v11 = vpack.c.bf16 %v4603_v49, %v4602_v48 }
0x10a6   : > { %4844 = vmatmul.mubr.msk.bf16.vlgmr.msra.gmra.mxu1 %vm2076_vm9, %v2944_v21 }
0x10a7   : > { %4867 = vmatprep.mubr.msk.bf16.mxu1 %vm1709_vm3, %v6992_v56  ;;  %v2587_v56 = vmul.f32 %v4558_v6, %v7047_v9 }
0x10a9   : > { %v2597_v46 = vadd.f32 %v4559_v10, %v2587_v56 }
0x10ab   : > { %v4560_v19 = vmul.f32 -1.442695, %v2597_v46 }
0x10ad   : > { %5391 = vpow2.f32 %v4560_v19 }
0x10ae   : > { %5393 = vpow2.f32 %v4562_v8 }
0x10af   : > { %5395 = vpow2.f32 %v4563_v22 }
0x10b0   : > { %5397 = vrcp.f32 %v2614_v27 }
0x10ba   : > { %v5392_v25 = vpop.eup %5391 }
0x10bb   : > { %v2613_v9 = vadd.f32 1.0, %v5392_v25  ;;  %v5394_v28 = vpop.eup %5393 }
0x10bc   : > { %v5396_v58 = vpop.eup %5395  ;;  %v2615_v32 = vadd.f32 1.0, %v5394_v28 }
0x10bd   : > { %5399 = vrcp.f32 %v2613_v9  ;;  %v2616_v62 = vadd.f32 1.0, %v5396_v58  ;;  %v5398_v23 = vpop.eup %5397 }
0x10be   : > { %5401 = vrcp.f32 %v2615_v32  ;;  %v2626_v37 = vmul.f32 %v5398_v23, %v2598_v41  ;;  %v4606_v41 = vld [vmem:[#allocation29 + $0x1] ss:$0 sm:$0xff] }
0x10bf   : > { %5403 = vrcp.f32 %v2616_v62 }
0x10c0   : > { %v7156_v47 = vadd.f32 %v2626_v37, %v6957_v33 }
0x10ca   : > { %v5400_v29 = vpop.eup %5399 }
0x10cb   : > { %v2625_v35 = vmul.f32 %v5400_v29, %v2597_v46  ;;  %v5402_v43 = vpop.eup %5401 }
0x10cc   : > { %v5404_v42 = vpop.eup %5403  ;;  %v2627_v52 = vmul.f32 %v5402_v43, %v2599_v20 }
0x10cd   : > { %v7153_v38 = vadd.f32 %v2625_v35, %v6967_v40  ;;  %v2628_v21 = vmul.f32 %v5404_v42, %v2600_v15 }
0x10ce   : > { %v7173_v33 = vadd.f32 %v2627_v52, %v6979_v17 }
0x10cf   : > { %v3068_v40 = vpack.c.bf16 %v7156_v47, %v7153_v38 }
0x1166   : > { %v2994_v14 = vpop.f32.mrf.mxu1 }
0x1167   : > { %v2995_v39 = vadd.f32 %v4594_v30, %v2994_v14 }
0x1168   : > { %v4845_v34 = vpop.f32.mrf.mxu1 }
0x1169   : > { %v7161_v55 = vadd.f32 %v2995_v39, %v7087_v4  ;;  %v7176_v4 = vadd.f32 %v2628_v21, %v6976_v13 }
0x116a   : > { %v2997_v36 = vpop.f32.mrf.mxu1 }
0x116b   : > { %v2998_v44 = vadd.f32 %v4594_v30, %v2997_v36 }
0x116c   : > { %v4846_v45 = vpop.f32.mrf.mxu1 }
0x116d   : > { %v7164_v50 = vadd.f32 %v2998_v44, %v7090_v24  ;;  %v3069_v24 = vpack.c.bf16 %v7176_v4, %v7173_v33 }
0x116f   : > { %v3008_v54 = vpack.c.bf16 %v7164_v50, %v7161_v55 }
0x1171   : > { %4852 = vmatmul.mubr.msk.bf16.vlgmr.msra.gmra.mxu0 %vm1709_vm3, %v3008_v54 }
0x1172   : > { %4856 = vmatpush3.bf16.msra.mxu0 %v3071_v59  ;;  %4859 = vmatprep.mubr.msk.bf16.mxu0 %vm1709_vm3, %v3068_v40 }
0x1173   : > { %4857 = vmatprep.subr.bf16.mxu0 %v3070_v11 }
0x1176   : > { %4858 = vmatpush3.bf16.msra.mxu0 %v3070_v11 }
0x1177   : > { %4871 = vmatprep.subr.bf16.mxu0 %v6271_v0 }
0x1179   : > { %4860 = vmatmul.mubr.msk.bf16.vlgmr.msra.gmra.mxu0 %vm1709_vm3, %v3069_v24 }
0x117a   : > { %4875 = vmatprep.mubr.msk.bf16.mxu0 %vm6272_vm0, %v6271_v0 }
0x1231   : > { %v3056_v53 = vpop.f32.mrf.mxu0 }
0x1232   : > { %v7184_v17 = vadd.f32 %v4600_v60, %v3056_v53 }
0x1233   : > { %v4853_v61 = vpop.f32.mrf.mxu0 }
0x1235   : > { %v3059_v18 = vpop.f32.mrf.mxu0 }
0x1236   : > { %v7186_v26 = vadd.f32 %v4600_v60, %v3059_v18 }
0x1237   : > { %v4854_v13 = vpop.f32.mrf.mxu0 }
0x1238   : > { %v5260_v63 = vpack.i.bf16 %v7186_v26, %v7184_v17  ;;  %v3145_v7 = vpack.c.bf16 %v7186_v26, %v7184_v17 }
0x1239   : > { %v4861_v10 = vpop.f32.mrf.mxu0 }
0x123a   : > { %5261 = vrot.lane.b32.xlu1 %v5260_v63, %s6274_s27  ;;  %v3129_v12 = vadd.f32 %v4861_v10, %v4606_v41 }
0x123b   : > { %v3120_v56 = vpop.f32.mrf.mxu0 }
0x123c   : > { %v3121_v51 = vadd.f32 %v4606_v41, %v3120_v56 }
0x123d   : > { %v4862_v46 = vpop.f32.mrf.mxu0 }
0x123e   : > { %v3132_v8 = vadd.f32 %v4862_v46, %v4606_v41 }
0x123f   : > { %v3123_v20 = vpop.f32.mrf.mxu0 }
0x1240   : > { %v3124_v25 = vadd.f32 %v4606_v41, %v3123_v20 }
0x12ac   : > { %v5262_v57 = vpop.permute.xlu1 %5261 }
0x12ad   : > { %v5264_v2 = vunpack.i.h.bf16 %v5262_v57  ;;  %v5263_v59 = vunpack.i.l.bf16 %v5262_v57 }
0x12af   : > { %v4610_v6 = vpack.c.bf16 %v5264_v2, %v5263_v59 }
0x12b1   : > { %4863 = vmatprep.subr.msk.bf16.mxu1 %vm7001_vm10, %v4610_v6 }
0x12b2   : > { %4864 = vmatpush3.bf16.msk.msra.mxu1 %vm7001_vm10, %v4610_v6 }
0x12b3   : > { %4865 = vmatprep.subr.bf16.mxu1 %v3145_v7 }
0x12b6   : > { %4866 = vmatpush3.bf16.msra.mxu1 %v3145_v7 }
0x12b7   : > { %4879 = vmatprep.subr.bf16.mxu1 %v6271_v0 }
0x12b9   : > { %4868 = vmatmul.mubr.msk.bf16.vlgmr.msra.gmra.mxu1 %vm1709_vm3, %v7012_v5 }
0x12ba   : > { %4883 = vmatprep.mubr.msk.bf16.mxu1 %vm6272_vm0, %v6271_v0 }
0x1379   : > { %v7202_v16 = vpop.f32.mrf.mxu1 }
0x137a   : > { %v3198_v19 = vadd.f32 %v7202_v16, %v3129_v12 }
0x137b   : > { %v7205_v15 = vpop.f32.mrf.mxu1 }
0x137c   : > { %v4616_v22 = vmul.f32 -1.442695, %v3198_v19  ;;  %v3196_v5 = vadd.f32 %v7205_v15, %v3121_v51  ;;  %v3404_v14 = vsel %vm1709_vm3, %v3198_v19, 0.0 }
0x137d   : > { %v7208_v31 = vpop.f32.mrf.mxu1 }
0x137e   : > { %5405 = vpow2.f32 %v4616_v22  ;;  %v4614_v27 = vmul.f32 -1.442695, %v3196_v5  ;;  %v3199_v9 = vadd.f32 %v7208_v31, %v3132_v8  ;;  %v3401_v62 = vsel %vm1709_vm3, %v3196_v5, 0.0 }
0x137f   : > { %v7211_v28 = vpop.f32.mrf.mxu1 }
0x1380   : > { %5407 = vpow2.f32 %v4614_v27  ;;  %v4617_v58 = vmul.f32 -1.442695, %v3199_v9  ;;  %v3197_v32 = vadd.f32 %v7211_v28, %v3124_v25  ;;  %v3406_v35 = vsel %vm1709_vm3, %v3199_v9, 0.0 }
0x1382   : > { %5409 = vpow2.f32 %v4617_v58  ;;  %v4615_v23 = vmul.f32 -1.442695, %v3197_v32  ;;  %v3402_v29 = vsel %vm1709_vm3, %v3197_v32, 0.0 }
0x1383   : > { %v3403_v30 = vadd.f32 %v3402_v29, %v3401_v62  ;;  %v4623_v29 = vld [vmem:[#allocation34 + $0x1] ss:$0 sm:$0xff] }
0x1384   : > { %5411 = vpow2.f32 %v4615_v23 }
0x1385   : > { %v3405_v34 = vadd.f32 %v3404_v14, %v3403_v30 }
0x1387   : > { %v3407_v37 = vadd.f32 %v3406_v35, %v3405_v34 }
0x1389   : > { %v3408_v39 = vrot.slane %v3407_v37, 4 }
0x138b   : > { %v5406_v36 = vpop.eup %5405  ;;  %v3409_v43 = vadd.f32 %v3408_v39, %v3407_v37  ;;  %v4624_v37 = vld [vmem:[#allocation35 + $0x1] ss:$0 sm:$0xff] }
0x138c   : > { %v3214_v44 = vadd.f32 1.0, %v5406_v36 }
0x138d   : > { %v5408_v42 = vpop.eup %5407  ;;  %v3410_v45 = vrot.slane %v3409_v43, 2 }
0x138e   : > { %5413 = vrcp.f32 %v3214_v44  ;;  %v3212_v48 = vadd.f32 1.0, %v5408_v42 }
0x138f   : > { %v5410_v49 = vpop.eup %5409  ;;  %v3411_v54 = vadd.f32 %v3410_v45, %v3409_v43 }
0x1390   : > { %v3215_v11 = vadd.f32 1.0, %v5410_v49  ;;  %5415 = vrcp.f32 %v3212_v48 }
0x1391   : > { %v5412_v52 = vpop.eup %5411  ;;  %v3412_v21 = vrot.slane %v3411_v54, 1 }
0x1392   : > { %5417 = vrcp.f32 %v3215_v11  ;;  %v3213_v40 = vadd.f32 1.0, %v5412_v52 }
0x1393   : > { %v3413_v24 = vadd.f32 %v3412_v21, %v3411_v54 }
0x1394   : > { %5419 = vrcp.f32 %v3213_v40 }
0x1395   : > { %v3414_v53 = vmul.f32 0.03125, %v3413_v24 }
0x1397   : > { %v3415_v60 = vsub.f32 %v3196_v5, %v3414_v53  ;;  %v3416_v61 = vsub.f32 %v3197_v32, %v3414_v53  ;;  %v3417_v18 = vsub.f32 %v3198_v19, %v3414_v53  ;;  %v3418_v13 = vsub.f32 %v3199_v9, %v3414_v53 }
0x1399   : > { %v3419_v63 = vmul.f32 %v3415_v60, %v3415_v60  ;;  %v3420_v57 = vmul.f32 %v3416_v61, %v3416_v61  ;;  %v3421_v2 = vmul.f32 %v3417_v18, %v3417_v18  ;;  %v3422_v6 = vmul.f32 %v3418_v13, %v3418_v13 }
0x139b   : > { %v5414_v59 = vpop.eup %5413  ;;  %v3423_v7 = vsel %vm1709_vm3, %v3419_v63, 0.0  ;;  %v3424_v10 = vsel %vm1709_vm3, %v3420_v57, 0.0  ;;  %v3426_v41 = vsel %vm1709_vm3, %v3421_v2, 0.0  ;;  %v3428_v19 = vsel %vm1709_vm3, %v3422_v6, 0.0 }
0x139c   : > { %v3425_v56 = vadd.f32 %v3424_v10, %v3423_v7  ;;  %3232 = vrot.lane.b32.xlu1 %v5414_v59, %s6275_s19 }
0x139d   : > { %v5416_v46 = vpop.eup %5415 }
0x139e   : > { %v3427_v12 = vadd.f32 %v3426_v41, %v3425_v56 }
0x139f   : > { %v5418_v51 = vpop.eup %5417 }
0x13a0   : > { %v3429_v20 = vadd.f32 %v3428_v19, %v3427_v12  ;;  %3228 = vrot.lane.b32.xlu1 %v5416_v46, %s6275_s19  ;;  %3234 = vrot.lane.b32.xlu0 %v5418_v51, %s6275_s19 }
0x13a1   : > { %v5420_v22 = vpop.eup %5419 }
0x13a2   : > { %v3430_v8 = vrot.slane %v3429_v20, 4 }
0x13a4   : > { %v3431_v5 = vadd.f32 %v3430_v8, %v3429_v20  ;;  %3230 = vrot.lane.b32.xlu0 %v5420_v22, %s6275_s19 }
0x13a6   : > { %v3432_v25 = vrot.slane %v3431_v5, 2 }
0x13a8   : > { %v3433_v27 = vadd.f32 %v3432_v25, %v3431_v5 }
0x13aa   : > { %v3434_v9 = vrot.slane %v3433_v27, 1 }
0x13ac   : > { %v3435_v58 = vadd.f32 %v3434_v9, %v3433_v27 }
0x13ae   : > { %v3436_v32 = vmul.f32 0.03125, %v3435_v58 }
0x13b0   : > { %v3437_v62 = vadd.f32 1e-05, %v3436_v32 }
0x13b2   : > { %5421 = vrsqrt.f32 %v3437_v62 }
0x13bf   : > { %v5422_v23 = vpop.eup %5421 }
0x13c0   : > { %v3440_v30 = vmul.f32 %v5422_v23, %v3416_v61  ;;  %v3441_v14 = vmul.f32 %v5422_v23, %v3417_v18  ;;  %v3442_v34 = vmul.f32 %v5422_v23, %v3418_v13  ;;  %v3439_v35 = vmul.f32 %v5422_v23, %v3415_v60 }
0x13c2   : > { %v3450_v39 = vmul.f32 %v4623_v29, %v3440_v30  ;;  %v3451_v36 = vmul.f32 %v4623_v29, %v3441_v14  ;;  %v3452_v43 = vmul.f32 %v4623_v29, %v3442_v34  ;;  %v3449_v44 = vmul.f32 %v4623_v29, %v3439_v35  ;;  %v4637_v14 = vld [vmem:[%s7510_s17 + $0x50] sm:$0xff] }
0x13c4   : > { %v3460_v42 = vadd.f32 %v4624_v37, %v3450_v39  ;;  %v3459_v45 = vadd.f32 %v4624_v37, %v3449_v44  ;;  %v3461_v48 = vadd.f32 %v4624_v37, %v3451_v36  ;;  %v3462_v49 = vadd.f32 %v4624_v37, %v3452_v43  ;;  %v4635_v43 = vld [vmem:[%s7510_s17 + $0x40] sm:$0xff]  ;;  %v4636_v44 = vld [vmem:[%s7510_s17 + $0x48] sm:$0xff] }
0x13c6   : > { %v4626_v54 = vmul.f32 -1.442695, %v3460_v42  ;;  %v4625_v11 = vmul.f32 -1.442695, %v3459_v45  ;;  %v4627_v52 = vmul.f32 -1.442695, %v3461_v48 }
0x13c7   : > { %v4628_v21 = vmul.f32 -1.442695, %v3462_v49 }
0x13c8   : > { %5423 = vpow2.f32 %v4626_v54 }
0x13c9   : > { %5425 = vpow2.f32 %v4625_v11 }
0x13ca   : > { %5427 = vpow2.f32 %v4627_v52 }
0x13cb   : > { %5429 = vpow2.f32 %v4628_v21 }
0x13d5   : > { %v5424_v40 = vpop.eup %5423 }
0x13d6   : > { %v5426_v24 = vpop.eup %5425  ;;  %v3476_v53 = vadd.f32 1.0, %v5424_v40 }
0x13d7   : > { %v5428_v60 = vpop.eup %5427  ;;  %v3475_v61 = vadd.f32 1.0, %v5426_v24 }
0x13d8   : > { %v5430_v18 = vpop.eup %5429  ;;  %5431 = vrcp.f32 %v3476_v53  ;;  %v3477_v13 = vadd.f32 1.0, %v5428_v60  ;;  %v4619_v60 = vld [vmem:[#allocation31 + $0x1] ss:$0 sm:$0xff] }
0x13d9   : > { %5433 = vrcp.f32 %v3475_v61  ;;  %v3478_v63 = vadd.f32 1.0, %v5430_v18  ;;  %v4620_v18 = vld [vmem:[#allocation32 + $0x1] ss:$0 sm:$0xff] }
0x13da   : > { %5435 = vrcp.f32 %v3477_v13  ;;  %v4631_v13 = vld [vmem:[%s7509_s22 + $0x50] sm:$0xff] }
0x13db   : > { %5437 = vrcp.f32 %v3478_v63  ;;  %v4632_v63 = vld [vmem:[%s7509_s22 + $0x58] sm:$0xff] }
0x13e5   : > { %v5432_v57 = vpop.eup %5431 }
0x13e6   : > { %v5434_v2 = vpop.eup %5433  ;;  %v3488_v59 = vmul.f32 %v5432_v57, %v3460_v42  ;;  %v3572_v42 = vpack.c.bf16 %v4636_v44, %v4635_v43  ;;  %v3512_v57 = vpack.c.bf16 %v4632_v63, %v4631_v13  ;;  %v4633_v63 = vld [vmem:[#allocation28 + $0x2] ss:$0 sm:$0xff] }
0x13e7   : > { %v5436_v6 = vpop.eup %5435  ;;  %v3487_v7 = vmul.f32 %v5434_v2, %v3459_v45 }
0x13e8   : > { %v5438_v10 = vpop.eup %5437  ;;  %v3502_v56 = vadd.f32 %v3488_v59, %v7156_v47  ;;  %v3489_v41 = vmul.f32 %v5436_v6, %v3461_v48  ;;  %4880 = vmatpush3.bf16.msra.mxu1 %v3512_v57 }
0x13e9   : > { %v3501_v46 = vadd.f32 %v3487_v7, %v7153_v38  ;;  %v3490_v12 = vmul.f32 %v5438_v10, %v3462_v49  ;;  %4881 = vmatprep.subr.bf16.mxu1 %v6271_v0 }
0x13ea   : > { %v3503_v51 = vadd.f32 %v3489_v41, %v7173_v33 }
0x13eb   : > { %v3570_v19 = vpack.c.bf16 %v3502_v56, %v3501_v46  ;;  %v3504_v20 = vadd.f32 %v3490_v12, %v7176_v4 }
0x13ed   : > { %v3571_v8 = vpack.c.bf16 %v3504_v20, %v3503_v51 }
0x140e   : > { %v3233_v22 = vpop.permute.xlu1 %3232 }
0x140f   : > { %v3242_v25 = vmul.f32 %v7202_v16, %v3233_v22 }
0x1412   : > { %v3235_v5 = vpop.permute.xlu0 %3234  ;;  %v3229_v9 = vpop.permute.xlu1 %3228 }
0x1413   : > { %v3243_v27 = vmul.f32 %v7208_v31, %v3235_v5  ;;  %v3240_v38 = vmul.f32 %v3229_v9, %v7205_v15  ;;  %v4638_v15 = vld [vmem:[%s7510_s17 + $0x58] sm:$0xff] }
0x1414   : > { %v3573_v39 = vpack.c.bf16 %v4638_v15, %v4637_v14 }
0x1415   : > { %v5265_v47 = vpack.i.bf16 %v3243_v27, %v3242_v25 }
0x1416   : > { %v3231_v58 = vpop.permute.xlu0 %3230 }
0x1417   : > { %v3241_v32 = vmul.f32 %v3231_v58, %v7211_v28  ;;  %5266 = vrot.lane.b32.xlu1 %v5265_v47, %s6276_s12 }
0x1419   : > { %v5270_v33 = vpack.i.bf16 %v3241_v32, %v3240_v38 }
0x141b   : > { %5271 = vrot.lane.b32.xlu0 %v5270_v33, %s6276_s12 }
0x1489   : > { %v5267_v4 = vpop.permute.xlu1 %5266 }
0x148a   : > { %v5269_v62 = vunpack.i.h.bf16 %v5267_v4  ;;  %v5268_v16 = vunpack.i.l.bf16 %v5267_v4 }
0x148c   : > { %v3263_v31 = vsel %vm1709_vm3, %v5269_v62, %v3235_v5  ;;  %v3262_v23 = vsel %vm1709_vm3, %v5268_v16, %v3233_v22 }
0x148d   : > { %v3265_v29 = vpack.c.bf16 %v3263_v31, %v3262_v23  ;;  %v5272_v30 = vpop.permute.xlu0 %5271 }
0x148e   : > { %v5274_v34 = vunpack.i.h.bf16 %v5272_v30  ;;  %v5273_v28 = vunpack.i.l.bf16 %v5272_v30 }
0x148f   : > { %4872 = vmatpush3.bf16.msra.mxu0 %v3265_v29 }
0x1490   : > { %v3261_v35 = vsel %vm1709_vm3, %v5274_v34, %v3231_v58  ;;  %v3260_v37 = vsel %vm1709_vm3, %v5273_v28, %v3229_v9  ;;  %4873 = vmatprep.subr.bf16.mxu0 %v6271_v0 }
0x1491   : > { %v3264_v36 = vpack.c.bf16 %v3261_v35, %v3260_v37 }
0x1493   : > { %4874 = vmatpush3.bf16.msra.mxu0 %v3264_v36 }
0x1494   : > { %4887 = vmatprep.subr.bf16.mxu0 %v3573_v39 }
0x1496   : > { %4876 = vmatmul.mubr.msk.bf16.vlgmr.msra.gmra.mxu0 %vm1709_vm3, %v7065_v3 }
0x1497   : > { %4888 = vmatpush3.bf16.msra.mxu0 %v3573_v39  ;;  %4891 = vmatprep.mubr.msk.bf16.mxu0 %vm1709_vm3, %v3570_v19 }
0x1498   : > { %4889 = vmatprep.subr.bf16.mxu0 %v3572_v42 }
0x149b   : > { %4890 = vmatpush3.bf16.msra.mxu0 %v3572_v42 }
0x149c   : > { %4903 = vmatprep.subr.bf16.mxu0 %v6271_v0 }
0x149e   : > { %4892 = vmatmul.mubr.msk.bf16.vlgmr.msra.gmra.mxu0 %vm1709_vm3, %v3571_v8 }
0x149f   : > { %4907 = vmatprep.mubr.msk.bf16.mxu0 %vm6272_vm0, %v6271_v0 }
0x1556   : > { %v3300_v45 = vpop.f32.mrf.mxu0 }
0x1557   : > { %v3307_v48 = vadd.f32 1e-06, %v3300_v45 }
0x1558   : > { %v4877_v49 = vpop.f32.mrf.mxu0 }
0x1559   : > { %5439 = vrcp.f32 %v3307_v48  ;;  %v4629_v48 = vld [vmem:[%s7509_s22 + $0x40] sm:$0xff]  ;;  %v4630_v49 = vld [vmem:[%s7509_s22 + $0x48] sm:$0xff] }
0x155a   : > { %v3303_v54 = vpop.f32.mrf.mxu0 }
0x155b   : > { %v3308_v11 = vadd.f32 1e-06, %v3303_v54 }
0x155c   : > { %v4878_v52 = vpop.f32.mrf.mxu0 }
0x155d   : > { %5441 = vrcp.f32 %v3308_v11 }
0x1566   : > { %v5440_v3 = vpop.eup %5439 }
0x1567   : > { %3313 = vrot.lane.b32.xlu1 %v5440_v3, %s6276_s12 }
0x156a   : > { %v5442_v21 = vpop.eup %5441 }
0x156b   : > { %3315 = vrot.lane.b32.xlu0 %v5442_v21, %s6276_s12 }
0x15d9   : > { %v3314_v40 = vpop.permute.xlu1 %3313 }
0x15da   : > { %v3319_v24 = vmul.f32 %v3314_v40, %v3300_v45 }
0x15dc   : > { %3323 = vrot.lane.b32.xlu1 %v3319_v24, %s6276_s12 }
0x15dd   : > { %v3316_v53 = vpop.permute.xlu0 %3315 }
0x15de   : > { %v3320_v61 = vmul.f32 %v3316_v53, %v3303_v54  ;;  %v3511_v54 = vpack.c.bf16 %v4630_v49, %v4629_v48 }
0x15e0   : > { %3325 = vrot.lane.b32.xlu0 %v3320_v61, %s6276_s12  ;;  %3368 = vrot.lane.b32.xlu1 %v4619_v60, %s6276_s12 }
0x15e1   : > { %4882 = vmatpush3.bf16.msra.mxu1 %v3511_v54 }
0x15e4   : > { %3378 = vrot.lane.b32.xlu0 %v4620_v18, %s6276_s12  ;;  %v5487_v18 = vld [vmem:[%s6748_s9] sm:$0xff]  }
0x164e   : > { %v3324_v2 = vpop.permute.xlu1 %3323 }
0x164f   : > { %v3329_v59 = vadd.f32 %v3324_v2, %v7184_v17 }
0x1651   : > { %v3335_v10 = vsel %vm2473_vm11, %v3329_v59, 0.0 }
0x1652   : > { %v3326_v6 = vpop.permute.xlu0 %3325  ;;  %v3369_v29 = vpop.permute.xlu1 %3368 }
0x1653   : > { %v3330_v7 = vadd.f32 %v3326_v6, %v7186_v26 }
0x1655   : > { %v3336_v56 = vsel %vm2473_vm11, %v3330_v7, 0.0 }
0x1656   : > { %v3337_v41 = vadd.f32 %v3336_v56, %v3335_v10  ;;  %v3379_v15 = vpop.permute.xlu0 %3378 }
0x1658   : > { %v3338_v46 = vrot.slane %v3337_v41, 4 }
0x165a   : > { %v3339_v12 = vadd.f32 %v3338_v46, %v3337_v41 }
0x165c   : > { %v3340_v51 = vrot.slane %v3339_v12, 2 }
0x165e   : > { %v3341_v19 = vadd.f32 %v3340_v51, %v3339_v12  ;;  %v5488_v12 = vld [vmem:[%s6748_s9 + $0x8] sm:$0xff]   ;;  %v4893_v51 = vpop.f32.mrf.mxu0  ;;  %s7514_s9 = sld [smem:[#allocation80_spill]] }
0x1660   : > { %v3342_v20 = vrot.slane %v3341_v19, 1 }
0x1662   : > { %v3343_v8 = vadd.f32 %v3342_v20, %v3341_v19  ;;  %v3622_v19 = vpop.f32.mrf.mxu0  ;;  %v4639_v20 = vld [vmem:[#allocation29 + $0x2] ss:$0 sm:$0xff] }
0x1664   : > { %v3344_v22 = vmul.f32 0.0625, %v3343_v8  ;;  %v4894_v8 = vpop.f32.mrf.mxu0 }
0x1666   : > { %v3346_v5 = vsub.f32 %v3330_v7, %v3344_v22  ;;  %v3345_v25 = vsub.f32 %v3329_v59, %v3344_v22  ;;  %v3631_v22 = vadd.f32 %v4893_v51, %v4639_v20  ;;  %v3625_v1 = vpop.f32.mrf.mxu0 }
0x1668   : > { %v3348_v27 = vmul.f32 %v3346_v5, %v3346_v5  ;;  %v3347_v9 = vmul.f32 %v3345_v25, %v3345_v25 }
0x166a   : > { %v3350_v17 = vsel %vm2473_vm11, %v3348_v27, 0.0  ;;  %v3349_v26 = vsel %vm2473_vm11, %v3347_v9, 0.0 }
0x166b   : > { %v3351_v47 = vadd.f32 %v3350_v17, %v3349_v26  ;;  %v3634_v17 = vadd.f32 %v4894_v8, %v4639_v20 }
0x166d   : > { %v3352_v58 = vrot.slane %v3351_v47, 4 }
0x166f   : > { %v3353_v38 = vadd.f32 %v3352_v58, %v3351_v47 }
0x1671   : > { %v3354_v32 = vrot.slane %v3353_v38, 2 }
0x1673   : > { %v3355_v33 = vadd.f32 %v3354_v32, %v3353_v38  ;;  %v3626_v38 = vadd.f32 %v4639_v20, %v3625_v1  ;;  %v4652_v1 = vld [vmem:[#allocation31 + $0x2] ss:$0 sm:$0xff] }
0x1675   : > { %v3356_v4 = vrot.slane %v3355_v33, 1 }
0x1677   : > { %v3357_v62 = vadd.f32 %v3356_v4, %v3355_v33 }
0x1679   : > { %v3358_v16 = vmul.f32 0.0625, %v3357_v62 }
0x167b   : > { %v3359_v31 = vadd.f32 1e-05, %v3358_v16 }
0x167d   : > { %5443 = vrsqrt.f32 %v3359_v31 }
0x168a   : > { %v5444_v23 = vpop.eup %5443 }
0x168b   : > { %v3361_v30 = vmul.f32 %v5444_v23, %v3345_v25  ;;  %v3362_v14 = vmul.f32 %v5444_v23, %v3346_v5  ;;  %v3623_v25 = vadd.f32 %v4639_v20, %v3622_v19 }
0x168d   : > { %v3371_v34 = vmul.f32 %v3369_v29, %v3361_v30  ;;  %v3372_v28 = vmul.f32 %v3369_v29, %v3362_v14 }
0x168f   : > { %v3381_v35 = vadd.f32 %v3379_v15, %v3371_v34  ;;  %v3382_v37 = vadd.f32 %v3379_v15, %v3372_v28 }
0x1691   : > { %v4621_v39 = vmul.f32 -1.442695, %v3381_v35  ;;  %v4622_v36 = vmul.f32 -1.442695, %v3382_v37 }
0x1693   : > { %5445 = vpow2.f32 %v4621_v39 }
0x1694   : > { %5447 = vpow2.f32 %v4622_v36 }
0x16a0   : > { %v5446_v43 = vpop.eup %5445 }
0x16a1   : > { %v5448_v44 = vpop.eup %5447  ;;  %v3389_v42 = vadd.f32 1.0, %v5446_v43 }
0x16a2   : > { %v3390_v45 = vadd.f32 1.0, %v5448_v44 }
0x16a3   : > { %5449 = vrcp.f32 %v3389_v42 }
0x16a4   : > { %5451 = vrcp.f32 %v3390_v45 }
0x16b0   : > { %v5450_v11 = vpop.eup %5449 }
0x16b1   : > { %v5452_v52 = vpop.eup %5451  ;;  %v3395_v3 = vmul.f32 %v5450_v11, %v3381_v35 }
0x16b2   : > { %v3396_v21 = vmul.f32 %v5452_v52, %v3382_v37 }
0x16b3   : > { %3493 = vrot.lane.b32.xlu1 %v3395_v3, %s6275_s19 }
0x16b4   : > { %3495 = vrot.lane.b32.xlu0 %v3396_v21, %s6275_s19 }
0x1725   : > { %v3494_v40 = vpop.permute.xlu1 %3493 }
0x1726   : > { %v3496_v24 = vpop.permute.xlu0 %3495  ;;  %v7272_v53 = vadd.f32 %v3494_v40, %v7161_v55 }
0x1727   : > { %v7275_v60 = vadd.f32 %v3496_v24, %v7164_v50 }
0x1729   : > { %v3510_v61 = vpack.c.bf16 %v7275_v60, %v7272_v53 }
0x172b   : > { %4884 = vmatmul.mubr.msk.bf16.vlgmr.msra.gmra.mxu1 %vm1709_vm3, %v3510_v61 }
0x172c   : > { %4899 = vmatprep.mubr.msk.bf16.mxu1 %vm1709_vm3, %v5487_v18 }
0x17eb   : > { %v3558_v13 = vpop.f32.mrf.mxu1 }
0x17ec   : > { %v7282_v59 = vadd.f32 %v4633_v63, %v3558_v13 }
0x17ed   : > { %v4885_v57 = vpop.f32.mrf.mxu1 }
0x17ef   : > { %v3561_v2 = vpop.f32.mrf.mxu1 }
0x17f0   : > { %v7284_v55 = vadd.f32 %v4633_v63, %v3561_v2 }
0x17f1   : > { %v4886_v6 = vpop.f32.mrf.mxu1 }
0x17f2   : > { %v5275_v50 = vpack.i.bf16 %v7284_v55, %v7282_v59  ;;  %v3647_v46 = vpack.c.bf16 %v7284_v55, %v7282_v59 }
0x17f4   : > { %5276 = vrot.lane.b32.xlu1 %v5275_v50, %s6274_s27  ;;  %s1436_s27 = scalar_lea.vmem [#allocation38], %s4505_s25 }
0x1866   : > { %v5277_v7 = vpop.permute.xlu1 %5276 }
0x1867   : > { %v5279_v10 = vunpack.i.h.bf16 %v5277_v7  ;;  %v5278_v56 = vunpack.i.l.bf16 %v5277_v7 }
0x1869   : > { %v4643_v41 = vpack.c.bf16 %v5279_v10, %v5278_v56  ;;  %v5489_v56 = vld [vmem:[%s7053_s7] sm:$0xff]  }
0x186b   : > { %4895 = vmatprep.subr.msk.bf16.mxu1 %vm7001_vm10, %v4643_v41 }
0x186c   : > { %4896 = vmatpush3.bf16.msk.msra.mxu1 %vm7001_vm10, %v4643_v41 }
0x186d   : > { %4897 = vmatprep.subr.bf16.mxu1 %v3647_v46 }
0x1870   : > { %4898 = vmatpush3.bf16.msra.mxu1 %v3647_v46 }
0x1871   : > { %4911 = vmatprep.subr.bf16.mxu1 %v6271_v0 }
0x1873   : > { %4900 = vmatmul.mubr.msk.bf16.vlgmr.msra.gmra.mxu1 %vm1709_vm3, %v5488_v12 }
0x1874   : > { %4913 = vmatprep.mubr.msk.bf16.mxu1 %vm6272_vm0, %v6271_v0 }
0x1933   : > { %v4901_v5 = vpop.f32.mrf.mxu1 }
0x1934   : > { %v3700_v27 = vadd.f32 %v4901_v5, %v3631_v22 }
0x1935   : > { %v3683_v9 = vpop.f32.mrf.mxu1 }
0x1936   : > { %v4649_v26 = vmul.f32 -1.442695, %v3700_v27  ;;  %v3698_v47 = vadd.f32 %v3683_v9, %v3623_v25 }
0x1937   : > { %v4902_v58 = vpop.f32.mrf.mxu1 }
0x1938   : > { %5453 = vpow2.f32 %v4649_v26  ;;  %v4647_v32 = vmul.f32 -1.442695, %v3698_v47  ;;  %v3701_v33 = vadd.f32 %v4902_v58, %v3634_v17  ;;  %v4653_v17 = vld [vmem:[#allocation32 + $0x2] ss:$0 sm:$0xff] }
0x1939   : > { %v3686_v4 = vpop.f32.mrf.mxu1 }
0x193a   : > { %5455 = vpow2.f32 %v4647_v32  ;;  %v4650_v62 = vmul.f32 -1.442695, %v3701_v33  ;;  %v3699_v16 = vadd.f32 %v3686_v4, %v3626_v38 }
0x193c   : > { %5457 = vpow2.f32 %v4650_v62  ;;  %v4648_v31 = vmul.f32 -1.442695, %v3699_v16 }
0x193e   : > { %5459 = vpow2.f32 %v4648_v31 }
0x1945   : > { %v5454_v23 = vpop.eup %5453 }
0x1946   : > { %v3716_v29 = vadd.f32 1.0, %v5454_v23 }
0x1947   : > { %v5456_v30 = vpop.eup %5455 }
0x1948   : > { %5461 = vrcp.f32 %v3716_v29  ;;  %v3714_v14 = vadd.f32 1.0, %v5456_v30 }
0x1949   : > { %v5458_v15 = vpop.eup %5457 }
0x194a   : > { %v3717_v34 = vadd.f32 1.0, %v5458_v15  ;;  %5463 = vrcp.f32 %v3714_v14 }
0x194b   : > { %v5460_v28 = vpop.eup %5459 }
0x194c   : > { %5465 = vrcp.f32 %v3717_v34  ;;  %v3715_v35 = vadd.f32 1.0, %v5460_v28 }
0x194e   : > { %5467 = vrcp.f32 %v3715_v35 }
0x1955   : > { %v5462_v37 = vpop.eup %5461 }
0x1956   : > { %3734 = vrot.lane.b32.xlu0 %v5462_v37, %s6275_s19 }
0x1957   : > { %v5464_v39 = vpop.eup %5463 }
0x1959   : > { %v5466_v36 = vpop.eup %5465 }
0x195a   : > { %3736 = vrot.lane.b32.xlu1 %v5466_v36, %s6275_s19  ;;  %3730 = vrot.lane.b32.xlu0 %v5464_v39, %s6275_s19 }
0x195b   : > { %v5468_v43 = vpop.eup %5467 }
0x195e   : > { %3732 = vrot.lane.b32.xlu1 %v5468_v43, %s6275_s19 }
0x19c8   : > { %v3735_v44 = vpop.permute.xlu0 %3734 }
0x19c9   : > { %v3744_v45 = vmul.f32 %v4901_v5, %v3735_v44 }
0x19cc   : > { %v3737_v42 = vpop.permute.xlu1 %3736  ;;  %v3731_v49 = vpop.permute.xlu0 %3730 }
0x19cd   : > { %v3745_v48 = vmul.f32 %v4902_v58, %v3737_v42  ;;  %v3742_v52 = vmul.f32 %v3731_v49, %v3683_v9 }
0x19cf   : > { %v5280_v54 = vpack.i.bf16 %v3745_v48, %v3744_v45 }
0x19d0   : > { %v3733_v11 = vpop.permute.xlu1 %3732 }
0x19d1   : > { %v3743_v3 = vmul.f32 %v3733_v11, %v3686_v4  ;;  %5281 = vrot.lane.b32.xlu0 %v5280_v54, %s6276_s12 }
0x19d3   : > { %v5285_v21 = vpack.i.bf16 %v3743_v3, %v3742_v52 }
0x19d5   : > { %5286 = vrot.lane.b32.xlu1 %v5285_v21, %s6276_s12 }
0x1a43   : > { %v5282_v40 = vpop.permute.xlu0 %5281 }
0x1a44   : > { %v5284_v24 = vunpack.i.h.bf16 %v5282_v40  ;;  %v5283_v61 = vunpack.i.l.bf16 %v5282_v40 }
0x1a46   : > { %v3765_v18 = vsel %vm1709_vm3, %v5284_v24, %v3737_v42  ;;  %v3764_v13 = vsel %vm1709_vm3, %v5283_v61, %v3735_v44 }
0x1a47   : > { %v3767_v63 = vpack.c.bf16 %v3765_v18, %v3764_v13  ;;  %v5287_v57 = vpop.permute.xlu1 %5286 }
0x1a48   : > { %v5289_v2 = vunpack.i.h.bf16 %v5287_v57  ;;  %v5288_v6 = vunpack.i.l.bf16 %v5287_v57 }
0x1a49   : > { %4904 = vmatpush3.bf16.msra.mxu0 %v3767_v63 }
0x1a4a   : > { %v3763_v50 = vsel %vm1709_vm3, %v5289_v2, %v3733_v11  ;;  %v3762_v7 = vsel %vm1709_vm3, %v5288_v6, %v3731_v49  ;;  %4905 = vmatprep.subr.bf16.mxu0 %v6271_v0 }
0x1a4b   : > { %v3766_v10 = vpack.c.bf16 %v3763_v50, %v3762_v7  ;;  %v3956_v7 = vld [vmem:[%s7514_s9 + $0x10] sm:$0xff] }
0x1a4d   : > { %4906 = vmatpush3.bf16.msra.mxu0 %v3766_v10  ;;  %v3957_v10 = vld [vmem:[%s7514_s9 + $0x18] sm:$0xff] }
0x1a4e   : > { %4917 = vmatprep.subr.bf16.mxu0 %v6271_v0 }
0x1a50   : > { %4908 = vmatmul.mubr.msk.bf16.vlgmr.msra.gmra.mxu0 %vm1709_vm3, %v5489_v56  ;;  %v3960_v56 = vpack.c.bf16 %v3957_v10, %v3956_v7 }
0x1a51   : > { %4921 = vmatprep.mubr.msk.bf16.mxu0 %vm6272_vm0, %v6271_v0 }
0x1a52   : > { %4918 = vmatpush3.bf16.msra.mxu0 %v3960_v56 }
0x1a53   : > { %4919 = vmatprep.subr.bf16.mxu0 %v6271_v0 }
0x1b10   : > { %v3802_v41 = vpop.f32.mrf.mxu0 }
0x1b11   : > { %v3809_v46 = vadd.f32 1e-06, %v3802_v41 }
0x1b12   : > { %v4909_v12 = vpop.f32.mrf.mxu0 }
0x1b13   : > { %5469 = vrcp.f32 %v3809_v46 }
0x1b14   : > { %v3805_v51 = vpop.f32.mrf.mxu0 }
0x1b15   : > { %v3810_v19 = vadd.f32 1e-06, %v3805_v51 }
0x1b16   : > { %v4910_v20 = vpop.f32.mrf.mxu0 }
0x1b17   : > { %5471 = vrcp.f32 %v3810_v19 }
0x1b20   : > { %v5470_v8 = vpop.eup %5469 }
0x1b21   : > { %3815 = vrot.lane.b32.xlu0 %v5470_v8, %s6276_s12 }
0x1b24   : > { %v5472_v22 = vpop.eup %5471 }
0x1b25   : > { %3817 = vrot.lane.b32.xlu1 %v5472_v22, %s6276_s12 }
0x1b93   : > { %v3816_v5 = vpop.permute.xlu0 %3815 }
0x1b94   : > { %v3821_v25 = vmul.f32 %v3816_v5, %v3802_v41 }
0x1b96   : > { %3825 = vrot.lane.b32.xlu0 %v3821_v25, %s6276_s12  ;;  %v3909_v25 = vld [vmem:[%s6756_s28] sm:$0xf]  ;;  %s7516_s28 = sld [smem:[#allocation83_spill]] }
0x1b97   : > { %v3818_v27 = vpop.permute.xlu1 %3817 }
0x1b98   : > { %v3822_v9 = vmul.f32 %v3818_v27, %v3805_v51  ;;  %v3954_v27 = vld [vmem:[%s7514_s9] sm:$0xff] }
0x1b9a   : > { %3827 = vrot.lane.b32.xlu1 %v3822_v9, %s6276_s12  ;;  %3870 = vrot.lane.b32.xlu0 %v4652_v1, %s6276_s12  ;;  %v3955_v1 = vld [vmem:[%s7514_s9 + $0x8] sm:$0xff] }
0x1b9b   : > { %v3959_v9 = vpack.c.bf16 %v3955_v1, %v3954_v27 }
0x1b9d   : > { %4920 = vmatpush3.bf16.msra.mxu0 %v3959_v9 }
0x1b9e   : > { %3880 = vrot.lane.b32.xlu1 %v4653_v17, %s6276_s12  ;;  %s6096_s12 = sshll.u32 %s6277_s26, 4  ;;  %s6097_s12 = int_to_ptr.vmem [resolvable:$false] %s6096_s12 }
0x1c08   : > { %v3826_v26 = vpop.permute.xlu0 %3825 }
0x1c09   : > { %v3831_v47 = vadd.f32 %v3826_v26, %v7282_v59 }
0x1c0b   : > { %v3837_v32 = vsel %vm2473_vm11, %v3831_v47, 0.0 }
0x1c0c   : > { %v3828_v58 = vpop.permute.xlu1 %3827  ;;  %v3871_v11 = vpop.permute.xlu0 %3870 }
0x1c0d   : > { %v3832_v38 = vadd.f32 %v3828_v58, %v7284_v55  ;;  %v4020_v58 = vld [vmem:[%s7515_s10 + $0x10] sm:$0xff] }
0x1c0f   : > { %v3838_v33 = vsel %vm2473_vm11, %v3832_v38, 0.0 }
0x1c10   : > { %v3839_v4 = vadd.f32 %v3838_v33, %v3837_v32  ;;  %v3881_v21 = vpop.permute.xlu1 %3880  ;;  %v4018_v33 = vld [vmem:[%s7515_s10] sm:$0xff] }
0x1c12   : > { %v3840_v62 = vrot.slane %v3839_v4, 4 }
0x1c14   : > { %v3841_v16 = vadd.f32 %v3840_v62, %v3839_v4  ;;  %v4019_v4 = vld [vmem:[%s7515_s10 + $0x8] sm:$0xff] }
0x1c15   : > { %v4023_v62 = vpack.c.bf16 %v4019_v4, %v4018_v33 }
0x1c16   : > { %v3842_v31 = vrot.slane %v3841_v16, 2 }
0x1c18   : > { %v3843_v23 = vadd.f32 %v3842_v31, %v3841_v16  ;;  %v4657_v16 = vld [vmem:[#allocation37] ss:$0 sm:$0xff] }
0x1c1a   : > { %v3844_v29 = vrot.slane %v3843_v23, 1 }
0x1c1c   : > { %v3845_v30 = vadd.f32 %v3844_v29, %v3843_v23 }
0x1c1e   : > { %v3846_v14 = vmul.f32 0.0625, %v3845_v30 }
0x1c20   : > { %v3848_v15 = vsub.f32 %v3832_v38, %v3846_v14  ;;  %v3847_v34 = vsub.f32 %v3831_v47, %v3846_v14  ;;  %v4021_v38 = vld [vmem:[%s7515_s10 + $0x18] sm:$0xff] }
0x1c21   : > { %v4024_v32 = vpack.c.bf16 %v4021_v38, %v4020_v58 }
0x1c22   : > { %v3850_v28 = vmul.f32 %v3848_v15, %v3848_v15  ;;  %v3849_v35 = vmul.f32 %v3847_v34, %v3847_v34 }
0x1c24   : > { %v3852_v59 = vsel %vm2473_vm11, %v3850_v28, 0.0  ;;  %v3851_v55 = vsel %vm2473_vm11, %v3849_v35, 0.0 }
0x1c25   : > { %v3853_v37 = vadd.f32 %v3852_v59, %v3851_v55  ;;  %v4660_v55 = vld [vmem:[%s7516_s28] ss:$0 sm:$0xff]  ;;  %s6098_s28 = scalar_lea.vmem %s6097_s12, 256 }
0x1c27   : > { %v3854_v39 = vrot.slane %v3853_v37, 4 }
0x1c29   : > { %v3855_v36 = vadd.f32 %v3854_v39, %v3853_v37 }
0x1c2b   : > { %v3856_v43 = vrot.slane %v3855_v36, 2 }
0x1c2d   : > { %v3857_v44 = vadd.f32 %v3856_v43, %v3855_v36 }
0x1c2f   : > { %v3858_v42 = vrot.slane %v3857_v44, 1 }
0x1c31   : > { %v3859_v45 = vadd.f32 %v3858_v42, %v3857_v44 }
0x1c33   : > { %v3860_v48 = vmul.f32 0.0625, %v3859_v45 }
0x1c35   : > { %v3861_v49 = vadd.f32 1e-05, %v3860_v48 }
0x1c37   : > { %5473 = vrsqrt.f32 %v3861_v49 }
0x1c44   : > { %v5474_v54 = vpop.eup %5473 }
0x1c45   : > { %v3863_v52 = vmul.f32 %v5474_v54, %v3847_v34  ;;  %v3864_v3 = vmul.f32 %v5474_v54, %v3848_v15 }
0x1c47   : > { %v3873_v40 = vmul.f32 %v3871_v11, %v3863_v52  ;;  %v3874_v24 = vmul.f32 %v3871_v11, %v3864_v3 }
0x1c49   : > { %v3883_v61 = vadd.f32 %v3881_v21, %v3873_v40  ;;  %v3884_v18 = vadd.f32 %v3881_v21, %v3874_v24 }
0x1c4b   : > { %v4654_v13 = vmul.f32 -1.442695, %v3883_v61  ;;  %v4655_v63 = vmul.f32 -1.442695, %v3884_v18 }
0x1c4d   : > { %5475 = vpow2.f32 %v4654_v13 }
0x1c4e   : > { %5477 = vpow2.f32 %v4655_v63 }
0x1c5a   : > { %v5476_v57 = vpop.eup %5475 }
0x1c5b   : > { %v5478_v2 = vpop.eup %5477  ;;  %v3891_v6 = vadd.f32 1.0, %v5476_v57 }
0x1c5c   : > { %v3892_v50 = vadd.f32 1.0, %v5478_v2 }
0x1c5d   : > { %5479 = vrcp.f32 %v3891_v6 }
0x1c5e   : > { %5481 = vrcp.f32 %v3892_v50 }
0x1c6a   : > { %v5480_v41 = vpop.eup %5479 }
0x1c6b   : > { %v5482_v46 = vpop.eup %5481  ;;  %v3897_v12 = vmul.f32 %v5480_v41, %v3883_v61 }
0x1c6c   : > { %v3898_v51 = vmul.f32 %v5482_v46, %v3884_v18 }
0x1c6d   : > { %3901 = vrot.lane.b32.xlu0 %v3897_v12, %s6275_s19 }
0x1c6e   : > { %3903 = vrot.lane.b32.xlu1 %v3898_v51, %s6275_s19  ;;  %s4090_s19 = sshll.u32 %s1436_s27, 4  ;;  %s7355_s19 = int_to_ptr.vmem [resolvable:$true] %s4090_s19 }
0x1c6f   : > { %s6092_s7 = scalar_lea.vmem %s7355_s19, 128  ;;  %p6099_p6 = scmp.lt.s32.totalorder %s7355_s19, %s6097_s12 }
0x1c70   : > { %p6093_p2 = scmp.ne.s32.totalorder %s7355_s19, %s6092_s7  ;;  %p6100_p9 = scmp.lt.s32.totalorder %s6098_s28, %s6092_s7 }
0x1c72   : > { %p6094_p10 = pnand %p6093_p2, %p7518_p5  ;;  %p6101_p11 = por %p6100_p9, %p6099_p6 }
0x1c74   : > { %p6095_p0 = pneg %p6094_p10 }
0x1c76   : > { %p6102_p7 = pnand %p6101_p11, %p6095_p0 }
0x1cdf   : > { %v3902_v19 = vpop.permute.xlu0 %3901 }
0x1ce0   : > { %v3904_v20 = vpop.permute.xlu1 %3903  ;;  %v3907_v8 = vadd.f32 %v3902_v19, %v7272_v53 }
0x1ce1   : > { %v3908_v22 = vadd.f32 %v3904_v20, %v7275_v60 }
0x1ce3   : > { %v3910_v5 = vpack.c.bf16 %v3908_v22, %v3907_v8 }
0x1ce5   : > { %4912 = vmatpush3.bf16.msra.mxu1 %v3910_v5 }
0x1ce6   : > { %4925 = vmatprep.subr.bf16.mxu1 %v6271_v0 }
0x1ce8   : > { %4914 = vmatmul.mubr.msk.bf16.vlgmr.msra.gmra.mxu1 %vm1578_vm4, %v3909_v25 }
0x1ce9   : > { %4929 = vmatprep.mubr.msk.bf16.mxu1 %vm6272_vm0, %v6271_v0  ;;  %4926 = vmatpush3.bf16.msra.mxu1 %v4024_v32 }
0x1cea   : > { %4927 = vmatprep.subr.bf16.mxu1 %v6271_v0 }
0x1ced   : > { %4928 = vmatpush3.bf16.msra.mxu1 %v4023_v62 }
0x1da8   : > { %v3948_v53 = vpop.f32.mrf.mxu1 }
0x1da9   : > { %v3958_v60 = vpack.c.bf16 %v3948_v53, %v3948_v53 }
0x1daa   : > { %v4915_v17 = vpop.f32.mrf.mxu1 }
0x1dab   : > { %4922 = vmatmul.mubr.msk.bf16.vlgmr.msra.gmra.mxu0 %vm1709_vm3, %v3958_v60 }
0x1dac   : > { %v3951_v26 = vpop.f32.mrf.mxu1 }
0x1dae   : > { %v4916_v47 = vpop.f32.mrf.mxu1 }
0x1e6b   : > { %v4005_v31 = vpop.f32.mrf.mxu0 }
0x1e6c   : > { %v4006_v23 = vadd.f32 %v4657_v16, %v4005_v31 }
0x1e6d   : > { %v4923_v29 = vpop.f32.mrf.mxu0 }
0x1e6e   : > { %v4659_v30 = vmul.f32 -1.442695, %v4006_v23 }
0x1e6f   : > { %v4008_v14 = vpop.f32.mrf.mxu0 }
0x1e70   : > { %5483 = vpow2.f32 %v4659_v30 }
0x1e71   : > { %v4924_v15 = vpop.f32.mrf.mxu0 }
0x1e7d   : > { %v5484_v34 = vpop.eup %5483 }
0x1e7e   : > { %v4014_v28 = vadd.f32 1.0, %v5484_v34 }
0x1e80   : > { %5485 = vrcp.f32 %v4014_v28 }
0x1e8d   : > { %v5486_v0 = vpop.eup %5485 }
0x1e8e   : > { %v4017_v35 = vmul.f32 %v5486_v0, %v4006_v23 }
0x1e90   : > { %v4022_v59 = vpack.c.bf16 %v4017_v35, %v4017_v35 }
0x1e92   : > { %4930 = vmatmul.mubr.msk.bf16.vlgmr.msra.gmra.mxu1 %vm1709_vm3, %v4022_v59 }
0x1f52   : > { %v4069_v37 = vpop.f32.mrf.mxu1 }
0x1f53   : > { %v4070_v39 = vadd.f32 %v4660_v55, %v4069_v37 }
0x1f54   : > { %v4931_v36 = vpop.f32.mrf.mxu1 }
0x1f55   : > { %4075 = vst [vmem:[%s1436_s27] sm:$0xff] %v4070_v39 }
0x1f56   : > { %v4072_v43 = vpop.f32.mrf.mxu1 }
0x1f57   : > { %6105 = shalt.err (!%p6102_p7)
}
0x1f58   : > { %s6106_s21 = scalar_lea.hbm %s7353_s20, 128  ;;  %s6110_s25 = scalar_lea.hbm %s7517_s4, 512 }
0x1f59   : > { %p6107_p4 = scmp.ne.s32.totalorder %s7353_s20, %s6106_s21  ;;  %p6111_p3 = scmp.lt.s32.totalorder %s7353_s20, %s7517_s4 }
0x1f5a   : > { %p6112_p12 = scmp.lt.s32.totalorder %s6110_s25, %s6106_s21 }
0x1f5b   : > { %p6108_p8 = pnand %p6107_p4, %p7518_p5 }
0x1f5c   : > { %p6113_p13 = por %p6112_p12, %p6111_p3 }
0x1f5d   : > { %p6109_p1 = pneg %p6108_p8 }
0x1f5f   : > { %p6114_p2 = pnand %p6113_p13, %p6109_p1 }
0x1f61   : > { %6117 = shalt.err (!%p6114_p2)
}
0x1f62   : > { %5021 = dma.vmem_to_hbm [thread:$0]  (%p7518_p5), %s7355_s19, 128, %s7353_s20, %s4077_s5   ;;  %v4932_v44 = vpop.f32.mrf.mxu1 }
0x1f63 PF: > { %p5141_p10 = scmp.ge.s32.totalorder %s6204_s18, 2  ;;  %s4102_s13 = sand.u32 1, %s6192_s15  }
0x1f64   : > { %p7519_p0 = scmp.ne.s32.totalorder %s7470_s1, 0  ;;  %s4103_s27 = scalar_lea.sflag [#allocation4], %s4102_s13 }
0x1f66   : > { %p5095_p6 = pnand %p5141_p10, %p7519_p0 }
0x1f68   : > { %p5096_p9 = pneg %p5095_p6 }
0x1f6a   : > { %6187 = dma.done.wait (%p5096_p9), %s4103_s27, 128  }
0x1f6b   : > { %6189 = vsyncadd (%p5096_p9), %s4103_s27, 4294967168  ;;  %p95_p11 = scmp.ge.s32.totalorder %s6661_s6, 6   ;;  %s7520_s15 = smov %s6196_s0 }
0x1f6c   : > { %s7521_s0 = smov %s6200_s16  ;;  %s7522_s16 = smov %s6673_s11 }
0x1f6d   : > { %s7523_s18 = smov %s6661_s6  ;;  %97 = sbr.rel (!%p95_p11) target bundleno = 89 (0x59), region = 365 }
0x1f72   :  { %4108 = vsyncpa [#allocation3], 1 }
0x1f73   :  { %4110 = vsyncpa [#allocation3 + $0x1], 1 }
0x1f74   :  { %4111 = vsyncpa [#allocation6], 1 }
0x1f75   :  { %4113 = vsyncpa [#allocation6 + $0x1], 1 }
0x1f76   :  { %4114 = vsyncpa [#allocation9], 1 }
0x1f77   :  { %4115 = vsyncpa [#allocation12], 1 }
0x1f78   :  { %4116 = vsyncpa [#allocation15], 1 }
0x1f79   :  { %4117 = vsyncpa [#allocation18], 1 }
0x1f7a   :  { %4118 = vsyncpa [#allocation21], 1 }
0x1f7b   :  { %4119 = vsyncpa [#allocation24], 1 }
0x1f7c   :  { %4120 = vsyncpa [#allocation27], 1 }
0x1f7d   :  { %4121 = vsyncpa [#allocation30], 1 }
0x1f7e   :  { %4122 = vsyncpa [#allocation33], 1 }
0x1f7f   :  { %4123 = vsyncpa [#allocation36], 1 }
0x1f80   :  { %4124 = vsyncpa [#allocation4], 1 }
0x1f81   :  { %4126 = vsyncpa [#allocation4 + $0x1], 1 }

</bundles_post_ra>
